<compile_context>
chip_gen: v7x
topology: tpu7x:2x2x1
jax: 0.10.0
libtpu: 0.0.40
codegen_flags: <defaults>
</compile_context>

<pallas_src>
import functools

import jax
import jax.numpy as jnp
from jax.experimental import pallas as pl
from jax.experimental.pallas import tpu as pltpu


_MAX_STATIC_UNROLL = 4        # static Python unroll up to this many layers
_LN_EPS = 1e-6                # pypots TransformerEncoderLayer / FFN LayerNorm eps
_APPROX_SOFTMAX_RECIP = True  # EUP vrcp for softmax denominators


# ----------------------------------------------------------------------------
# In-kernel helpers
# ----------------------------------------------------------------------------
def _layer_norm(x, gamma, beta, eps=_LN_EPS):
    mu = jnp.mean(x, axis=-1, keepdims=True)
    var = jnp.mean((x - mu) ** 2, axis=-1, keepdims=True)
    return (x - mu) * jax.lax.rsqrt(var + eps) * gamma + beta


# ----------------------------------------------------------------------------
# Fused kernel: one grid step == a (Bb, S, *) block's full SAITS forward
# ----------------------------------------------------------------------------
def _fused_saits_kernel(n_layers, n_heads, d_k, d_v, *refs):
    (x_ref, m_ref, pos_ref,
     e1wx_ref, e1wm_ref, e1b_ref,
     e2wx_ref, e2wm_ref, e2b_ref) = refs[:9]
    blk1 = refs[9:21]
    blk2 = refs[21:33]
    (rz_w_ref, rz_b_ref, rb_w_ref, rb_b_ref, rg_w_ref, rg_b_ref,
     wc_wm_ref, wc_wa_ref, wc_b_ref) = refs[33:42]
    slab_ref, attn1_ref, attn2_ref = refs[42:45]

    f32 = jnp.float32
    cdt = jnp.bfloat16                 # MXU operand dtype (f32 accumulation)
    H, dk, dv = n_heads, d_k, d_v

    Bb, S, F = x_ref.shape
    D = pos_ref.shape[1]
    M = Bb * S                         # row count for every big matmul

    x = x_ref[...].reshape(M, F)       # f32
    m = m_ref[...].reshape(M, F)       # f32
    x_c = x.astype(cdt)
    m_c = m.astype(cdt)
    # positional table broadcast, hoisted once and reused by both embeddings
    pos_flat = jnp.broadcast_to(pos_ref[...][None, :, :], (Bb, S, D)).reshape(M, D)

    def encoder_layer(h, wq, wk, wv, wo, g1, be1, w1, b1, w2, b2, g2, be2):
        # h: (M, D) f32.  wq/wk: (D, H*dk) bf16 (wq pre-scaled by 1/sqrt(dk)),
        # wv: (D, H*dv), wo: (H*dv, D).
        h_c = h.astype(cdt)
        q = jnp.dot(h_c, wq, preferred_element_type=f32)          # (M, H*dk)
        k = jnp.dot(h_c, wk, preferred_element_type=f32)          # (M, H*dk)
        v = jnp.dot(h_c, wv, preferred_element_type=f32)          # (M, H*dv)
        q3 = q.reshape(Bb, S, H * dk)
        k3 = k.reshape(Bb, S, H * dk)
        v3 = v.reshape(Bb, S, H * dv)
        ctx_cols, attn_heads = [], []
        for hd in range(H):                                        # static, H small
            qh = q3[:, :, hd * dk:(hd + 1) * dk].astype(cdt)       # (Bb, S, dk)
            kh = k3[:, :, hd * dk:(hd + 1) * dk].astype(cdt)
            vh = v3[:, :, hd * dv:(hd + 1) * dv].astype(cdt)
            s = jax.lax.dot_general(qh, kh, (((2,), (2,)), ((0,), (0,))),
                                    preferred_element_type=f32)    # (Bb, S, S)
            smax = jnp.max(s, axis=-1, keepdims=True)
            e = jnp.exp(s - smax)
            denom = jnp.sum(e, axis=-1, keepdims=True)
            a = e * pl.reciprocal(denom, approx=_APPROX_SOFTMAX_RECIP)
            ctx = jax.lax.dot_general(a.astype(cdt), vh,
                                      (((2,), (1,)), ((0,), (0,))),
                                      preferred_element_type=f32)  # (Bb, S, dv)
            attn_heads.append(a)
            ctx_cols.append(ctx)
        ctx_flat = jnp.concatenate(ctx_cols, axis=-1).reshape(M, H * dv)
        attn_out = jnp.dot(ctx_flat.astype(cdt), wo,
                           preferred_element_type=f32)             # (M, D)
        h1 = _layer_norm(attn_out + h, g1, be1)
        ff = jnp.maximum(
            jnp.dot(h1.astype(cdt), w1, preferred_element_type=f32) + b1, 0.0)
        ff = jnp.dot(ff.astype(cdt), w2, preferred_element_type=f32) + b2
        h2 = _layer_norm(ff + h1, g2, be2)
        return h2, attn_heads

    def layer_weights(blk, idx):
        return tuple(r[idx] for r in blk)

    def run_block(h, blk, attn_ref):
        n_warm = n_layers - 1
        if n_warm > 0:
            if n_layers <= _MAX_STATIC_UNROLL:
                for layer in range(n_warm):                        # static unroll
                    h, _ = encoder_layer(h, *layer_weights(blk, layer))
            else:
                # deep stacks: loop boundary keeps vreg pressure flat
                def body(layer, hc):
                    hn, _ = encoder_layer(hc, *layer_weights(blk, layer))
                    return hn
                h = jax.lax.fori_loop(0, n_warm, body, h)
        # last layer: the only one whose attention map is a module output
        h, attn_heads = encoder_layer(h, *layer_weights(blk, n_layers - 1))
        attn_ref[...] = jnp.stack(attn_heads, axis=1)              # (Bb, H, S, S)
        return h, attn_heads

    # ---- first DMSA block ----
    enc = (jnp.dot(x_c, e1wx_ref[...], preferred_element_type=f32)
           + jnp.dot(m_c, e1wm_ref[...], preferred_element_type=f32)
           + e1b_ref[...] + pos_flat)
    enc, _ = run_block(enc, blk1, attn1_ref)
    xt1 = (jnp.dot(enc.astype(cdt), rz_w_ref[...], preferred_element_type=f32)
           + rz_b_ref[...])                                        # (M, F)

    # ---- second DMSA block on X_prime ----
    x_prime = m * x + (1.0 - m) * xt1                              # f32
    enc2 = (jnp.dot(x_prime.astype(cdt), e2wx_ref[...], preferred_element_type=f32)
            + jnp.dot(m_c, e2wm_ref[...], preferred_element_type=f32)
            + e2b_ref[...] + pos_flat)
    enc2, attn2_heads = run_block(enc2, blk2, attn2_ref)
    hid = jnp.maximum(
        jnp.dot(enc2.astype(cdt), rb_w_ref[...], preferred_element_type=f32)
        + rb_b_ref[...], 0.0)
    xt2 = (jnp.dot(hid.astype(cdt), rg_w_ref[...], preferred_element_type=f32)
           + rg_b_ref[...])                                        # (M, F)

    # ---- attention-weighted combination ----
    attn_mean = attn2_heads[0]
    for hd in range(1, H):
        attn_mean = attn_mean + attn2_heads[hd]
    attn_mean = attn_mean * (1.0 / H)                              # (Bb, S, S)
    logits = (jnp.dot(m_c, wc_wm_ref[...], preferred_element_type=f32)
              + jnp.dot(attn_mean.reshape(M, S).astype(cdt), wc_wa_ref[...],
                        preferred_element_type=f32)
              + wc_b_ref[...])
    cw = 1.0 / (1.0 + jnp.exp(-logits))       # exact sigmoid (output parity)
    xt3 = (1.0 - cw) * xt2 + cw * xt1

    # lane-dense packed output slab [xt1 | xt2 | xt3 | cw] (unpacked in wrapper)
    slab_ref[:, :, 0 * F:1 * F] = xt1.reshape(Bb, S, F)
    slab_ref[:, :, 1 * F:2 * F] = xt2.reshape(Bb, S, F)
    slab_ref[:, :, 2 * F:3 * F] = xt3.reshape(Bb, S, F)
    slab_ref[:, :, 3 * F:4 * F] = cw.reshape(Bb, S, F)


# ----------------------------------------------------------------------------
# BlockSpec helpers + pallas_call wrapper
# ----------------------------------------------------------------------------
def _full_spec(a):
    nd = a.ndim
    return pl.BlockSpec(a.shape, lambda b, _nd=nd: (0,) * _nd)


def _batched_spec(shape, bb):
    nd = len(shape)
    return pl.BlockSpec((bb,) + tuple(shape[1:]),
                        lambda b, _nd=nd: (b,) + (0,) * (_nd - 1))


def _pick_batch_block(batch, seq, max_rows=1024):
    """Largest divisor of `batch` whose Bb*S row count stays VMEM-friendly."""
    # NOTE: on v7x (megacore) prefer a divisor leaving >= 2*num_cores grid steps.
    best = 1
    for cand in range(1, batch + 1):
        if batch % cand == 0 and cand * seq <= max_rows:
            best = cand
    return best


def _cost_estimate(B, S, F, D, d_ffn, H, dk, dv, L):
    M = B * S
    per_layer = (2 * M * D * H * (2 * dk + dv)       # q/k/v projections
                 + 2 * B * H * S * S * (dk + dv)     # scores + context
                 + 2 * M * H * dv * D                # output projection
                 + 4 * M * D * d_ffn)                # position-wise FFN
    flops = (2 * L * per_layer
             + 2 * (2 * M * 2 * F * D)               # the two SAITS embeddings
             + 2 * M * D * F * 2                     # reduce_dim_z / reduce_dim_beta
             + 2 * M * F * F                         # reduce_dim_gamma
             + 2 * M * (F + S) * F)                  # weight_combine
    transcendentals = 2 * L * B * H * S * S + M * F
    bytes_accessed = 4 * (2 * M * F                  # X, missing_mask in
                          + 4 * M * F                # packed slab out
                          + 2 * B * H * S * S)       # two attention maps out
    return pl.CostEstimate(flops=int(flops),
                           transcendentals=int(transcendentals),
                           bytes_accessed=int(bytes_accessed))


def backbone_saits_forward(params, X, missing_mask, n_layers, n_heads, d_k, d_v):
    B, S, F = X.shape
    D = params['pos_table'].shape[1]
    d_ffn = params['block1'][6].shape[-1]
    Bb = _pick_batch_block(B, S)
    nb = B // Bb

    weights = (
        params['pos_table'],
        params['emb1_wx'], params['emb1_wm'], params['emb1_b'],
        params['emb2_wx'], params['emb2_wm'], params['emb2_b'],
        *params['block1'],
        *params['block2'],
        params['rz_w'], params['rz_b'],
        params['rb_w'], params['rb_b'],
        params['rg_w'], params['rg_b'],
        params['wc_wm'], params['wc_wa'], params['wc_b'],
    )
    args = (X, missing_mask) + weights
    # weights use constant index_maps -> DMA'd once, VMEM-resident across steps
    in_specs = ([_batched_spec(X.shape, Bb), _batched_spec(missing_mask.shape, Bb)]
                + [_full_spec(w) for w in weights])

    H = n_heads
    out_shapes = (
        jax.ShapeDtypeStruct((B, S, 4 * F), jnp.float32),   # packed xt1|xt2|xt3|cw
        jax.ShapeDtypeStruct((B, H, S, S), jnp.float32),    # first DMSA attn
        jax.ShapeDtypeStruct((B, H, S, S), jnp.float32),    # second DMSA attn
    )
    out_specs = tuple(_batched_spec(s.shape, Bb) for s in out_shapes)

    kernel = functools.partial(_fused_saits_kernel, n_layers, n_heads, d_k, d_v)

    slab, attn1, attn2 = pl.pallas_call(
        kernel,
        out_shape=out_shapes,
        grid=(nb,),
        in_specs=in_specs,
        out_specs=out_specs,
        compiler_params=pltpu.CompilerParams(
            dimension_semantics=("parallel",),
            vmem_limit_bytes=48 * 1024 * 1024),
        cost_estimate=_cost_estimate(B, S, F, D, d_ffn, H, d_k, d_v, n_layers),
    )(*args)

    xt1 = slab[..., 0 * F:1 * F]
    xt2 = slab[..., 1 * F:2 * F]
    xt3 = slab[..., 2 * F:3 * F]
    cw = slab[..., 3 * F:4 * F]
    return xt1, xt2, xt3, attn1, attn2, cw


# ----------------------------------------------------------------------------
# Parameter init + positional encoding (plain-JAX glue, deterministic)
# ----------------------------------------------------------------------------
def sinusoid_table(n_steps, d_model):
    pos = jnp.arange(n_steps, dtype=jnp.float32)[:, None]
    i = jnp.arange(d_model)
    angle = pos / jnp.power(10000.0, (2.0 * (i // 2)) / d_model)
    return jnp.where(i % 2 == 0, jnp.sin(angle), jnp.cos(angle)).astype(jnp.float32)


def init_params(key, n_layers, n_steps, n_features, d_model, d_ffn,
                n_heads, d_k, d_v, weight_dtype=jnp.bfloat16):
    keys = iter(jax.random.split(key, 512))

    def lin(fan_in, shape):
        w = jax.random.normal(next(keys), shape, jnp.float32) / jnp.sqrt(float(fan_in))
        return w.astype(weight_dtype)            # matmul weights stored bf16

    def small(shape):
        return 0.01 * jax.random.normal(next(keys), shape, jnp.float32)

    inv_temp = 1.0 / (d_k ** 0.5)                # attention temperature folded into Wq

    def make_layer():
        wq = jax.random.normal(next(keys), (d_model, n_heads * d_k), jnp.float32)
        wq = (wq / jnp.sqrt(float(d_model)) * inv_temp).astype(weight_dtype)
        return dict(
            wq=wq,                                              # (D, H*dk), pre-scaled
            wk=lin(d_model, (d_model, n_heads * d_k)),          # (D, H*dk)
            wv=lin(d_model, (d_model, n_heads * d_v)),          # (D, H*dv)
            wo=lin(n_heads * d_v, (n_heads * d_v, d_model)),    # (H*dv, D)
            ln1_g=jnp.ones((1, d_model), jnp.float32),
            ln1_b=jnp.zeros((1, d_model), jnp.float32),
            ffn_w1=lin(d_model, (d_model, d_ffn)),
            ffn_b1=small((1, d_ffn)),
            ffn_w2=lin(d_ffn, (d_ffn, d_model)),
            ffn_b2=small((1, d_model)),
            ln2_g=jnp.ones((1, d_model), jnp.float32),
            ln2_b=jnp.zeros((1, d_model), jnp.float32),
        )

    _ORDER = ('wq', 'wk', 'wv', 'wo', 'ln1_g', 'ln1_b',
              'ffn_w1', 'ffn_b1', 'ffn_w2', 'ffn_b2', 'ln2_g', 'ln2_b')

    def stack_block(layers):
        return tuple(jnp.stack([lp[k] for lp in layers], axis=0) for k in _ORDER)

    F = n_features
    return dict(
        pos_table=sinusoid_table(n_steps, d_model),
        emb1_wx=lin(2 * F, (F, d_model)), emb1_wm=lin(2 * F, (F, d_model)),
        emb1_b=small((1, d_model)),
        emb2_wx=lin(2 * F, (F, d_model)), emb2_wm=lin(2 * F, (F, d_model)),
        emb2_b=small((1, d_model)),
        block1=stack_block([make_layer() for _ in range(n_layers)]),
        block2=stack_block([make_layer() for _ in range(n_layers)]),
        rz_w=lin(d_model, (d_model, F)), rz_b=small((1, F)),
        rb_w=lin(d_model, (d_model, F)), rb_b=small((1, F)),
        rg_w=lin(F, (F, F)), rg_b=small((1, F)),
        wc_wm=lin(F + n_steps, (F, F)),
        wc_wa=lin(F + n_steps, (n_steps, F)),
        wc_b=small((1, F)),
    )


# ----------------------------------------------------------------------------
# Demo
# ----------------------------------------------------------------------------
if __name__ == "__main__":
    # small config consistent with the module's constructor
    n_layers, n_steps, n_features = 2, 8, 4
    d_model, d_ffn, n_heads, d_k, d_v = 32, 64, 2, 8, 8

    key = jax.random.PRNGKey(0)
    k_p, k_x, k_m = jax.random.split(key, 3)

    params = init_params(k_p, n_layers, n_steps, n_features,
                         d_model, d_ffn, n_heads, d_k, d_v)

    B = 2
    X = jax.random.normal(k_x, (B, n_steps, n_features), jnp.float32)
    missing_mask = jax.random.bernoulli(
        k_m, 0.7, (B, n_steps, n_features)).astype(jnp.float32)
    # SAITS convention: observed values only where mask == 1
    X = X * missing_mask

    outs = backbone_saits_forward(params, X, missing_mask,
                                  n_layers, n_heads, d_k, d_v)
    outs = jax.block_until_ready(outs)

    xt1, xt2, xt3, attn1, attn2, cw = outs
    assert xt1.shape == (B, n_steps, n_features)
    assert xt2.shape == (B, n_steps, n_features)
    assert xt3.shape == (B, n_steps, n_features)
    assert attn1.shape == (B, n_heads, n_steps, n_steps)
    assert attn2.shape == (B, n_heads, n_steps, n_steps)
    assert cw.shape == (B, n_steps, n_features)
    assert all(bool(jnp.all(jnp.isfinite(o))) for o in outs)
    print("KERNEL_OK")
</pallas_src>

<mosaic_0001>
module attributes {stable_mosaic.version = 11 : i64} {
  func.func @_fused_saits_kernel(%arg0: i32, %arg1: memref<2x8x4xf32, #tpu.memory_space<vmem>>, %arg2: memref<2x8x4xf32, #tpu.memory_space<vmem>>, %arg3: memref<8x32xf32, #tpu.memory_space<vmem>>, %arg4: memref<4x32xbf16, #tpu.memory_space<vmem>>, %arg5: memref<4x32xbf16, #tpu.memory_space<vmem>>, %arg6: memref<1x32xf32, #tpu.memory_space<vmem>>, %arg7: memref<4x32xbf16, #tpu.memory_space<vmem>>, %arg8: memref<4x32xbf16, #tpu.memory_space<vmem>>, %arg9: memref<1x32xf32, #tpu.memory_space<vmem>>, %arg10: memref<2x32x16xbf16, #tpu.memory_space<vmem>>, %arg11: memref<2x32x16xbf16, #tpu.memory_space<vmem>>, %arg12: memref<2x32x16xbf16, #tpu.memory_space<vmem>>, %arg13: memref<2x16x32xbf16, #tpu.memory_space<vmem>>, %arg14: memref<2x1x32xf32, #tpu.memory_space<vmem>>, %arg15: memref<2x1x32xf32, #tpu.memory_space<vmem>>, %arg16: memref<2x32x64xbf16, #tpu.memory_space<vmem>>, %arg17: memref<2x1x64xf32, #tpu.memory_space<vmem>>, %arg18: memref<2x64x32xbf16, #tpu.memory_space<vmem>>, %arg19: memref<2x1x32xf32, #tpu.memory_space<vmem>>, %arg20: memref<2x1x32xf32, #tpu.memory_space<vmem>>, %arg21: memref<2x1x32xf32, #tpu.memory_space<vmem>>, %arg22: memref<2x32x16xbf16, #tpu.memory_space<vmem>>, %arg23: memref<2x32x16xbf16, #tpu.memory_space<vmem>>, %arg24: memref<2x32x16xbf16, #tpu.memory_space<vmem>>, %arg25: memref<2x16x32xbf16, #tpu.memory_space<vmem>>, %arg26: memref<2x1x32xf32, #tpu.memory_space<vmem>>, %arg27: memref<2x1x32xf32, #tpu.memory_space<vmem>>, %arg28: memref<2x32x64xbf16, #tpu.memory_space<vmem>>, %arg29: memref<2x1x64xf32, #tpu.memory_space<vmem>>, %arg30: memref<2x64x32xbf16, #tpu.memory_space<vmem>>, %arg31: memref<2x1x32xf32, #tpu.memory_space<vmem>>, %arg32: memref<2x1x32xf32, #tpu.memory_space<vmem>>, %arg33: memref<2x1x32xf32, #tpu.memory_space<vmem>>, %arg34: memref<32x4xbf16, #tpu.memory_space<vmem>>, %arg35: memref<1x4xf32, #tpu.memory_space<vmem>>, %arg36: memref<32x4xbf16, #tpu.memory_space<vmem>>, %arg37: memref<1x4xf32, #tpu.memory_space<vmem>>, %arg38: memref<4x4xbf16, #tpu.memory_space<vmem>>, %arg39: memref<1x4xf32, #tpu.memory_space<vmem>>, %arg40: memref<4x4xbf16, #tpu.memory_space<vmem>>, %arg41: memref<8x4xbf16, #tpu.memory_space<vmem>>, %arg42: memref<1x4xf32, #tpu.memory_space<vmem>>, %arg43: memref<2x8x16xf32, #tpu.memory_space<vmem>>, %arg44: memref<2x2x8x8xf32, #tpu.memory_space<vmem>>, %arg45: memref<2x2x8x8xf32, #tpu.memory_space<vmem>>) attributes {dimension_semantics = [#tpu.dimension_semantics<parallel>], iteration_bounds = array<i64: 1>, scalar_prefetch = 0 : i64, scratch_operands = 0 : i64, tpu.core_type = #tpu.core_type<tc>, window_params = [{transform_indices = @transform_0, window_bounds = array<i64: 2, 8, 4>}, {transform_indices = @transform_1, window_bounds = array<i64: 2, 8, 4>}, {pipeline_mode = #tpu.pipeline_mode<synchronous>, transform_indices = @transform_2, window_bounds = array<i64: 8, 32>}, {pipeline_mode = #tpu.pipeline_mode<synchronous>, transform_indices = @transform_3, window_bounds = array<i64: 4, 32>}, {pipeline_mode = #tpu.pipeline_mode<synchronous>, transform_indices = @transform_4, window_bounds = array<i64: 4, 32>}, {pipeline_mode = #tpu.pipeline_mode<synchronous>, transform_indices = @transform_5, window_bounds = array<i64: 1, 32>}, {pipeline_mode = #tpu.pipeline_mode<synchronous>, transform_indices = @transform_6, window_bounds = array<i64: 4, 32>}, {pipeline_mode = #tpu.pipeline_mode<synchronous>, transform_indices = @transform_7, window_bounds = array<i64: 4, 32>}, {pipeline_mode = #tpu.pipeline_mode<synchronous>, transform_indices = @transform_8, window_bounds = array<i64: 1, 32>}, {pipeline_mode = #tpu.pipeline_mode<synchronous>, transform_indices = @transform_9, window_bounds = array<i64: 2, 32, 16>}, {pipeline_mode = #tpu.pipeline_mode<synchronous>, transform_indices = @transform_10, window_bounds = array<i64: 2, 32, 16>}, {pipeline_mode = #tpu.pipeline_mode<synchronous>, transform_indices = @transform_11, window_bounds = array<i64: 2, 32, 16>}, {pipeline_mode = #tpu.pipeline_mode<synchronous>, transform_indices = @transform_12, window_bounds = array<i64: 2, 16, 32>}, {pipeline_mode = #tpu.pipeline_mode<synchronous>, transform_indices = @transform_13, window_bounds = array<i64: 2, 1, 32>}, {pipeline_mode = #tpu.pipeline_mode<synchronous>, transform_indices = @transform_14, window_bounds = array<i64: 2, 1, 32>}, {pipeline_mode = #tpu.pipeline_mode<synchronous>, transform_indices = @transform_15, window_bounds = array<i64: 2, 32, 64>}, {pipeline_mode = #tpu.pipeline_mode<synchronous>, transform_indices = @transform_16, window_bounds = array<i64: 2, 1, 64>}, {pipeline_mode = #tpu.pipeline_mode<synchronous>, transform_indices = @transform_17, window_bounds = array<i64: 2, 64, 32>}, {pipeline_mode = #tpu.pipeline_mode<synchronous>, transform_indices = @transform_18, window_bounds = array<i64: 2, 1, 32>}, {pipeline_mode = #tpu.pipeline_mode<synchronous>, transform_indices = @transform_19, window_bounds = array<i64: 2, 1, 32>}, {pipeline_mode = #tpu.pipeline_mode<synchronous>, transform_indices = @transform_20, window_bounds = array<i64: 2, 1, 32>}, {pipeline_mode = #tpu.pipeline_mode<synchronous>, transform_indices = @transform_21, window_bounds = array<i64: 2, 32, 16>}, {pipeline_mode = #tpu.pipeline_mode<synchronous>, transform_indices = @transform_22, window_bounds = array<i64: 2, 32, 16>}, {pipeline_mode = #tpu.pipeline_mode<synchronous>, transform_indices = @transform_23, window_bounds = array<i64: 2, 32, 16>}, {pipeline_mode = #tpu.pipeline_mode<synchronous>, transform_indices = @transform_24, window_bounds = array<i64: 2, 16, 32>}, {pipeline_mode = #tpu.pipeline_mode<synchronous>, transform_indices = @transform_25, window_bounds = array<i64: 2, 1, 32>}, {pipeline_mode = #tpu.pipeline_mode<synchronous>, transform_indices = @transform_26, window_bounds = array<i64: 2, 1, 32>}, {pipeline_mode = #tpu.pipeline_mode<synchronous>, transform_indices = @transform_27, window_bounds = array<i64: 2, 32, 64>}, {pipeline_mode = #tpu.pipeline_mode<synchronous>, transform_indices = @transform_28, window_bounds = array<i64: 2, 1, 64>}, {pipeline_mode = #tpu.pipeline_mode<synchronous>, transform_indices = @transform_29, window_bounds = array<i64: 2, 64, 32>}, {pipeline_mode = #tpu.pipeline_mode<synchronous>, transform_indices = @transform_30, window_bounds = array<i64: 2, 1, 32>}, {pipeline_mode = #tpu.pipeline_mode<synchronous>, transform_indices = @transform_31, window_bounds = array<i64: 2, 1, 32>}, {pipeline_mode = #tpu.pipeline_mode<synchronous>, transform_indices = @transform_32, window_bounds = array<i64: 2, 1, 32>}, {pipeline_mode = #tpu.pipeline_mode<synchronous>, transform_indices = @transform_33, window_bounds = array<i64: 32, 4>}, {pipeline_mode = #tpu.pipeline_mode<synchronous>, transform_indices = @transform_34, window_bounds = array<i64: 1, 4>}, {pipeline_mode = #tpu.pipeline_mode<synchronous>, transform_indices = @transform_35, window_bounds = array<i64: 32, 4>}, {pipeline_mode = #tpu.pipeline_mode<synchronous>, transform_indices = @transform_36, window_bounds = array<i64: 1, 4>}, {pipeline_mode = #tpu.pipeline_mode<synchronous>, transform_indices = @transform_37, window_bounds = array<i64: 4, 4>}, {pipeline_mode = #tpu.pipeline_mode<synchronous>, transform_indices = @transform_38, window_bounds = array<i64: 1, 4>}, {pipeline_mode = #tpu.pipeline_mode<synchronous>, transform_indices = @transform_39, window_bounds = array<i64: 4, 4>}, {pipeline_mode = #tpu.pipeline_mode<synchronous>, transform_indices = @transform_40, window_bounds = array<i64: 8, 4>}, {pipeline_mode = #tpu.pipeline_mode<synchronous>, transform_indices = @transform_41, window_bounds = array<i64: 1, 4>}, {transform_indices = @transform_42, window_bounds = array<i64: 2, 8, 16>}, {transform_indices = @transform_43, window_bounds = array<i64: 2, 2, 8, 8>}, {transform_indices = @transform_44, window_bounds = array<i64: 2, 2, 8, 8>}]} {
    %c0 = arith.constant 0 : index
    %c0_0 = arith.constant 0 : index
    %c0_1 = arith.constant 0 : index
    %0 = vector.load %arg1[%c0, %c0_0, %c0_1] : memref<2x8x4xf32, #tpu.memory_space<vmem>>, vector<2x8x4xf32>
    %1 = vector.shape_cast %0 : vector<2x8x4xf32> to vector<16x4xf32>
    %c0_2 = arith.constant 0 : index
    %c0_3 = arith.constant 0 : index
    %c0_4 = arith.constant 0 : index
    %2 = vector.load %arg2[%c0_2, %c0_3, %c0_4] : memref<2x8x4xf32, #tpu.memory_space<vmem>>, vector<2x8x4xf32>
    %3 = vector.shape_cast %2 : vector<2x8x4xf32> to vector<16x4xf32>
    %4 = arith.truncf %1 : vector<16x4xf32> to vector<16x4xbf16>
    %5 = arith.truncf %3 : vector<16x4xf32> to vector<16x4xbf16>
    %c0_5 = arith.constant 0 : index
    %c0_6 = arith.constant 0 : index
    %6 = vector.load %arg3[%c0_5, %c0_6] : memref<8x32xf32, #tpu.memory_space<vmem>>, vector<8x32xf32>
    %7 = vector.shape_cast %6 : vector<8x32xf32> to vector<1x8x32xf32>
    %8 = vector.shape_cast %7 : vector<1x8x32xf32> to vector<1x8x32xf32>
    %9 = vector.broadcast %8 : vector<1x8x32xf32> to vector<2x8x32xf32>
    %10 = vector.shape_cast %9 : vector<2x8x32xf32> to vector<16x32xf32>
    %c0_7 = arith.constant 0 : index
    %c0_8 = arith.constant 0 : index
    %11 = vector.load %arg4[%c0_7, %c0_8] : memref<4x32xbf16, #tpu.memory_space<vmem>>, vector<4x32xbf16>
    %cst = arith.constant dense<0.000000e+00> : vector<16x32xf32>
    %12 = tpu.matmul %4, %11, %cst {dimension_numbers = #tpu.dot_dimension_numbers<[1], [0], [0], [1], [0, 0, 1, 1], [], []>} : vector<16x4xbf16>, vector<4x32xbf16>, vector<16x32xf32> -> vector<16x32xf32>
    %c0_9 = arith.constant 0 : index
    %c0_10 = arith.constant 0 : index
    %13 = vector.load %arg5[%c0_9, %c0_10] : memref<4x32xbf16, #tpu.memory_space<vmem>>, vector<4x32xbf16>
    %cst_11 = arith.constant dense<0.000000e+00> : vector<16x32xf32>
    %14 = tpu.matmul %5, %13, %cst_11 {dimension_numbers = #tpu.dot_dimension_numbers<[1], [0], [0], [1], [0, 0, 1, 1], [], []>} : vector<16x4xbf16>, vector<4x32xbf16>, vector<16x32xf32> -> vector<16x32xf32>
    %15 = arith.addf %12, %14 : vector<16x32xf32>
    %c0_12 = arith.constant 0 : index
    %c0_13 = arith.constant 0 : index
    %16 = vector.load %arg6[%c0_12, %c0_13] : memref<1x32xf32, #tpu.memory_space<vmem>>, vector<1x32xf32>
    %17 = vector.broadcast %16 : vector<1x32xf32> to vector<16x32xf32>
    %18 = arith.addf %15, %17 : vector<16x32xf32>
    %19 = arith.addf %18, %10 : vector<16x32xf32>
    %c0_14 = arith.constant 0 : index
    %c0_15 = arith.constant 0 : index
    %c0_16 = arith.constant 0 : index
    %20 = vector.load %arg10[%c0_14, %c0_15, %c0_16] : memref<2x32x16xbf16, #tpu.memory_space<vmem>>, vector<1x32x16xbf16>
    %21 = vector.shape_cast %20 : vector<1x32x16xbf16> to vector<32x16xbf16>
    %c0_17 = arith.constant 0 : index
    %c0_18 = arith.constant 0 : index
    %c0_19 = arith.constant 0 : index
    %22 = vector.load %arg11[%c0_17, %c0_18, %c0_19] : memref<2x32x16xbf16, #tpu.memory_space<vmem>>, vector<1x32x16xbf16>
    %23 = vector.shape_cast %22 : vector<1x32x16xbf16> to vector<32x16xbf16>
    %c0_20 = arith.constant 0 : index
    %c0_21 = arith.constant 0 : index
    %c0_22 = arith.constant 0 : index
    %24 = vector.load %arg12[%c0_20, %c0_21, %c0_22] : memref<2x32x16xbf16, #tpu.memory_space<vmem>>, vector<1x32x16xbf16>
    %25 = vector.shape_cast %24 : vector<1x32x16xbf16> to vector<32x16xbf16>
    %c0_23 = arith.constant 0 : index
    %c0_24 = arith.constant 0 : index
    %c0_25 = arith.constant 0 : index
    %26 = vector.load %arg13[%c0_23, %c0_24, %c0_25] : memref<2x16x32xbf16, #tpu.memory_space<vmem>>, vector<1x16x32xbf16>
    %27 = vector.shape_cast %26 : vector<1x16x32xbf16> to vector<16x32xbf16>
    %c0_26 = arith.constant 0 : index
    %c0_27 = arith.constant 0 : index
    %c0_28 = arith.constant 0 : index
    %28 = vector.load %arg14[%c0_26, %c0_27, %c0_28] : memref<2x1x32xf32, #tpu.memory_space<vmem>>, vector<1x1x32xf32>
    %29 = vector.shape_cast %28 : vector<1x1x32xf32> to vector<1x32xf32>
    %c0_29 = arith.constant 0 : index
    %c0_30 = arith.constant 0 : index
    %c0_31 = arith.constant 0 : index
    %30 = vector.load %arg15[%c0_29, %c0_30, %c0_31] : memref<2x1x32xf32, #tpu.memory_space<vmem>>, vector<1x1x32xf32>
    %31 = vector.shape_cast %30 : vector<1x1x32xf32> to vector<1x32xf32>
    %c0_32 = arith.constant 0 : index
    %c0_33 = arith.constant 0 : index
    %c0_34 = arith.constant 0 : index
    %32 = vector.load %arg16[%c0_32, %c0_33, %c0_34] : memref<2x32x64xbf16, #tpu.memory_space<vmem>>, vector<1x32x64xbf16>
    %33 = vector.shape_cast %32 : vector<1x32x64xbf16> to vector<32x64xbf16>
    %c0_35 = arith.constant 0 : index
    %c0_36 = arith.constant 0 : index
    %c0_37 = arith.constant 0 : index
    %34 = vector.load %arg17[%c0_35, %c0_36, %c0_37] : memref<2x1x64xf32, #tpu.memory_space<vmem>>, vector<1x1x64xf32>
    %35 = vector.shape_cast %34 : vector<1x1x64xf32> to vector<1x64xf32>
    %c0_38 = arith.constant 0 : index
    %c0_39 = arith.constant 0 : index
    %c0_40 = arith.constant 0 : index
    %36 = vector.load %arg18[%c0_38, %c0_39, %c0_40] : memref<2x64x32xbf16, #tpu.memory_space<vmem>>, vector<1x64x32xbf16>
    %37 = vector.shape_cast %36 : vector<1x64x32xbf16> to vector<64x32xbf16>
    %c0_41 = arith.constant 0 : index
    %c0_42 = arith.constant 0 : index
    %c0_43 = arith.constant 0 : index
    %38 = vector.load %arg19[%c0_41, %c0_42, %c0_43] : memref<2x1x32xf32, #tpu.memory_space<vmem>>, vector<1x1x32xf32>
    %39 = vector.shape_cast %38 : vector<1x1x32xf32> to vector<1x32xf32>
    %c0_44 = arith.constant 0 : index
    %c0_45 = arith.constant 0 : index
    %c0_46 = arith.constant 0 : index
    %40 = vector.load %arg20[%c0_44, %c0_45, %c0_46] : memref<2x1x32xf32, #tpu.memory_space<vmem>>, vector<1x1x32xf32>
    %41 = vector.shape_cast %40 : vector<1x1x32xf32> to vector<1x32xf32>
    %c0_47 = arith.constant 0 : index
    %c0_48 = arith.constant 0 : index
    %c0_49 = arith.constant 0 : index
    %42 = vector.load %arg21[%c0_47, %c0_48, %c0_49] : memref<2x1x32xf32, #tpu.memory_space<vmem>>, vector<1x1x32xf32>
    %43 = vector.shape_cast %42 : vector<1x1x32xf32> to vector<1x32xf32>
    %44 = arith.truncf %19 : vector<16x32xf32> to vector<16x32xbf16>
    %cst_50 = arith.constant dense<0.000000e+00> : vector<16x16xf32>
    %45 = tpu.matmul %44, %21, %cst_50 {dimension_numbers = #tpu.dot_dimension_numbers<[1], [0], [0], [1], [0, 0, 1, 1], [], []>} : vector<16x32xbf16>, vector<32x16xbf16>, vector<16x16xf32> -> vector<16x16xf32>
    %cst_51 = arith.constant dense<0.000000e+00> : vector<16x16xf32>
    %46 = tpu.matmul %44, %23, %cst_51 {dimension_numbers = #tpu.dot_dimension_numbers<[1], [0], [0], [1], [0, 0, 1, 1], [], []>} : vector<16x32xbf16>, vector<32x16xbf16>, vector<16x16xf32> -> vector<16x16xf32>
    %cst_52 = arith.constant dense<0.000000e+00> : vector<16x16xf32>
    %47 = tpu.matmul %44, %25, %cst_52 {dimension_numbers = #tpu.dot_dimension_numbers<[1], [0], [0], [1], [0, 0, 1, 1], [], []>} : vector<16x32xbf16>, vector<32x16xbf16>, vector<16x16xf32> -> vector<16x16xf32>
    %48 = vector.shape_cast %45 : vector<16x16xf32> to vector<2x8x16xf32>
    %49 = vector.shape_cast %46 : vector<16x16xf32> to vector<2x8x16xf32>
    %50 = vector.shape_cast %47 : vector<16x16xf32> to vector<2x8x16xf32>
    %51 = vector.extract_strided_slice %48 {offsets = [0, 0, 0], sizes = [2, 8, 8], strides = [1, 1, 1]} : vector<2x8x16xf32> to vector<2x8x8xf32>
    %52 = arith.truncf %51 : vector<2x8x8xf32> to vector<2x8x8xbf16>
    %53 = vector.extract_strided_slice %49 {offsets = [0, 0, 0], sizes = [2, 8, 8], strides = [1, 1, 1]} : vector<2x8x16xf32> to vector<2x8x8xf32>
    %54 = arith.truncf %53 : vector<2x8x8xf32> to vector<2x8x8xbf16>
    %55 = vector.extract_strided_slice %50 {offsets = [0, 0, 0], sizes = [2, 8, 8], strides = [1, 1, 1]} : vector<2x8x16xf32> to vector<2x8x8xf32>
    %56 = arith.truncf %55 : vector<2x8x8xf32> to vector<2x8x8xbf16>
    %cst_53 = arith.constant dense<0.000000e+00> : vector<2x8x8xf32>
    %57 = tpu.matmul %52, %54, %cst_53 {dimension_numbers = #tpu.dot_dimension_numbers<[2], [2], [1], [1], [0, 0, 0, 1, 1, 1], [0], [0]>} : vector<2x8x8xbf16>, vector<2x8x8xbf16>, vector<2x8x8xf32> -> vector<2x8x8xf32>
    %cst_54 = arith.constant dense<0xFF800000> : vector<2x8xf32>
    %58 = vector.multi_reduction <maximumf>, %57, %cst_54 [2] : vector<2x8x8xf32> to vector<2x8xf32>
    %59 = vector.shape_cast %58 : vector<2x8xf32> to vector<2x8x1xf32>
    %60 = vector.broadcast %59 : vector<2x8x1xf32> to vector<2x8x8xf32>
    %61 = arith.subf %57, %60 : vector<2x8x8xf32>
    %62 = math.exp %61 : vector<2x8x8xf32>
    %cst_55 = arith.constant dense<0.000000e+00> : vector<2x8xf32>
    %63 = vector.multi_reduction <add>, %62, %cst_55 [2] : vector<2x8x8xf32> to vector<2x8xf32>
    %64 = vector.shape_cast %63 : vector<2x8xf32> to vector<2x8x1xf32>
    %65 = tpu.reciprocal %64 {approx = true} : vector<2x8x1xf32> -> vector<2x8x1xf32>
    %66 = vector.broadcast %65 : vector<2x8x1xf32> to vector<2x8x8xf32>
    %67 = arith.mulf %62, %66 : vector<2x8x8xf32>
    %68 = arith.truncf %67 : vector<2x8x8xf32> to vector<2x8x8xbf16>
    %cst_56 = arith.constant dense<0.000000e+00> : vector<2x8x8xf32>
    %69 = tpu.matmul %68, %56, %cst_56 {dimension_numbers = #tpu.dot_dimension_numbers<[2], [1], [1], [2], [0, 0, 0, 1, 1, 2], [0], [0]>} : vector<2x8x8xbf16>, vector<2x8x8xbf16>, vector<2x8x8xf32> -> vector<2x8x8xf32>
    %70 = vector.extract_strided_slice %48 {offsets = [0, 0, 8], sizes = [2, 8, 8], strides = [1, 1, 1]} : vector<2x8x16xf32> to vector<2x8x8xf32>
    %71 = arith.truncf %70 : vector<2x8x8xf32> to vector<2x8x8xbf16>
    %72 = vector.extract_strided_slice %49 {offsets = [0, 0, 8], sizes = [2, 8, 8], strides = [1, 1, 1]} : vector<2x8x16xf32> to vector<2x8x8xf32>
    %73 = arith.truncf %72 : vector<2x8x8xf32> to vector<2x8x8xbf16>
    %74 = vector.extract_strided_slice %50 {offsets = [0, 0, 8], sizes = [2, 8, 8], strides = [1, 1, 1]} : vector<2x8x16xf32> to vector<2x8x8xf32>
    %75 = arith.truncf %74 : vector<2x8x8xf32> to vector<2x8x8xbf16>
    %cst_57 = arith.constant dense<0.000000e+00> : vector<2x8x8xf32>
    %76 = tpu.matmul %71, %73, %cst_57 {dimension_numbers = #tpu.dot_dimension_numbers<[2], [2], [1], [1], [0, 0, 0, 1, 1, 1], [0], [0]>} : vector<2x8x8xbf16>, vector<2x8x8xbf16>, vector<2x8x8xf32> -> vector<2x8x8xf32>
    %cst_58 = arith.constant dense<0xFF800000> : vector<2x8xf32>
    %77 = vector.multi_reduction <maximumf>, %76, %cst_58 [2] : vector<2x8x8xf32> to vector<2x8xf32>
    %78 = vector.shape_cast %77 : vector<2x8xf32> to vector<2x8x1xf32>
    %79 = vector.broadcast %78 : vector<2x8x1xf32> to vector<2x8x8xf32>
    %80 = arith.subf %76, %79 : vector<2x8x8xf32>
    %81 = math.exp %80 : vector<2x8x8xf32>
    %cst_59 = arith.constant dense<0.000000e+00> : vector<2x8xf32>
    %82 = vector.multi_reduction <add>, %81, %cst_59 [2] : vector<2x8x8xf32> to vector<2x8xf32>
    %83 = vector.shape_cast %82 : vector<2x8xf32> to vector<2x8x1xf32>
    %84 = tpu.reciprocal %83 {approx = true} : vector<2x8x1xf32> -> vector<2x8x1xf32>
    %85 = vector.broadcast %84 : vector<2x8x1xf32> to vector<2x8x8xf32>
    %86 = arith.mulf %81, %85 : vector<2x8x8xf32>
    %87 = arith.truncf %86 : vector<2x8x8xf32> to vector<2x8x8xbf16>
    %cst_60 = arith.constant dense<0.000000e+00> : vector<2x8x8xf32>
    %88 = tpu.matmul %87, %75, %cst_60 {dimension_numbers = #tpu.dot_dimension_numbers<[2], [1], [1], [2], [0, 0, 0, 1, 1, 2], [0], [0]>} : vector<2x8x8xbf16>, vector<2x8x8xbf16>, vector<2x8x8xf32> -> vector<2x8x8xf32>
    %89 = tpu.concatenate %69, %88 in 2 : vector<2x8x8xf32>, vector<2x8x8xf32> -> vector<2x8x16xf32>
    %90 = vector.shape_cast %89 : vector<2x8x16xf32> to vector<16x16xf32>
    %91 = arith.truncf %90 : vector<16x16xf32> to vector<16x16xbf16>
    %cst_61 = arith.constant dense<0.000000e+00> : vector<16x32xf32>
    %92 = tpu.matmul %91, %27, %cst_61 {dimension_numbers = #tpu.dot_dimension_numbers<[1], [0], [0], [1], [0, 0, 1, 1], [], []>} : vector<16x16xbf16>, vector<16x32xbf16>, vector<16x32xf32> -> vector<16x32xf32>
    %93 = arith.addf %92, %19 : vector<16x32xf32>
    %cst_62 = arith.constant dense<0.000000e+00> : vector<16xf32>
    %94 = vector.multi_reduction <add>, %93, %cst_62 [1] : vector<16x32xf32> to vector<16xf32>
    %95 = vector.shape_cast %94 : vector<16xf32> to vector<16x1xf32>
    %cst_63 = arith.constant 3.200000e+01 : f32
    %96 = vector.broadcast %cst_63 : f32 to vector<16x1xf32>
    %97 = arith.divf %95, %96 : vector<16x1xf32>
    %98 = vector.broadcast %97 : vector<16x1xf32> to vector<16x32xf32>
    %99 = arith.subf %93, %98 : vector<16x32xf32>
    %100 = arith.mulf %99, %99 : vector<16x32xf32>
    %cst_64 = arith.constant dense<0.000000e+00> : vector<16xf32>
    %101 = vector.multi_reduction <add>, %100, %cst_64 [1] : vector<16x32xf32> to vector<16xf32>
    %102 = vector.shape_cast %101 : vector<16xf32> to vector<16x1xf32>
    %cst_65 = arith.constant 3.200000e+01 : f32
    %103 = vector.broadcast %cst_65 : f32 to vector<16x1xf32>
    %104 = arith.divf %102, %103 : vector<16x1xf32>
    %105 = vector.broadcast %97 : vector<16x1xf32> to vector<16x32xf32>
    %106 = arith.subf %93, %105 : vector<16x32xf32>
    %cst_66 = arith.constant 9.99999997E-7 : f32
    %107 = vector.broadcast %cst_66 : f32 to vector<16x1xf32>
    %108 = arith.addf %104, %107 : vector<16x1xf32>
    %109 = math.rsqrt %108 : vector<16x1xf32>
    %110 = vector.broadcast %109 : vector<16x1xf32> to vector<16x32xf32>
    %111 = arith.mulf %106, %110 : vector<16x32xf32>
    %112 = vector.broadcast %29 : vector<1x32xf32> to vector<16x32xf32>
    %113 = arith.mulf %111, %112 : vector<16x32xf32>
    %114 = vector.broadcast %31 : vector<1x32xf32> to vector<16x32xf32>
    %115 = arith.addf %113, %114 : vector<16x32xf32>
    %116 = arith.truncf %115 : vector<16x32xf32> to vector<16x32xbf16>
    %cst_67 = arith.constant dense<0.000000e+00> : vector<16x64xf32>
    %117 = tpu.matmul %116, %33, %cst_67 {dimension_numbers = #tpu.dot_dimension_numbers<[1], [0], [0], [1], [0, 0, 1, 1], [], []>} : vector<16x32xbf16>, vector<32x64xbf16>, vector<16x64xf32> -> vector<16x64xf32>
    %118 = vector.broadcast %35 : vector<1x64xf32> to vector<16x64xf32>
    %119 = arith.addf %117, %118 : vector<16x64xf32>
    %cst_68 = arith.constant 0.000000e+00 : f32
    %120 = vector.broadcast %cst_68 : f32 to vector<16x64xf32>
    %121 = arith.maximumf %119, %120 : vector<16x64xf32>
    %122 = arith.truncf %121 : vector<16x64xf32> to vector<16x64xbf16>
    %cst_69 = arith.constant dense<0.000000e+00> : vector<16x32xf32>
    %123 = tpu.matmul %122, %37, %cst_69 {dimension_numbers = #tpu.dot_dimension_numbers<[1], [0], [0], [1], [0, 0, 1, 1], [], []>} : vector<16x64xbf16>, vector<64x32xbf16>, vector<16x32xf32> -> vector<16x32xf32>
    %124 = vector.broadcast %39 : vector<1x32xf32> to vector<16x32xf32>
    %125 = arith.addf %123, %124 : vector<16x32xf32>
    %126 = arith.addf %125, %115 : vector<16x32xf32>
    %cst_70 = arith.constant dense<0.000000e+00> : vector<16xf32>
    %127 = vector.multi_reduction <add>, %126, %cst_70 [1] : vector<16x32xf32> to vector<16xf32>
    %128 = vector.shape_cast %127 : vector<16xf32> to vector<16x1xf32>
    %cst_71 = arith.constant 3.200000e+01 : f32
    %129 = vector.broadcast %cst_71 : f32 to vector<16x1xf32>
    %130 = arith.divf %128, %129 : vector<16x1xf32>
    %131 = vector.broadcast %130 : vector<16x1xf32> to vector<16x32xf32>
    %132 = arith.subf %126, %131 : vector<16x32xf32>
    %133 = arith.mulf %132, %132 : vector<16x32xf32>
    %cst_72 = arith.constant dense<0.000000e+00> : vector<16xf32>
    %134 = vector.multi_reduction <add>, %133, %cst_72 [1] : vector<16x32xf32> to vector<16xf32>
    %135 = vector.shape_cast %134 : vector<16xf32> to vector<16x1xf32>
    %cst_73 = arith.constant 3.200000e+01 : f32
    %136 = vector.broadcast %cst_73 : f32 to vector<16x1xf32>
    %137 = arith.divf %135, %136 : vector<16x1xf32>
    %138 = vector.broadcast %130 : vector<16x1xf32> to vector<16x32xf32>
    %139 = arith.subf %126, %138 : vector<16x32xf32>
    %cst_74 = arith.constant 9.99999997E-7 : f32
    %140 = vector.broadcast %cst_74 : f32 to vector<16x1xf32>
    %141 = arith.addf %137, %140 : vector<16x1xf32>
    %142 = math.rsqrt %141 : vector<16x1xf32>
    %143 = vector.broadcast %142 : vector<16x1xf32> to vector<16x32xf32>
    %144 = arith.mulf %139, %143 : vector<16x32xf32>
    %145 = vector.broadcast %41 : vector<1x32xf32> to vector<16x32xf32>
    %146 = arith.mulf %144, %145 : vector<16x32xf32>
    %147 = vector.broadcast %43 : vector<1x32xf32> to vector<16x32xf32>
    %148 = arith.addf %146, %147 : vector<16x32xf32>
    %c1 = arith.constant 1 : index
    %c0_75 = arith.constant 0 : index
    %c0_76 = arith.constant 0 : index
    %149 = vector.load %arg10[%c1, %c0_75, %c0_76] : memref<2x32x16xbf16, #tpu.memory_space<vmem>>, vector<1x32x16xbf16>
    %150 = vector.shape_cast %149 : vector<1x32x16xbf16> to vector<32x16xbf16>
    %c1_77 = arith.constant 1 : index
    %c0_78 = arith.constant 0 : index
    %c0_79 = arith.constant 0 : index
    %151 = vector.load %arg11[%c1_77, %c0_78, %c0_79] : memref<2x32x16xbf16, #tpu.memory_space<vmem>>, vector<1x32x16xbf16>
    %152 = vector.shape_cast %151 : vector<1x32x16xbf16> to vector<32x16xbf16>
    %c1_80 = arith.constant 1 : index
    %c0_81 = arith.constant 0 : index
    %c0_82 = arith.constant 0 : index
    %153 = vector.load %arg12[%c1_80, %c0_81, %c0_82] : memref<2x32x16xbf16, #tpu.memory_space<vmem>>, vector<1x32x16xbf16>
    %154 = vector.shape_cast %153 : vector<1x32x16xbf16> to vector<32x16xbf16>
    %c1_83 = arith.constant 1 : index
    %c0_84 = arith.constant 0 : index
    %c0_85 = arith.constant 0 : index
    %155 = vector.load %arg13[%c1_83, %c0_84, %c0_85] : memref<2x16x32xbf16, #tpu.memory_space<vmem>>, vector<1x16x32xbf16>
    %156 = vector.shape_cast %155 : vector<1x16x32xbf16> to vector<16x32xbf16>
    %c1_86 = arith.constant 1 : index
    %c0_87 = arith.constant 0 : index
    %c0_88 = arith.constant 0 : index
    %157 = vector.load %arg14[%c1_86, %c0_87, %c0_88] : memref<2x1x32xf32, #tpu.memory_space<vmem>>, vector<1x1x32xf32>
    %158 = vector.shape_cast %157 : vector<1x1x32xf32> to vector<1x32xf32>
    %c1_89 = arith.constant 1 : index
    %c0_90 = arith.constant 0 : index
    %c0_91 = arith.constant 0 : index
    %159 = vector.load %arg15[%c1_89, %c0_90, %c0_91] : memref<2x1x32xf32, #tpu.memory_space<vmem>>, vector<1x1x32xf32>
    %160 = vector.shape_cast %159 : vector<1x1x32xf32> to vector<1x32xf32>
    %c1_92 = arith.constant 1 : index
    %c0_93 = arith.constant 0 : index
    %c0_94 = arith.constant 0 : index
    %161 = vector.load %arg16[%c1_92, %c0_93, %c0_94] : memref<2x32x64xbf16, #tpu.memory_space<vmem>>, vector<1x32x64xbf16>
    %162 = vector.shape_cast %161 : vector<1x32x64xbf16> to vector<32x64xbf16>
    %c1_95 = arith.constant 1 : index
    %c0_96 = arith.constant 0 : index
    %c0_97 = arith.constant 0 : index
    %163 = vector.load %arg17[%c1_95, %c0_96, %c0_97] : memref<2x1x64xf32, #tpu.memory_space<vmem>>, vector<1x1x64xf32>
    %164 = vector.shape_cast %163 : vector<1x1x64xf32> to vector<1x64xf32>
    %c1_98 = arith.constant 1 : index
    %c0_99 = arith.constant 0 : index
    %c0_100 = arith.constant 0 : index
    %165 = vector.load %arg18[%c1_98, %c0_99, %c0_100] : memref<2x64x32xbf16, #tpu.memory_space<vmem>>, vector<1x64x32xbf16>
    %166 = vector.shape_cast %165 : vector<1x64x32xbf16> to vector<64x32xbf16>
    %c1_101 = arith.constant 1 : index
    %c0_102 = arith.constant 0 : index
    %c0_103 = arith.constant 0 : index
    %167 = vector.load %arg19[%c1_101, %c0_102, %c0_103] : memref<2x1x32xf32, #tpu.memory_space<vmem>>, vector<1x1x32xf32>
    %168 = vector.shape_cast %167 : vector<1x1x32xf32> to vector<1x32xf32>
    %c1_104 = arith.constant 1 : index
    %c0_105 = arith.constant 0 : index
    %c0_106 = arith.constant 0 : index
    %169 = vector.load %arg20[%c1_104, %c0_105, %c0_106] : memref<2x1x32xf32, #tpu.memory_space<vmem>>, vector<1x1x32xf32>
    %170 = vector.shape_cast %169 : vector<1x1x32xf32> to vector<1x32xf32>
    %c1_107 = arith.constant 1 : index
    %c0_108 = arith.constant 0 : index
    %c0_109 = arith.constant 0 : index
    %171 = vector.load %arg21[%c1_107, %c0_108, %c0_109] : memref<2x1x32xf32, #tpu.memory_space<vmem>>, vector<1x1x32xf32>
    %172 = vector.shape_cast %171 : vector<1x1x32xf32> to vector<1x32xf32>
    %173 = arith.truncf %148 : vector<16x32xf32> to vector<16x32xbf16>
    %cst_110 = arith.constant dense<0.000000e+00> : vector<16x16xf32>
    %174 = tpu.matmul %173, %150, %cst_110 {dimension_numbers = #tpu.dot_dimension_numbers<[1], [0], [0], [1], [0, 0, 1, 1], [], []>} : vector<16x32xbf16>, vector<32x16xbf16>, vector<16x16xf32> -> vector<16x16xf32>
    %cst_111 = arith.constant dense<0.000000e+00> : vector<16x16xf32>
    %175 = tpu.matmul %173, %152, %cst_111 {dimension_numbers = #tpu.dot_dimension_numbers<[1], [0], [0], [1], [0, 0, 1, 1], [], []>} : vector<16x32xbf16>, vector<32x16xbf16>, vector<16x16xf32> -> vector<16x16xf32>
    %cst_112 = arith.constant dense<0.000000e+00> : vector<16x16xf32>
    %176 = tpu.matmul %173, %154, %cst_112 {dimension_numbers = #tpu.dot_dimension_numbers<[1], [0], [0], [1], [0, 0, 1, 1], [], []>} : vector<16x32xbf16>, vector<32x16xbf16>, vector<16x16xf32> -> vector<16x16xf32>
    %177 = vector.shape_cast %174 : vector<16x16xf32> to vector<2x8x16xf32>
    %178 = vector.shape_cast %175 : vector<16x16xf32> to vector<2x8x16xf32>
    %179 = vector.shape_cast %176 : vector<16x16xf32> to vector<2x8x16xf32>
    %180 = vector.extract_strided_slice %177 {offsets = [0, 0, 0], sizes = [2, 8, 8], strides = [1, 1, 1]} : vector<2x8x16xf32> to vector<2x8x8xf32>
    %181 = arith.truncf %180 : vector<2x8x8xf32> to vector<2x8x8xbf16>
    %182 = vector.extract_strided_slice %178 {offsets = [0, 0, 0], sizes = [2, 8, 8], strides = [1, 1, 1]} : vector<2x8x16xf32> to vector<2x8x8xf32>
    %183 = arith.truncf %182 : vector<2x8x8xf32> to vector<2x8x8xbf16>
    %184 = vector.extract_strided_slice %179 {offsets = [0, 0, 0], sizes = [2, 8, 8], strides = [1, 1, 1]} : vector<2x8x16xf32> to vector<2x8x8xf32>
    %185 = arith.truncf %184 : vector<2x8x8xf32> to vector<2x8x8xbf16>
    %cst_113 = arith.constant dense<0.000000e+00> : vector<2x8x8xf32>
    %186 = tpu.matmul %181, %183, %cst_113 {dimension_numbers = #tpu.dot_dimension_numbers<[2], [2], [1], [1], [0, 0, 0, 1, 1, 1], [0], [0]>} : vector<2x8x8xbf16>, vector<2x8x8xbf16>, vector<2x8x8xf32> -> vector<2x8x8xf32>
    %cst_114 = arith.constant dense<0xFF800000> : vector<2x8xf32>
    %187 = vector.multi_reduction <maximumf>, %186, %cst_114 [2] : vector<2x8x8xf32> to vector<2x8xf32>
    %188 = vector.shape_cast %187 : vector<2x8xf32> to vector<2x8x1xf32>
    %189 = vector.broadcast %188 : vector<2x8x1xf32> to vector<2x8x8xf32>
    %190 = arith.subf %186, %189 : vector<2x8x8xf32>
    %191 = math.exp %190 : vector<2x8x8xf32>
    %cst_115 = arith.constant dense<0.000000e+00> : vector<2x8xf32>
    %192 = vector.multi_reduction <add>, %191, %cst_115 [2] : vector<2x8x8xf32> to vector<2x8xf32>
    %193 = vector.shape_cast %192 : vector<2x8xf32> to vector<2x8x1xf32>
    %194 = tpu.reciprocal %193 {approx = true} : vector<2x8x1xf32> -> vector<2x8x1xf32>
    %195 = vector.broadcast %194 : vector<2x8x1xf32> to vector<2x8x8xf32>
    %196 = arith.mulf %191, %195 : vector<2x8x8xf32>
    %197 = arith.truncf %196 : vector<2x8x8xf32> to vector<2x8x8xbf16>
    %cst_116 = arith.constant dense<0.000000e+00> : vector<2x8x8xf32>
    %198 = tpu.matmul %197, %185, %cst_116 {dimension_numbers = #tpu.dot_dimension_numbers<[2], [1], [1], [2], [0, 0, 0, 1, 1, 2], [0], [0]>} : vector<2x8x8xbf16>, vector<2x8x8xbf16>, vector<2x8x8xf32> -> vector<2x8x8xf32>
    %199 = vector.extract_strided_slice %177 {offsets = [0, 0, 8], sizes = [2, 8, 8], strides = [1, 1, 1]} : vector<2x8x16xf32> to vector<2x8x8xf32>
    %200 = arith.truncf %199 : vector<2x8x8xf32> to vector<2x8x8xbf16>
    %201 = vector.extract_strided_slice %178 {offsets = [0, 0, 8], sizes = [2, 8, 8], strides = [1, 1, 1]} : vector<2x8x16xf32> to vector<2x8x8xf32>
    %202 = arith.truncf %201 : vector<2x8x8xf32> to vector<2x8x8xbf16>
    %203 = vector.extract_strided_slice %179 {offsets = [0, 0, 8], sizes = [2, 8, 8], strides = [1, 1, 1]} : vector<2x8x16xf32> to vector<2x8x8xf32>
    %204 = arith.truncf %203 : vector<2x8x8xf32> to vector<2x8x8xbf16>
    %cst_117 = arith.constant dense<0.000000e+00> : vector<2x8x8xf32>
    %205 = tpu.matmul %200, %202, %cst_117 {dimension_numbers = #tpu.dot_dimension_numbers<[2], [2], [1], [1], [0, 0, 0, 1, 1, 1], [0], [0]>} : vector<2x8x8xbf16>, vector<2x8x8xbf16>, vector<2x8x8xf32> -> vector<2x8x8xf32>
    %cst_118 = arith.constant dense<0xFF800000> : vector<2x8xf32>
    %206 = vector.multi_reduction <maximumf>, %205, %cst_118 [2] : vector<2x8x8xf32> to vector<2x8xf32>
    %207 = vector.shape_cast %206 : vector<2x8xf32> to vector<2x8x1xf32>
    %208 = vector.broadcast %207 : vector<2x8x1xf32> to vector<2x8x8xf32>
    %209 = arith.subf %205, %208 : vector<2x8x8xf32>
    %210 = math.exp %209 : vector<2x8x8xf32>
    %cst_119 = arith.constant dense<0.000000e+00> : vector<2x8xf32>
    %211 = vector.multi_reduction <add>, %210, %cst_119 [2] : vector<2x8x8xf32> to vector<2x8xf32>
    %212 = vector.shape_cast %211 : vector<2x8xf32> to vector<2x8x1xf32>
    %213 = tpu.reciprocal %212 {approx = true} : vector<2x8x1xf32> -> vector<2x8x1xf32>
    %214 = vector.broadcast %213 : vector<2x8x1xf32> to vector<2x8x8xf32>
    %215 = arith.mulf %210, %214 : vector<2x8x8xf32>
    %216 = arith.truncf %215 : vector<2x8x8xf32> to vector<2x8x8xbf16>
    %cst_120 = arith.constant dense<0.000000e+00> : vector<2x8x8xf32>
    %217 = tpu.matmul %216, %204, %cst_120 {dimension_numbers = #tpu.dot_dimension_numbers<[2], [1], [1], [2], [0, 0, 0, 1, 1, 2], [0], [0]>} : vector<2x8x8xbf16>, vector<2x8x8xbf16>, vector<2x8x8xf32> -> vector<2x8x8xf32>
    %218 = tpu.concatenate %198, %217 in 2 : vector<2x8x8xf32>, vector<2x8x8xf32> -> vector<2x8x16xf32>
    %219 = vector.shape_cast %218 : vector<2x8x16xf32> to vector<16x16xf32>
    %220 = arith.truncf %219 : vector<16x16xf32> to vector<16x16xbf16>
    %cst_121 = arith.constant dense<0.000000e+00> : vector<16x32xf32>
    %221 = tpu.matmul %220, %156, %cst_121 {dimension_numbers = #tpu.dot_dimension_numbers<[1], [0], [0], [1], [0, 0, 1, 1], [], []>} : vector<16x16xbf16>, vector<16x32xbf16>, vector<16x32xf32> -> vector<16x32xf32>
    %222 = arith.addf %221, %148 : vector<16x32xf32>
    %cst_122 = arith.constant dense<0.000000e+00> : vector<16xf32>
    %223 = vector.multi_reduction <add>, %222, %cst_122 [1] : vector<16x32xf32> to vector<16xf32>
    %224 = vector.shape_cast %223 : vector<16xf32> to vector<16x1xf32>
    %cst_123 = arith.constant 3.200000e+01 : f32
    %225 = vector.broadcast %cst_123 : f32 to vector<16x1xf32>
    %226 = arith.divf %224, %225 : vector<16x1xf32>
    %227 = vector.broadcast %226 : vector<16x1xf32> to vector<16x32xf32>
    %228 = arith.subf %222, %227 : vector<16x32xf32>
    %229 = arith.mulf %228, %228 : vector<16x32xf32>
    %cst_124 = arith.constant dense<0.000000e+00> : vector<16xf32>
    %230 = vector.multi_reduction <add>, %229, %cst_124 [1] : vector<16x32xf32> to vector<16xf32>
    %231 = vector.shape_cast %230 : vector<16xf32> to vector<16x1xf32>
    %cst_125 = arith.constant 3.200000e+01 : f32
    %232 = vector.broadcast %cst_125 : f32 to vector<16x1xf32>
    %233 = arith.divf %231, %232 : vector<16x1xf32>
    %234 = vector.broadcast %226 : vector<16x1xf32> to vector<16x32xf32>
    %235 = arith.subf %222, %234 : vector<16x32xf32>
    %cst_126 = arith.constant 9.99999997E-7 : f32
    %236 = vector.broadcast %cst_126 : f32 to vector<16x1xf32>
    %237 = arith.addf %233, %236 : vector<16x1xf32>
    %238 = math.rsqrt %237 : vector<16x1xf32>
    %239 = vector.broadcast %238 : vector<16x1xf32> to vector<16x32xf32>
    %240 = arith.mulf %235, %239 : vector<16x32xf32>
    %241 = vector.broadcast %158 : vector<1x32xf32> to vector<16x32xf32>
    %242 = arith.mulf %240, %241 : vector<16x32xf32>
    %243 = vector.broadcast %160 : vector<1x32xf32> to vector<16x32xf32>
    %244 = arith.addf %242, %243 : vector<16x32xf32>
    %245 = arith.truncf %244 : vector<16x32xf32> to vector<16x32xbf16>
    %cst_127 = arith.constant dense<0.000000e+00> : vector<16x64xf32>
    %246 = tpu.matmul %245, %162, %cst_127 {dimension_numbers = #tpu.dot_dimension_numbers<[1], [0], [0], [1], [0, 0, 1, 1], [], []>} : vector<16x32xbf16>, vector<32x64xbf16>, vector<16x64xf32> -> vector<16x64xf32>
    %247 = vector.broadcast %164 : vector<1x64xf32> to vector<16x64xf32>
    %248 = arith.addf %246, %247 : vector<16x64xf32>
    %cst_128 = arith.constant 0.000000e+00 : f32
    %249 = vector.broadcast %cst_128 : f32 to vector<16x64xf32>
    %250 = arith.maximumf %248, %249 : vector<16x64xf32>
    %251 = arith.truncf %250 : vector<16x64xf32> to vector<16x64xbf16>
    %cst_129 = arith.constant dense<0.000000e+00> : vector<16x32xf32>
    %252 = tpu.matmul %251, %166, %cst_129 {dimension_numbers = #tpu.dot_dimension_numbers<[1], [0], [0], [1], [0, 0, 1, 1], [], []>} : vector<16x64xbf16>, vector<64x32xbf16>, vector<16x32xf32> -> vector<16x32xf32>
    %253 = vector.broadcast %168 : vector<1x32xf32> to vector<16x32xf32>
    %254 = arith.addf %252, %253 : vector<16x32xf32>
    %255 = arith.addf %254, %244 : vector<16x32xf32>
    %cst_130 = arith.constant dense<0.000000e+00> : vector<16xf32>
    %256 = vector.multi_reduction <add>, %255, %cst_130 [1] : vector<16x32xf32> to vector<16xf32>
    %257 = vector.shape_cast %256 : vector<16xf32> to vector<16x1xf32>
    %cst_131 = arith.constant 3.200000e+01 : f32
    %258 = vector.broadcast %cst_131 : f32 to vector<16x1xf32>
    %259 = arith.divf %257, %258 : vector<16x1xf32>
    %260 = vector.broadcast %259 : vector<16x1xf32> to vector<16x32xf32>
    %261 = arith.subf %255, %260 : vector<16x32xf32>
    %262 = arith.mulf %261, %261 : vector<16x32xf32>
    %cst_132 = arith.constant dense<0.000000e+00> : vector<16xf32>
    %263 = vector.multi_reduction <add>, %262, %cst_132 [1] : vector<16x32xf32> to vector<16xf32>
    %264 = vector.shape_cast %263 : vector<16xf32> to vector<16x1xf32>
    %cst_133 = arith.constant 3.200000e+01 : f32
    %265 = vector.broadcast %cst_133 : f32 to vector<16x1xf32>
    %266 = arith.divf %264, %265 : vector<16x1xf32>
    %267 = vector.broadcast %259 : vector<16x1xf32> to vector<16x32xf32>
    %268 = arith.subf %255, %267 : vector<16x32xf32>
    %cst_134 = arith.constant 9.99999997E-7 : f32
    %269 = vector.broadcast %cst_134 : f32 to vector<16x1xf32>
    %270 = arith.addf %266, %269 : vector<16x1xf32>
    %271 = math.rsqrt %270 : vector<16x1xf32>
    %272 = vector.broadcast %271 : vector<16x1xf32> to vector<16x32xf32>
    %273 = arith.mulf %268, %272 : vector<16x32xf32>
    %274 = vector.broadcast %170 : vector<1x32xf32> to vector<16x32xf32>
    %275 = arith.mulf %273, %274 : vector<16x32xf32>
    %276 = vector.broadcast %172 : vector<1x32xf32> to vector<16x32xf32>
    %277 = arith.addf %275, %276 : vector<16x32xf32>
    %278 = vector.shape_cast %196 : vector<2x8x8xf32> to vector<2x1x8x8xf32>
    %279 = vector.shape_cast %215 : vector<2x8x8xf32> to vector<2x1x8x8xf32>
    %280 = tpu.concatenate %278, %279 in 1 : vector<2x1x8x8xf32>, vector<2x1x8x8xf32> -> vector<2x2x8x8xf32>
    %c0_135 = arith.constant 0 : index
    %c0_136 = arith.constant 0 : index
    %c0_137 = arith.constant 0 : index
    %c0_138 = arith.constant 0 : index
    %281 = vector.load %arg44[%c0_135, %c0_136, %c0_137, %c0_138] : memref<2x2x8x8xf32, #tpu.memory_space<vmem>>, vector<2x2x8x8xf32>
    tpu.vector_store %arg44[%c0_135, %c0_136, %c0_137, %c0_138], %280 {strides = array<i32>} : memref<2x2x8x8xf32, #tpu.memory_space<vmem>>, vector<2x2x8x8xf32>,
    %282 = arith.truncf %277 : vector<16x32xf32> to vector<16x32xbf16>
    %c0_139 = arith.constant 0 : index
    %c0_140 = arith.constant 0 : index
    %283 = vector.load %arg34[%c0_139, %c0_140] : memref<32x4xbf16, #tpu.memory_space<vmem>>, vector<32x4xbf16>
    %cst_141 = arith.constant dense<0.000000e+00> : vector<16x4xf32>
    %284 = tpu.matmul %282, %283, %cst_141 {dimension_numbers = #tpu.dot_dimension_numbers<[1], [0], [0], [1], [0, 0, 1, 1], [], []>} : vector<16x32xbf16>, vector<32x4xbf16>, vector<16x4xf32> -> vector<16x4xf32>
    %c0_142 = arith.constant 0 : index
    %c0_143 = arith.constant 0 : index
    %285 = vector.load %arg35[%c0_142, %c0_143] : memref<1x4xf32, #tpu.memory_space<vmem>>, vector<1x4xf32>
    %286 = vector.broadcast %285 : vector<1x4xf32> to vector<16x4xf32>
    %287 = arith.addf %284, %286 : vector<16x4xf32>
    %288 = arith.mulf %3, %1 : vector<16x4xf32>
    %cst_144 = arith.constant 1.000000e+00 : f32
    %289 = vector.broadcast %cst_144 : f32 to vector<16x4xf32>
    %290 = arith.subf %289, %3 : vector<16x4xf32>
    %291 = arith.mulf %290, %287 : vector<16x4xf32>
    %292 = arith.addf %288, %291 : vector<16x4xf32>
    %293 = arith.truncf %292 : vector<16x4xf32> to vector<16x4xbf16>
    %c0_145 = arith.constant 0 : index
    %c0_146 = arith.constant 0 : index
    %294 = vector.load %arg7[%c0_145, %c0_146] : memref<4x32xbf16, #tpu.memory_space<vmem>>, vector<4x32xbf16>
    %cst_147 = arith.constant dense<0.000000e+00> : vector<16x32xf32>
    %295 = tpu.matmul %293, %294, %cst_147 {dimension_numbers = #tpu.dot_dimension_numbers<[1], [0], [0], [1], [0, 0, 1, 1], [], []>} : vector<16x4xbf16>, vector<4x32xbf16>, vector<16x32xf32> -> vector<16x32xf32>
    %c0_148 = arith.constant 0 : index
    %c0_149 = arith.constant 0 : index
    %296 = vector.load %arg8[%c0_148, %c0_149] : memref<4x32xbf16, #tpu.memory_space<vmem>>, vector<4x32xbf16>
    %cst_150 = arith.constant dense<0.000000e+00> : vector<16x32xf32>
    %297 = tpu.matmul %5, %296, %cst_150 {dimension_numbers = #tpu.dot_dimension_numbers<[1], [0], [0], [1], [0, 0, 1, 1], [], []>} : vector<16x4xbf16>, vector<4x32xbf16>, vector<16x32xf32> -> vector<16x32xf32>
    %298 = arith.addf %295, %297 : vector<16x32xf32>
    %c0_151 = arith.constant 0 : index
    %c0_152 = arith.constant 0 : index
    %299 = vector.load %arg9[%c0_151, %c0_152] : memref<1x32xf32, #tpu.memory_space<vmem>>, vector<1x32xf32>
    %300 = vector.broadcast %299 : vector<1x32xf32> to vector<16x32xf32>
    %301 = arith.addf %298, %300 : vector<16x32xf32>
    %302 = arith.addf %301, %10 : vector<16x32xf32>
    %c0_153 = arith.constant 0 : index
    %c0_154 = arith.constant 0 : index
    %c0_155 = arith.constant 0 : index
    %303 = vector.load %arg22[%c0_153, %c0_154, %c0_155] : memref<2x32x16xbf16, #tpu.memory_space<vmem>>, vector<1x32x16xbf16>
    %304 = vector.shape_cast %303 : vector<1x32x16xbf16> to vector<32x16xbf16>
    %c0_156 = arith.constant 0 : index
    %c0_157 = arith.constant 0 : index
    %c0_158 = arith.constant 0 : index
    %305 = vector.load %arg23[%c0_156, %c0_157, %c0_158] : memref<2x32x16xbf16, #tpu.memory_space<vmem>>, vector<1x32x16xbf16>
    %306 = vector.shape_cast %305 : vector<1x32x16xbf16> to vector<32x16xbf16>
    %c0_159 = arith.constant 0 : index
    %c0_160 = arith.constant 0 : index
    %c0_161 = arith.constant 0 : index
    %307 = vector.load %arg24[%c0_159, %c0_160, %c0_161] : memref<2x32x16xbf16, #tpu.memory_space<vmem>>, vector<1x32x16xbf16>
    %308 = vector.shape_cast %307 : vector<1x32x16xbf16> to vector<32x16xbf16>
    %c0_162 = arith.constant 0 : index
    %c0_163 = arith.constant 0 : index
    %c0_164 = arith.constant 0 : index
    %309 = vector.load %arg25[%c0_162, %c0_163, %c0_164] : memref<2x16x32xbf16, #tpu.memory_space<vmem>>, vector<1x16x32xbf16>
    %310 = vector.shape_cast %309 : vector<1x16x32xbf16> to vector<16x32xbf16>
    %c0_165 = arith.constant 0 : index
    %c0_166 = arith.constant 0 : index
    %c0_167 = arith.constant 0 : index
    %311 = vector.load %arg26[%c0_165, %c0_166, %c0_167] : memref<2x1x32xf32, #tpu.memory_space<vmem>>, vector<1x1x32xf32>
    %312 = vector.shape_cast %311 : vector<1x1x32xf32> to vector<1x32xf32>
    %c0_168 = arith.constant 0 : index
    %c0_169 = arith.constant 0 : index
    %c0_170 = arith.constant 0 : index
    %313 = vector.load %arg27[%c0_168, %c0_169, %c0_170] : memref<2x1x32xf32, #tpu.memory_space<vmem>>, vector<1x1x32xf32>
    %314 = vector.shape_cast %313 : vector<1x1x32xf32> to vector<1x32xf32>
    %c0_171 = arith.constant 0 : index
    %c0_172 = arith.constant 0 : index
    %c0_173 = arith.constant 0 : index
    %315 = vector.load %arg28[%c0_171, %c0_172, %c0_173] : memref<2x32x64xbf16, #tpu.memory_space<vmem>>, vector<1x32x64xbf16>
    %316 = vector.shape_cast %315 : vector<1x32x64xbf16> to vector<32x64xbf16>
    %c0_174 = arith.constant 0 : index
    %c0_175 = arith.constant 0 : index
    %c0_176 = arith.constant 0 : index
    %317 = vector.load %arg29[%c0_174, %c0_175, %c0_176] : memref<2x1x64xf32, #tpu.memory_space<vmem>>, vector<1x1x64xf32>
    %318 = vector.shape_cast %317 : vector<1x1x64xf32> to vector<1x64xf32>
    %c0_177 = arith.constant 0 : index
    %c0_178 = arith.constant 0 : index
    %c0_179 = arith.constant 0 : index
    %319 = vector.load %arg30[%c0_177, %c0_178, %c0_179] : memref<2x64x32xbf16, #tpu.memory_space<vmem>>, vector<1x64x32xbf16>
    %320 = vector.shape_cast %319 : vector<1x64x32xbf16> to vector<64x32xbf16>
    %c0_180 = arith.constant 0 : index
    %c0_181 = arith.constant 0 : index
    %c0_182 = arith.constant 0 : index
    %321 = vector.load %arg31[%c0_180, %c0_181, %c0_182] : memref<2x1x32xf32, #tpu.memory_space<vmem>>, vector<1x1x32xf32>
    %322 = vector.shape_cast %321 : vector<1x1x32xf32> to vector<1x32xf32>
    %c0_183 = arith.constant 0 : index
    %c0_184 = arith.constant 0 : index
    %c0_185 = arith.constant 0 : index
    %323 = vector.load %arg32[%c0_183, %c0_184, %c0_185] : memref<2x1x32xf32, #tpu.memory_space<vmem>>, vector<1x1x32xf32>
    %324 = vector.shape_cast %323 : vector<1x1x32xf32> to vector<1x32xf32>
    %c0_186 = arith.constant 0 : index
    %c0_187 = arith.constant 0 : index
    %c0_188 = arith.constant 0 : index
    %325 = vector.load %arg33[%c0_186, %c0_187, %c0_188] : memref<2x1x32xf32, #tpu.memory_space<vmem>>, vector<1x1x32xf32>
    %326 = vector.shape_cast %325 : vector<1x1x32xf32> to vector<1x32xf32>
    %327 = arith.truncf %302 : vector<16x32xf32> to vector<16x32xbf16>
    %cst_189 = arith.constant dense<0.000000e+00> : vector<16x16xf32>
    %328 = tpu.matmul %327, %304, %cst_189 {dimension_numbers = #tpu.dot_dimension_numbers<[1], [0], [0], [1], [0, 0, 1, 1], [], []>} : vector<16x32xbf16>, vector<32x16xbf16>, vector<16x16xf32> -> vector<16x16xf32>
    %cst_190 = arith.constant dense<0.000000e+00> : vector<16x16xf32>
    %329 = tpu.matmul %327, %306, %cst_190 {dimension_numbers = #tpu.dot_dimension_numbers<[1], [0], [0], [1], [0, 0, 1, 1], [], []>} : vector<16x32xbf16>, vector<32x16xbf16>, vector<16x16xf32> -> vector<16x16xf32>
    %cst_191 = arith.constant dense<0.000000e+00> : vector<16x16xf32>
    %330 = tpu.matmul %327, %308, %cst_191 {dimension_numbers = #tpu.dot_dimension_numbers<[1], [0], [0], [1], [0, 0, 1, 1], [], []>} : vector<16x32xbf16>, vector<32x16xbf16>, vector<16x16xf32> -> vector<16x16xf32>
    %331 = vector.shape_cast %328 : vector<16x16xf32> to vector<2x8x16xf32>
    %332 = vector.shape_cast %329 : vector<16x16xf32> to vector<2x8x16xf32>
    %333 = vector.shape_cast %330 : vector<16x16xf32> to vector<2x8x16xf32>
    %334 = vector.extract_strided_slice %331 {offsets = [0, 0, 0], sizes = [2, 8, 8], strides = [1, 1, 1]} : vector<2x8x16xf32> to vector<2x8x8xf32>
    %335 = arith.truncf %334 : vector<2x8x8xf32> to vector<2x8x8xbf16>
    %336 = vector.extract_strided_slice %332 {offsets = [0, 0, 0], sizes = [2, 8, 8], strides = [1, 1, 1]} : vector<2x8x16xf32> to vector<2x8x8xf32>
    %337 = arith.truncf %336 : vector<2x8x8xf32> to vector<2x8x8xbf16>
    %338 = vector.extract_strided_slice %333 {offsets = [0, 0, 0], sizes = [2, 8, 8], strides = [1, 1, 1]} : vector<2x8x16xf32> to vector<2x8x8xf32>
    %339 = arith.truncf %338 : vector<2x8x8xf32> to vector<2x8x8xbf16>
    %cst_192 = arith.constant dense<0.000000e+00> : vector<2x8x8xf32>
    %340 = tpu.matmul %335, %337, %cst_192 {dimension_numbers = #tpu.dot_dimension_numbers<[2], [2], [1], [1], [0, 0, 0, 1, 1, 1], [0], [0]>} : vector<2x8x8xbf16>, vector<2x8x8xbf16>, vector<2x8x8xf32> -> vector<2x8x8xf32>
    %cst_193 = arith.constant dense<0xFF800000> : vector<2x8xf32>
    %341 = vector.multi_reduction <maximumf>, %340, %cst_193 [2] : vector<2x8x8xf32> to vector<2x8xf32>
    %342 = vector.shape_cast %341 : vector<2x8xf32> to vector<2x8x1xf32>
    %343 = vector.broadcast %342 : vector<2x8x1xf32> to vector<2x8x8xf32>
    %344 = arith.subf %340, %343 : vector<2x8x8xf32>
    %345 = math.exp %344 : vector<2x8x8xf32>
    %cst_194 = arith.constant dense<0.000000e+00> : vector<2x8xf32>
    %346 = vector.multi_reduction <add>, %345, %cst_194 [2] : vector<2x8x8xf32> to vector<2x8xf32>
    %347 = vector.shape_cast %346 : vector<2x8xf32> to vector<2x8x1xf32>
    %348 = tpu.reciprocal %347 {approx = true} : vector<2x8x1xf32> -> vector<2x8x1xf32>
    %349 = vector.broadcast %348 : vector<2x8x1xf32> to vector<2x8x8xf32>
    %350 = arith.mulf %345, %349 : vector<2x8x8xf32>
    %351 = arith.truncf %350 : vector<2x8x8xf32> to vector<2x8x8xbf16>
    %cst_195 = arith.constant dense<0.000000e+00> : vector<2x8x8xf32>
    %352 = tpu.matmul %351, %339, %cst_195 {dimension_numbers = #tpu.dot_dimension_numbers<[2], [1], [1], [2], [0, 0, 0, 1, 1, 2], [0], [0]>} : vector<2x8x8xbf16>, vector<2x8x8xbf16>, vector<2x8x8xf32> -> vector<2x8x8xf32>
    %353 = vector.extract_strided_slice %331 {offsets = [0, 0, 8], sizes = [2, 8, 8], strides = [1, 1, 1]} : vector<2x8x16xf32> to vector<2x8x8xf32>
    %354 = arith.truncf %353 : vector<2x8x8xf32> to vector<2x8x8xbf16>
    %355 = vector.extract_strided_slice %332 {offsets = [0, 0, 8], sizes = [2, 8, 8], strides = [1, 1, 1]} : vector<2x8x16xf32> to vector<2x8x8xf32>
    %356 = arith.truncf %355 : vector<2x8x8xf32> to vector<2x8x8xbf16>
    %357 = vector.extract_strided_slice %333 {offsets = [0, 0, 8], sizes = [2, 8, 8], strides = [1, 1, 1]} : vector<2x8x16xf32> to vector<2x8x8xf32>
    %358 = arith.truncf %357 : vector<2x8x8xf32> to vector<2x8x8xbf16>
    %cst_196 = arith.constant dense<0.000000e+00> : vector<2x8x8xf32>
    %359 = tpu.matmul %354, %356, %cst_196 {dimension_numbers = #tpu.dot_dimension_numbers<[2], [2], [1], [1], [0, 0, 0, 1, 1, 1], [0], [0]>} : vector<2x8x8xbf16>, vector<2x8x8xbf16>, vector<2x8x8xf32> -> vector<2x8x8xf32>
    %cst_197 = arith.constant dense<0xFF800000> : vector<2x8xf32>
    %360 = vector.multi_reduction <maximumf>, %359, %cst_197 [2] : vector<2x8x8xf32> to vector<2x8xf32>
    %361 = vector.shape_cast %360 : vector<2x8xf32> to vector<2x8x1xf32>
    %362 = vector.broadcast %361 : vector<2x8x1xf32> to vector<2x8x8xf32>
    %363 = arith.subf %359, %362 : vector<2x8x8xf32>
    %364 = math.exp %363 : vector<2x8x8xf32>
    %cst_198 = arith.constant dense<0.000000e+00> : vector<2x8xf32>
    %365 = vector.multi_reduction <add>, %364, %cst_198 [2] : vector<2x8x8xf32> to vector<2x8xf32>
    %366 = vector.shape_cast %365 : vector<2x8xf32> to vector<2x8x1xf32>
    %367 = tpu.reciprocal %366 {approx = true} : vector<2x8x1xf32> -> vector<2x8x1xf32>
    %368 = vector.broadcast %367 : vector<2x8x1xf32> to vector<2x8x8xf32>
    %369 = arith.mulf %364, %368 : vector<2x8x8xf32>
    %370 = arith.truncf %369 : vector<2x8x8xf32> to vector<2x8x8xbf16>
    %cst_199 = arith.constant dense<0.000000e+00> : vector<2x8x8xf32>
    %371 = tpu.matmul %370, %358, %cst_199 {dimension_numbers = #tpu.dot_dimension_numbers<[2], [1], [1], [2], [0, 0, 0, 1, 1, 2], [0], [0]>} : vector<2x8x8xbf16>, vector<2x8x8xbf16>, vector<2x8x8xf32> -> vector<2x8x8xf32>
    %372 = tpu.concatenate %352, %371 in 2 : vector<2x8x8xf32>, vector<2x8x8xf32> -> vector<2x8x16xf32>
    %373 = vector.shape_cast %372 : vector<2x8x16xf32> to vector<16x16xf32>
    %374 = arith.truncf %373 : vector<16x16xf32> to vector<16x16xbf16>
    %cst_200 = arith.constant dense<0.000000e+00> : vector<16x32xf32>
    %375 = tpu.matmul %374, %310, %cst_200 {dimension_numbers = #tpu.dot_dimension_numbers<[1], [0], [0], [1], [0, 0, 1, 1], [], []>} : vector<16x16xbf16>, vector<16x32xbf16>, vector<16x32xf32> -> vector<16x32xf32>
    %376 = arith.addf %375, %302 : vector<16x32xf32>
    %cst_201 = arith.constant dense<0.000000e+00> : vector<16xf32>
    %377 = vector.multi_reduction <add>, %376, %cst_201 [1] : vector<16x32xf32> to vector<16xf32>
    %378 = vector.shape_cast %377 : vector<16xf32> to vector<16x1xf32>
    %cst_202 = arith.constant 3.200000e+01 : f32
    %379 = vector.broadcast %cst_202 : f32 to vector<16x1xf32>
    %380 = arith.divf %378, %379 : vector<16x1xf32>
    %381 = vector.broadcast %380 : vector<16x1xf32> to vector<16x32xf32>
    %382 = arith.subf %376, %381 : vector<16x32xf32>
    %383 = arith.mulf %382, %382 : vector<16x32xf32>
    %cst_203 = arith.constant dense<0.000000e+00> : vector<16xf32>
    %384 = vector.multi_reduction <add>, %383, %cst_203 [1] : vector<16x32xf32> to vector<16xf32>
    %385 = vector.shape_cast %384 : vector<16xf32> to vector<16x1xf32>
    %cst_204 = arith.constant 3.200000e+01 : f32
    %386 = vector.broadcast %cst_204 : f32 to vector<16x1xf32>
    %387 = arith.divf %385, %386 : vector<16x1xf32>
    %388 = vector.broadcast %380 : vector<16x1xf32> to vector<16x32xf32>
    %389 = arith.subf %376, %388 : vector<16x32xf32>
    %cst_205 = arith.constant 9.99999997E-7 : f32
    %390 = vector.broadcast %cst_205 : f32 to vector<16x1xf32>
    %391 = arith.addf %387, %390 : vector<16x1xf32>
    %392 = math.rsqrt %391 : vector<16x1xf32>
    %393 = vector.broadcast %392 : vector<16x1xf32> to vector<16x32xf32>
    %394 = arith.mulf %389, %393 : vector<16x32xf32>
    %395 = vector.broadcast %312 : vector<1x32xf32> to vector<16x32xf32>
    %396 = arith.mulf %394, %395 : vector<16x32xf32>
    %397 = vector.broadcast %314 : vector<1x32xf32> to vector<16x32xf32>
    %398 = arith.addf %396, %397 : vector<16x32xf32>
    %399 = arith.truncf %398 : vector<16x32xf32> to vector<16x32xbf16>
    %cst_206 = arith.constant dense<0.000000e+00> : vector<16x64xf32>
    %400 = tpu.matmul %399, %316, %cst_206 {dimension_numbers = #tpu.dot_dimension_numbers<[1], [0], [0], [1], [0, 0, 1, 1], [], []>} : vector<16x32xbf16>, vector<32x64xbf16>, vector<16x64xf32> -> vector<16x64xf32>
    %401 = vector.broadcast %318 : vector<1x64xf32> to vector<16x64xf32>
    %402 = arith.addf %400, %401 : vector<16x64xf32>
    %cst_207 = arith.constant 0.000000e+00 : f32
    %403 = vector.broadcast %cst_207 : f32 to vector<16x64xf32>
    %404 = arith.maximumf %402, %403 : vector<16x64xf32>
    %405 = arith.truncf %404 : vector<16x64xf32> to vector<16x64xbf16>
    %cst_208 = arith.constant dense<0.000000e+00> : vector<16x32xf32>
    %406 = tpu.matmul %405, %320, %cst_208 {dimension_numbers = #tpu.dot_dimension_numbers<[1], [0], [0], [1], [0, 0, 1, 1], [], []>} : vector<16x64xbf16>, vector<64x32xbf16>, vector<16x32xf32> -> vector<16x32xf32>
    %407 = vector.broadcast %322 : vector<1x32xf32> to vector<16x32xf32>
    %408 = arith.addf %406, %407 : vector<16x32xf32>
    %409 = arith.addf %408, %398 : vector<16x32xf32>
    %cst_209 = arith.constant dense<0.000000e+00> : vector<16xf32>
    %410 = vector.multi_reduction <add>, %409, %cst_209 [1] : vector<16x32xf32> to vector<16xf32>
    %411 = vector.shape_cast %410 : vector<16xf32> to vector<16x1xf32>
    %cst_210 = arith.constant 3.200000e+01 : f32
    %412 = vector.broadcast %cst_210 : f32 to vector<16x1xf32>
    %413 = arith.divf %411, %412 : vector<16x1xf32>
    %414 = vector.broadcast %413 : vector<16x1xf32> to vector<16x32xf32>
    %415 = arith.subf %409, %414 : vector<16x32xf32>
    %416 = arith.mulf %415, %415 : vector<16x32xf32>
    %cst_211 = arith.constant dense<0.000000e+00> : vector<16xf32>
    %417 = vector.multi_reduction <add>, %416, %cst_211 [1] : vector<16x32xf32> to vector<16xf32>
    %418 = vector.shape_cast %417 : vector<16xf32> to vector<16x1xf32>
    %cst_212 = arith.constant 3.200000e+01 : f32
    %419 = vector.broadcast %cst_212 : f32 to vector<16x1xf32>
    %420 = arith.divf %418, %419 : vector<16x1xf32>
    %421 = vector.broadcast %413 : vector<16x1xf32> to vector<16x32xf32>
    %422 = arith.subf %409, %421 : vector<16x32xf32>
    %cst_213 = arith.constant 9.99999997E-7 : f32
    %423 = vector.broadcast %cst_213 : f32 to vector<16x1xf32>
    %424 = arith.addf %420, %423 : vector<16x1xf32>
    %425 = math.rsqrt %424 : vector<16x1xf32>
    %426 = vector.broadcast %425 : vector<16x1xf32> to vector<16x32xf32>
    %427 = arith.mulf %422, %426 : vector<16x32xf32>
    %428 = vector.broadcast %324 : vector<1x32xf32> to vector<16x32xf32>
    %429 = arith.mulf %427, %428 : vector<16x32xf32>
    %430 = vector.broadcast %326 : vector<1x32xf32> to vector<16x32xf32>
    %431 = arith.addf %429, %430 : vector<16x32xf32>
    %c1_214 = arith.constant 1 : index
    %c0_215 = arith.constant 0 : index
    %c0_216 = arith.constant 0 : index
    %432 = vector.load %arg22[%c1_214, %c0_215, %c0_216] : memref<2x32x16xbf16, #tpu.memory_space<vmem>>, vector<1x32x16xbf16>
    %433 = vector.shape_cast %432 : vector<1x32x16xbf16> to vector<32x16xbf16>
    %c1_217 = arith.constant 1 : index
    %c0_218 = arith.constant 0 : index
    %c0_219 = arith.constant 0 : index
    %434 = vector.load %arg23[%c1_217, %c0_218, %c0_219] : memref<2x32x16xbf16, #tpu.memory_space<vmem>>, vector<1x32x16xbf16>
    %435 = vector.shape_cast %434 : vector<1x32x16xbf16> to vector<32x16xbf16>
    %c1_220 = arith.constant 1 : index
    %c0_221 = arith.constant 0 : index
    %c0_222 = arith.constant 0 : index
    %436 = vector.load %arg24[%c1_220, %c0_221, %c0_222] : memref<2x32x16xbf16, #tpu.memory_space<vmem>>, vector<1x32x16xbf16>
    %437 = vector.shape_cast %436 : vector<1x32x16xbf16> to vector<32x16xbf16>
    %c1_223 = arith.constant 1 : index
    %c0_224 = arith.constant 0 : index
    %c0_225 = arith.constant 0 : index
    %438 = vector.load %arg25[%c1_223, %c0_224, %c0_225] : memref<2x16x32xbf16, #tpu.memory_space<vmem>>, vector<1x16x32xbf16>
    %439 = vector.shape_cast %438 : vector<1x16x32xbf16> to vector<16x32xbf16>
    %c1_226 = arith.constant 1 : index
    %c0_227 = arith.constant 0 : index
    %c0_228 = arith.constant 0 : index
    %440 = vector.load %arg26[%c1_226, %c0_227, %c0_228] : memref<2x1x32xf32, #tpu.memory_space<vmem>>, vector<1x1x32xf32>
    %441 = vector.shape_cast %440 : vector<1x1x32xf32> to vector<1x32xf32>
    %c1_229 = arith.constant 1 : index
    %c0_230 = arith.constant 0 : index
    %c0_231 = arith.constant 0 : index
    %442 = vector.load %arg27[%c1_229, %c0_230, %c0_231] : memref<2x1x32xf32, #tpu.memory_space<vmem>>, vector<1x1x32xf32>
    %443 = vector.shape_cast %442 : vector<1x1x32xf32> to vector<1x32xf32>
    %c1_232 = arith.constant 1 : index
    %c0_233 = arith.constant 0 : index
    %c0_234 = arith.constant 0 : index
    %444 = vector.load %arg28[%c1_232, %c0_233, %c0_234] : memref<2x32x64xbf16, #tpu.memory_space<vmem>>, vector<1x32x64xbf16>
    %445 = vector.shape_cast %444 : vector<1x32x64xbf16> to vector<32x64xbf16>
    %c1_235 = arith.constant 1 : index
    %c0_236 = arith.constant 0 : index
    %c0_237 = arith.constant 0 : index
    %446 = vector.load %arg29[%c1_235, %c0_236, %c0_237] : memref<2x1x64xf32, #tpu.memory_space<vmem>>, vector<1x1x64xf32>
    %447 = vector.shape_cast %446 : vector<1x1x64xf32> to vector<1x64xf32>
    %c1_238 = arith.constant 1 : index
    %c0_239 = arith.constant 0 : index
    %c0_240 = arith.constant 0 : index
    %448 = vector.load %arg30[%c1_238, %c0_239, %c0_240] : memref<2x64x32xbf16, #tpu.memory_space<vmem>>, vector<1x64x32xbf16>
    %449 = vector.shape_cast %448 : vector<1x64x32xbf16> to vector<64x32xbf16>
    %c1_241 = arith.constant 1 : index
    %c0_242 = arith.constant 0 : index
    %c0_243 = arith.constant 0 : index
    %450 = vector.load %arg31[%c1_241, %c0_242, %c0_243] : memref<2x1x32xf32, #tpu.memory_space<vmem>>, vector<1x1x32xf32>
    %451 = vector.shape_cast %450 : vector<1x1x32xf32> to vector<1x32xf32>
    %c1_244 = arith.constant 1 : index
    %c0_245 = arith.constant 0 : index
    %c0_246 = arith.constant 0 : index
    %452 = vector.load %arg32[%c1_244, %c0_245, %c0_246] : memref<2x1x32xf32, #tpu.memory_space<vmem>>, vector<1x1x32xf32>
    %453 = vector.shape_cast %452 : vector<1x1x32xf32> to vector<1x32xf32>
    %c1_247 = arith.constant 1 : index
    %c0_248 = arith.constant 0 : index
    %c0_249 = arith.constant 0 : index
    %454 = vector.load %arg33[%c1_247, %c0_248, %c0_249] : memref<2x1x32xf32, #tpu.memory_space<vmem>>, vector<1x1x32xf32>
    %455 = vector.shape_cast %454 : vector<1x1x32xf32> to vector<1x32xf32>
    %456 = arith.truncf %431 : vector<16x32xf32> to vector<16x32xbf16>
    %cst_250 = arith.constant dense<0.000000e+00> : vector<16x16xf32>
    %457 = tpu.matmul %456, %433, %cst_250 {dimension_numbers = #tpu.dot_dimension_numbers<[1], [0], [0], [1], [0, 0, 1, 1], [], []>} : vector<16x32xbf16>, vector<32x16xbf16>, vector<16x16xf32> -> vector<16x16xf32>
    %cst_251 = arith.constant dense<0.000000e+00> : vector<16x16xf32>
    %458 = tpu.matmul %456, %435, %cst_251 {dimension_numbers = #tpu.dot_dimension_numbers<[1], [0], [0], [1], [0, 0, 1, 1], [], []>} : vector<16x32xbf16>, vector<32x16xbf16>, vector<16x16xf32> -> vector<16x16xf32>
    %cst_252 = arith.constant dense<0.000000e+00> : vector<16x16xf32>
    %459 = tpu.matmul %456, %437, %cst_252 {dimension_numbers = #tpu.dot_dimension_numbers<[1], [0], [0], [1], [0, 0, 1, 1], [], []>} : vector<16x32xbf16>, vector<32x16xbf16>, vector<16x16xf32> -> vector<16x16xf32>
    %460 = vector.shape_cast %457 : vector<16x16xf32> to vector<2x8x16xf32>
    %461 = vector.shape_cast %458 : vector<16x16xf32> to vector<2x8x16xf32>
    %462 = vector.shape_cast %459 : vector<16x16xf32> to vector<2x8x16xf32>
    %463 = vector.extract_strided_slice %460 {offsets = [0, 0, 0], sizes = [2, 8, 8], strides = [1, 1, 1]} : vector<2x8x16xf32> to vector<2x8x8xf32>
    %464 = arith.truncf %463 : vector<2x8x8xf32> to vector<2x8x8xbf16>
    %465 = vector.extract_strided_slice %461 {offsets = [0, 0, 0], sizes = [2, 8, 8], strides = [1, 1, 1]} : vector<2x8x16xf32> to vector<2x8x8xf32>
    %466 = arith.truncf %465 : vector<2x8x8xf32> to vector<2x8x8xbf16>
    %467 = vector.extract_strided_slice %462 {offsets = [0, 0, 0], sizes = [2, 8, 8], strides = [1, 1, 1]} : vector<2x8x16xf32> to vector<2x8x8xf32>
    %468 = arith.truncf %467 : vector<2x8x8xf32> to vector<2x8x8xbf16>
    %cst_253 = arith.constant dense<0.000000e+00> : vector<2x8x8xf32>
    %469 = tpu.matmul %464, %466, %cst_253 {dimension_numbers = #tpu.dot_dimension_numbers<[2], [2], [1], [1], [0, 0, 0, 1, 1, 1], [0], [0]>} : vector<2x8x8xbf16>, vector<2x8x8xbf16>, vector<2x8x8xf32> -> vector<2x8x8xf32>
    %cst_254 = arith.constant dense<0xFF800000> : vector<2x8xf32>
    %470 = vector.multi_reduction <maximumf>, %469, %cst_254 [2] : vector<2x8x8xf32> to vector<2x8xf32>
    %471 = vector.shape_cast %470 : vector<2x8xf32> to vector<2x8x1xf32>
    %472 = vector.broadcast %471 : vector<2x8x1xf32> to vector<2x8x8xf32>
    %473 = arith.subf %469, %472 : vector<2x8x8xf32>
    %474 = math.exp %473 : vector<2x8x8xf32>
    %cst_255 = arith.constant dense<0.000000e+00> : vector<2x8xf32>
    %475 = vector.multi_reduction <add>, %474, %cst_255 [2] : vector<2x8x8xf32> to vector<2x8xf32>
    %476 = vector.shape_cast %475 : vector<2x8xf32> to vector<2x8x1xf32>
    %477 = tpu.reciprocal %476 {approx = true} : vector<2x8x1xf32> -> vector<2x8x1xf32>
    %478 = vector.broadcast %477 : vector<2x8x1xf32> to vector<2x8x8xf32>
    %479 = arith.mulf %474, %478 : vector<2x8x8xf32>
    %480 = arith.truncf %479 : vector<2x8x8xf32> to vector<2x8x8xbf16>
    %cst_256 = arith.constant dense<0.000000e+00> : vector<2x8x8xf32>
    %481 = tpu.matmul %480, %468, %cst_256 {dimension_numbers = #tpu.dot_dimension_numbers<[2], [1], [1], [2], [0, 0, 0, 1, 1, 2], [0], [0]>} : vector<2x8x8xbf16>, vector<2x8x8xbf16>, vector<2x8x8xf32> -> vector<2x8x8xf32>
    %482 = vector.extract_strided_slice %460 {offsets = [0, 0, 8], sizes = [2, 8, 8], strides = [1, 1, 1]} : vector<2x8x16xf32> to vector<2x8x8xf32>
    %483 = arith.truncf %482 : vector<2x8x8xf32> to vector<2x8x8xbf16>
    %484 = vector.extract_strided_slice %461 {offsets = [0, 0, 8], sizes = [2, 8, 8], strides = [1, 1, 1]} : vector<2x8x16xf32> to vector<2x8x8xf32>
    %485 = arith.truncf %484 : vector<2x8x8xf32> to vector<2x8x8xbf16>
    %486 = vector.extract_strided_slice %462 {offsets = [0, 0, 8], sizes = [2, 8, 8], strides = [1, 1, 1]} : vector<2x8x16xf32> to vector<2x8x8xf32>
    %487 = arith.truncf %486 : vector<2x8x8xf32> to vector<2x8x8xbf16>
    %cst_257 = arith.constant dense<0.000000e+00> : vector<2x8x8xf32>
    %488 = tpu.matmul %483, %485, %cst_257 {dimension_numbers = #tpu.dot_dimension_numbers<[2], [2], [1], [1], [0, 0, 0, 1, 1, 1], [0], [0]>} : vector<2x8x8xbf16>, vector<2x8x8xbf16>, vector<2x8x8xf32> -> vector<2x8x8xf32>
    %cst_258 = arith.constant dense<0xFF800000> : vector<2x8xf32>
    %489 = vector.multi_reduction <maximumf>, %488, %cst_258 [2] : vector<2x8x8xf32> to vector<2x8xf32>
    %490 = vector.shape_cast %489 : vector<2x8xf32> to vector<2x8x1xf32>
    %491 = vector.broadcast %490 : vector<2x8x1xf32> to vector<2x8x8xf32>
    %492 = arith.subf %488, %491 : vector<2x8x8xf32>
    %493 = math.exp %492 : vector<2x8x8xf32>
    %cst_259 = arith.constant dense<0.000000e+00> : vector<2x8xf32>
    %494 = vector.multi_reduction <add>, %493, %cst_259 [2] : vector<2x8x8xf32> to vector<2x8xf32>
    %495 = vector.shape_cast %494 : vector<2x8xf32> to vector<2x8x1xf32>
    %496 = tpu.reciprocal %495 {approx = true} : vector<2x8x1xf32> -> vector<2x8x1xf32>
    %497 = vector.broadcast %496 : vector<2x8x1xf32> to vector<2x8x8xf32>
    %498 = arith.mulf %493, %497 : vector<2x8x8xf32>
    %499 = arith.truncf %498 : vector<2x8x8xf32> to vector<2x8x8xbf16>
    %cst_260 = arith.constant dense<0.000000e+00> : vector<2x8x8xf32>
    %500 = tpu.matmul %499, %487, %cst_260 {dimension_numbers = #tpu.dot_dimension_numbers<[2], [1], [1], [2], [0, 0, 0, 1, 1, 2], [0], [0]>} : vector<2x8x8xbf16>, vector<2x8x8xbf16>, vector<2x8x8xf32> -> vector<2x8x8xf32>
    %501 = tpu.concatenate %481, %500 in 2 : vector<2x8x8xf32>, vector<2x8x8xf32> -> vector<2x8x16xf32>
    %502 = vector.shape_cast %501 : vector<2x8x16xf32> to vector<16x16xf32>
    %503 = arith.truncf %502 : vector<16x16xf32> to vector<16x16xbf16>
    %cst_261 = arith.constant dense<0.000000e+00> : vector<16x32xf32>
    %504 = tpu.matmul %503, %439, %cst_261 {dimension_numbers = #tpu.dot_dimension_numbers<[1], [0], [0], [1], [0, 0, 1, 1], [], []>} : vector<16x16xbf16>, vector<16x32xbf16>, vector<16x32xf32> -> vector<16x32xf32>
    %505 = arith.addf %504, %431 : vector<16x32xf32>
    %cst_262 = arith.constant dense<0.000000e+00> : vector<16xf32>
    %506 = vector.multi_reduction <add>, %505, %cst_262 [1] : vector<16x32xf32> to vector<16xf32>
    %507 = vector.shape_cast %506 : vector<16xf32> to vector<16x1xf32>
    %cst_263 = arith.constant 3.200000e+01 : f32
    %508 = vector.broadcast %cst_263 : f32 to vector<16x1xf32>
    %509 = arith.divf %507, %508 : vector<16x1xf32>
    %510 = vector.broadcast %509 : vector<16x1xf32> to vector<16x32xf32>
    %511 = arith.subf %505, %510 : vector<16x32xf32>
    %512 = arith.mulf %511, %511 : vector<16x32xf32>
    %cst_264 = arith.constant dense<0.000000e+00> : vector<16xf32>
    %513 = vector.multi_reduction <add>, %512, %cst_264 [1] : vector<16x32xf32> to vector<16xf32>
    %514 = vector.shape_cast %513 : vector<16xf32> to vector<16x1xf32>
    %cst_265 = arith.constant 3.200000e+01 : f32
    %515 = vector.broadcast %cst_265 : f32 to vector<16x1xf32>
    %516 = arith.divf %514, %515 : vector<16x1xf32>
    %517 = vector.broadcast %509 : vector<16x1xf32> to vector<16x32xf32>
    %518 = arith.subf %505, %517 : vector<16x32xf32>
    %cst_266 = arith.constant 9.99999997E-7 : f32
    %519 = vector.broadcast %cst_266 : f32 to vector<16x1xf32>
    %520 = arith.addf %516, %519 : vector<16x1xf32>
    %521 = math.rsqrt %520 : vector<16x1xf32>
    %522 = vector.broadcast %521 : vector<16x1xf32> to vector<16x32xf32>
    %523 = arith.mulf %518, %522 : vector<16x32xf32>
    %524 = vector.broadcast %441 : vector<1x32xf32> to vector<16x32xf32>
    %525 = arith.mulf %523, %524 : vector<16x32xf32>
    %526 = vector.broadcast %443 : vector<1x32xf32> to vector<16x32xf32>
    %527 = arith.addf %525, %526 : vector<16x32xf32>
    %528 = arith.truncf %527 : vector<16x32xf32> to vector<16x32xbf16>
    %cst_267 = arith.constant dense<0.000000e+00> : vector<16x64xf32>
    %529 = tpu.matmul %528, %445, %cst_267 {dimension_numbers = #tpu.dot_dimension_numbers<[1], [0], [0], [1], [0, 0, 1, 1], [], []>} : vector<16x32xbf16>, vector<32x64xbf16>, vector<16x64xf32> -> vector<16x64xf32>
    %530 = vector.broadcast %447 : vector<1x64xf32> to vector<16x64xf32>
    %531 = arith.addf %529, %530 : vector<16x64xf32>
    %cst_268 = arith.constant 0.000000e+00 : f32
    %532 = vector.broadcast %cst_268 : f32 to vector<16x64xf32>
    %533 = arith.maximumf %531, %532 : vector<16x64xf32>
    %534 = arith.truncf %533 : vector<16x64xf32> to vector<16x64xbf16>
    %cst_269 = arith.constant dense<0.000000e+00> : vector<16x32xf32>
    %535 = tpu.matmul %534, %449, %cst_269 {dimension_numbers = #tpu.dot_dimension_numbers<[1], [0], [0], [1], [0, 0, 1, 1], [], []>} : vector<16x64xbf16>, vector<64x32xbf16>, vector<16x32xf32> -> vector<16x32xf32>
    %536 = vector.broadcast %451 : vector<1x32xf32> to vector<16x32xf32>
    %537 = arith.addf %535, %536 : vector<16x32xf32>
    %538 = arith.addf %537, %527 : vector<16x32xf32>
    %cst_270 = arith.constant dense<0.000000e+00> : vector<16xf32>
    %539 = vector.multi_reduction <add>, %538, %cst_270 [1] : vector<16x32xf32> to vector<16xf32>
    %540 = vector.shape_cast %539 : vector<16xf32> to vector<16x1xf32>
    %cst_271 = arith.constant 3.200000e+01 : f32
    %541 = vector.broadcast %cst_271 : f32 to vector<16x1xf32>
    %542 = arith.divf %540, %541 : vector<16x1xf32>
    %543 = vector.broadcast %542 : vector<16x1xf32> to vector<16x32xf32>
    %544 = arith.subf %538, %543 : vector<16x32xf32>
    %545 = arith.mulf %544, %544 : vector<16x32xf32>
    %cst_272 = arith.constant dense<0.000000e+00> : vector<16xf32>
    %546 = vector.multi_reduction <add>, %545, %cst_272 [1] : vector<16x32xf32> to vector<16xf32>
    %547 = vector.shape_cast %546 : vector<16xf32> to vector<16x1xf32>
    %cst_273 = arith.constant 3.200000e+01 : f32
    %548 = vector.broadcast %cst_273 : f32 to vector<16x1xf32>
    %549 = arith.divf %547, %548 : vector<16x1xf32>
    %550 = vector.broadcast %542 : vector<16x1xf32> to vector<16x32xf32>
    %551 = arith.subf %538, %550 : vector<16x32xf32>
    %cst_274 = arith.constant 9.99999997E-7 : f32
    %552 = vector.broadcast %cst_274 : f32 to vector<16x1xf32>
    %553 = arith.addf %549, %552 : vector<16x1xf32>
    %554 = math.rsqrt %553 : vector<16x1xf32>
    %555 = vector.broadcast %554 : vector<16x1xf32> to vector<16x32xf32>
    %556 = arith.mulf %551, %555 : vector<16x32xf32>
    %557 = vector.broadcast %453 : vector<1x32xf32> to vector<16x32xf32>
    %558 = arith.mulf %556, %557 : vector<16x32xf32>
    %559 = vector.broadcast %455 : vector<1x32xf32> to vector<16x32xf32>
    %560 = arith.addf %558, %559 : vector<16x32xf32>
    %561 = vector.shape_cast %479 : vector<2x8x8xf32> to vector<2x1x8x8xf32>
    %562 = vector.shape_cast %498 : vector<2x8x8xf32> to vector<2x1x8x8xf32>
    %563 = tpu.concatenate %561, %562 in 1 : vector<2x1x8x8xf32>, vector<2x1x8x8xf32> -> vector<2x2x8x8xf32>
    %c0_275 = arith.constant 0 : index
    %c0_276 = arith.constant 0 : index
    %c0_277 = arith.constant 0 : index
    %c0_278 = arith.constant 0 : index
    %564 = vector.load %arg45[%c0_275, %c0_276, %c0_277, %c0_278] : memref<2x2x8x8xf32, #tpu.memory_space<vmem>>, vector<2x2x8x8xf32>
    tpu.vector_store %arg45[%c0_275, %c0_276, %c0_277, %c0_278], %563 {strides = array<i32>} : memref<2x2x8x8xf32, #tpu.memory_space<vmem>>, vector<2x2x8x8xf32>,
    %565 = arith.truncf %560 : vector<16x32xf32> to vector<16x32xbf16>
    %c0_279 = arith.constant 0 : index
    %c0_280 = arith.constant 0 : index
    %566 = vector.load %arg36[%c0_279, %c0_280] : memref<32x4xbf16, #tpu.memory_space<vmem>>, vector<32x4xbf16>
    %cst_281 = arith.constant dense<0.000000e+00> : vector<16x4xf32>
    %567 = tpu.matmul %565, %566, %cst_281 {dimension_numbers = #tpu.dot_dimension_numbers<[1], [0], [0], [1], [0, 0, 1, 1], [], []>} : vector<16x32xbf16>, vector<32x4xbf16>, vector<16x4xf32> -> vector<16x4xf32>
    %c0_282 = arith.constant 0 : index
    %c0_283 = arith.constant 0 : index
    %568 = vector.load %arg37[%c0_282, %c0_283] : memref<1x4xf32, #tpu.memory_space<vmem>>, vector<1x4xf32>
    %569 = vector.broadcast %568 : vector<1x4xf32> to vector<16x4xf32>
    %570 = arith.addf %567, %569 : vector<16x4xf32>
    %cst_284 = arith.constant 0.000000e+00 : f32
    %571 = vector.broadcast %cst_284 : f32 to vector<16x4xf32>
    %572 = arith.maximumf %570, %571 : vector<16x4xf32>
    %573 = arith.truncf %572 : vector<16x4xf32> to vector<16x4xbf16>
    %c0_285 = arith.constant 0 : index
    %c0_286 = arith.constant 0 : index
    %574 = vector.load %arg38[%c0_285, %c0_286] : memref<4x4xbf16, #tpu.memory_space<vmem>>, vector<4x4xbf16>
    %cst_287 = arith.constant dense<0.000000e+00> : vector<16x4xf32>
    %575 = tpu.matmul %573, %574, %cst_287 {dimension_numbers = #tpu.dot_dimension_numbers<[1], [0], [0], [1], [0, 0, 1, 1], [], []>} : vector<16x4xbf16>, vector<4x4xbf16>, vector<16x4xf32> -> vector<16x4xf32>
    %c0_288 = arith.constant 0 : index
    %c0_289 = arith.constant 0 : index
    %576 = vector.load %arg39[%c0_288, %c0_289] : memref<1x4xf32, #tpu.memory_space<vmem>>, vector<1x4xf32>
    %577 = vector.broadcast %576 : vector<1x4xf32> to vector<16x4xf32>
    %578 = arith.addf %575, %577 : vector<16x4xf32>
    %579 = arith.addf %479, %498 : vector<2x8x8xf32>
    %cst_290 = arith.constant 5.000000e-01 : f32
    %580 = vector.broadcast %cst_290 : f32 to vector<2x8x8xf32>
    %581 = arith.mulf %579, %580 : vector<2x8x8xf32>
    %c0_291 = arith.constant 0 : index
    %c0_292 = arith.constant 0 : index
    %582 = vector.load %arg40[%c0_291, %c0_292] : memref<4x4xbf16, #tpu.memory_space<vmem>>, vector<4x4xbf16>
    %cst_293 = arith.constant dense<0.000000e+00> : vector<16x4xf32>
    %583 = tpu.matmul %5, %582, %cst_293 {dimension_numbers = #tpu.dot_dimension_numbers<[1], [0], [0], [1], [0, 0, 1, 1], [], []>} : vector<16x4xbf16>, vector<4x4xbf16>, vector<16x4xf32> -> vector<16x4xf32>
    %584 = vector.shape_cast %581 : vector<2x8x8xf32> to vector<16x8xf32>
    %585 = arith.truncf %584 : vector<16x8xf32> to vector<16x8xbf16>
    %c0_294 = arith.constant 0 : index
    %c0_295 = arith.constant 0 : index
    %586 = vector.load %arg41[%c0_294, %c0_295] : memref<8x4xbf16, #tpu.memory_space<vmem>>, vector<8x4xbf16>
    %cst_296 = arith.constant dense<0.000000e+00> : vector<16x4xf32>
    %587 = tpu.matmul %585, %586, %cst_296 {dimension_numbers = #tpu.dot_dimension_numbers<[1], [0], [0], [1], [0, 0, 1, 1], [], []>} : vector<16x8xbf16>, vector<8x4xbf16>, vector<16x4xf32> -> vector<16x4xf32>
    %588 = arith.addf %583, %587 : vector<16x4xf32>
    %c0_297 = arith.constant 0 : index
    %c0_298 = arith.constant 0 : index
    %589 = vector.load %arg42[%c0_297, %c0_298] : memref<1x4xf32, #tpu.memory_space<vmem>>, vector<1x4xf32>
    %590 = vector.broadcast %589 : vector<1x4xf32> to vector<16x4xf32>
    %591 = arith.addf %588, %590 : vector<16x4xf32>
    %cst_299 = arith.constant 0.000000e+00 : f32
    %592 = vector.broadcast %cst_299 : f32 to vector<16x4xf32>
    %593 = arith.subf %592, %591 : vector<16x4xf32>
    %594 = math.exp %593 : vector<16x4xf32>
    %cst_300 = arith.constant 1.000000e+00 : f32
    %595 = vector.broadcast %cst_300 : f32 to vector<16x4xf32>
    %596 = arith.addf %595, %594 : vector<16x4xf32>
    %cst_301 = arith.constant 1.000000e+00 : f32
    %597 = vector.broadcast %cst_301 : f32 to vector<16x4xf32>
    %598 = arith.divf %597, %596 : vector<16x4xf32>
    %cst_302 = arith.constant 1.000000e+00 : f32
    %599 = vector.broadcast %cst_302 : f32 to vector<16x4xf32>
    %600 = arith.subf %599, %598 : vector<16x4xf32>
    %601 = arith.mulf %600, %578 : vector<16x4xf32>
    %602 = arith.mulf %598, %287 : vector<16x4xf32>
    %603 = arith.addf %601, %602 : vector<16x4xf32>
    %604 = vector.shape_cast %287 : vector<16x4xf32> to vector<2x8x4xf32>
    %c0_303 = arith.constant 0 : index
    %c0_304 = arith.constant 0 : index
    %c0_305 = arith.constant 0 : index
    %605 = vector.load %arg43[%c0_303, %c0_304, %c0_305] : memref<2x8x16xf32, #tpu.memory_space<vmem>>, vector<2x8x4xf32>
    tpu.vector_store %arg43[%c0_303, %c0_304, %c0_305], %604 {strides = array<i32>} : memref<2x8x16xf32, #tpu.memory_space<vmem>>, vector<2x8x4xf32>,
    %606 = vector.shape_cast %578 : vector<16x4xf32> to vector<2x8x4xf32>
    %c0_306 = arith.constant 0 : index
    %c0_307 = arith.constant 0 : index
    %c4 = arith.constant 4 : index
    %607 = vector.load %arg43[%c0_306, %c0_307, %c4] : memref<2x8x16xf32, #tpu.memory_space<vmem>>, vector<2x8x4xf32>
    tpu.vector_store %arg43[%c0_306, %c0_307, %c4], %606 {strides = array<i32>} : memref<2x8x16xf32, #tpu.memory_space<vmem>>, vector<2x8x4xf32>,
    %608 = vector.shape_cast %603 : vector<16x4xf32> to vector<2x8x4xf32>
    %c0_308 = arith.constant 0 : index
    %c0_309 = arith.constant 0 : index
    %c8 = arith.constant 8 : index
    %609 = vector.load %arg43[%c0_308, %c0_309, %c8] : memref<2x8x16xf32, #tpu.memory_space<vmem>>, vector<2x8x4xf32>
    tpu.vector_store %arg43[%c0_308, %c0_309, %c8], %608 {strides = array<i32>} : memref<2x8x16xf32, #tpu.memory_space<vmem>>, vector<2x8x4xf32>,
    %610 = vector.shape_cast %598 : vector<16x4xf32> to vector<2x8x4xf32>
    %c0_310 = arith.constant 0 : index
    %c0_311 = arith.constant 0 : index
    %c12 = arith.constant 12 : index
    %611 = vector.load %arg43[%c0_310, %c0_311, %c12] : memref<2x8x16xf32, #tpu.memory_space<vmem>>, vector<2x8x4xf32>
    tpu.vector_store %arg43[%c0_310, %c0_311, %c12], %610 {strides = array<i32>} : memref<2x8x16xf32, #tpu.memory_space<vmem>>, vector<2x8x4xf32>,
    return
  }
  func.func @transform_0(%arg0: i32) -> (i32, i32, i32) {
    %c0_i32 = arith.constant 0 : i32
    %c0_i32_0 = arith.constant 0 : i32
    %c0_i32_1 = arith.constant 0 : i32
    return %arg0, %c0_i32, %c0_i32_0 : i32, i32, i32
  }
  func.func @transform_1(%arg0: i32) -> (i32, i32, i32) {
    %c0_i32 = arith.constant 0 : i32
    %c0_i32_0 = arith.constant 0 : i32
    %c0_i32_1 = arith.constant 0 : i32
    return %arg0, %c0_i32, %c0_i32_0 : i32, i32, i32
  }
  func.func @transform_2(%arg0: i32) -> (i32, i32) {
    %c0_i32 = arith.constant 0 : i32
    %c0_i32_0 = arith.constant 0 : i32
    %c0_i32_1 = arith.constant 0 : i32
    return %c0_i32, %c0_i32_0 : i32, i32
  }
  func.func @transform_3(%arg0: i32) -> (i32, i32) {
    %c0_i32 = arith.constant 0 : i32
    %c0_i32_0 = arith.constant 0 : i32
    %c0_i32_1 = arith.constant 0 : i32
    return %c0_i32, %c0_i32_0 : i32, i32
  }
  func.func @transform_4(%arg0: i32) -> (i32, i32) {
    %c0_i32 = arith.constant 0 : i32
    %c0_i32_0 = arith.constant 0 : i32
    %c0_i32_1 = arith.constant 0 : i32
    return %c0_i32, %c0_i32_0 : i32, i32
  }
  func.func @transform_5(%arg0: i32) -> (i32, i32) {
    %c0_i32 = arith.constant 0 : i32
    %c0_i32_0 = arith.constant 0 : i32
    %c0_i32_1 = arith.constant 0 : i32
    return %c0_i32, %c0_i32_0 : i32, i32
  }
  func.func @transform_6(%arg0: i32) -> (i32, i32) {
    %c0_i32 = arith.constant 0 : i32
    %c0_i32_0 = arith.constant 0 : i32
    %c0_i32_1 = arith.constant 0 : i32
    return %c0_i32, %c0_i32_0 : i32, i32
  }
  func.func @transform_7(%arg0: i32) -> (i32, i32) {
    %c0_i32 = arith.constant 0 : i32
    %c0_i32_0 = arith.constant 0 : i32
    %c0_i32_1 = arith.constant 0 : i32
    return %c0_i32, %c0_i32_0 : i32, i32
  }
  func.func @transform_8(%arg0: i32) -> (i32, i32) {
    %c0_i32 = arith.constant 0 : i32
    %c0_i32_0 = arith.constant 0 : i32
    %c0_i32_1 = arith.constant 0 : i32
    return %c0_i32, %c0_i32_0 : i32, i32
  }
  func.func @transform_9(%arg0: i32) -> (i32, i32, i32) {
    %c0_i32 = arith.constant 0 : i32
    %c0_i32_0 = arith.constant 0 : i32
    %c0_i32_1 = arith.constant 0 : i32
    %c0_i32_2 = arith.constant 0 : i32
    return %c0_i32, %c0_i32_0, %c0_i32_1 : i32, i32, i32
  }
  func.func @transform_10(%arg0: i32) -> (i32, i32, i32) {
    %c0_i32 = arith.constant 0 : i32
    %c0_i32_0 = arith.constant 0 : i32
    %c0_i32_1 = arith.constant 0 : i32
    %c0_i32_2 = arith.constant 0 : i32
    return %c0_i32, %c0_i32_0, %c0_i32_1 : i32, i32, i32
  }
  func.func @transform_11(%arg0: i32) -> (i32, i32, i32) {
    %c0_i32 = arith.constant 0 : i32
    %c0_i32_0 = arith.constant 0 : i32
    %c0_i32_1 = arith.constant 0 : i32
    %c0_i32_2 = arith.constant 0 : i32
    return %c0_i32, %c0_i32_0, %c0_i32_1 : i32, i32, i32
  }
  func.func @transform_12(%arg0: i32) -> (i32, i32, i32) {
    %c0_i32 = arith.constant 0 : i32
    %c0_i32_0 = arith.constant 0 : i32
    %c0_i32_1 = arith.constant 0 : i32
    %c0_i32_2 = arith.constant 0 : i32
    return %c0_i32, %c0_i32_0, %c0_i32_1 : i32, i32, i32
  }
  func.func @transform_13(%arg0: i32) -> (i32, i32, i32) {
    %c0_i32 = arith.constant 0 : i32
    %c0_i32_0 = arith.constant 0 : i32
    %c0_i32_1 = arith.constant 0 : i32
    %c0_i32_2 = arith.constant 0 : i32
    return %c0_i32, %c0_i32_0, %c0_i32_1 : i32, i32, i32
  }
  func.func @transform_14(%arg0: i32) -> (i32, i32, i32) {
    %c0_i32 = arith.constant 0 : i32
    %c0_i32_0 = arith.constant 0 : i32
    %c0_i32_1 = arith.constant 0 : i32
    %c0_i32_2 = arith.constant 0 : i32
    return %c0_i32, %c0_i32_0, %c0_i32_1 : i32, i32, i32
  }
  func.func @transform_15(%arg0: i32) -> (i32, i32, i32) {
    %c0_i32 = arith.constant 0 : i32
    %c0_i32_0 = arith.constant 0 : i32
    %c0_i32_1 = arith.constant 0 : i32
    %c0_i32_2 = arith.constant 0 : i32
    return %c0_i32, %c0_i32_0, %c0_i32_1 : i32, i32, i32
  }
  func.func @transform_16(%arg0: i32) -> (i32, i32, i32) {
    %c0_i32 = arith.constant 0 : i32
    %c0_i32_0 = arith.constant 0 : i32
    %c0_i32_1 = arith.constant 0 : i32
    %c0_i32_2 = arith.constant 0 : i32
    return %c0_i32, %c0_i32_0, %c0_i32_1 : i32, i32, i32
  }
  func.func @transform_17(%arg0: i32) -> (i32, i32, i32) {
    %c0_i32 = arith.constant 0 : i32
    %c0_i32_0 = arith.constant 0 : i32
    %c0_i32_1 = arith.constant 0 : i32
    %c0_i32_2 = arith.constant 0 : i32
    return %c0_i32, %c0_i32_0, %c0_i32_1 : i32, i32, i32
  }
  func.func @transform_18(%arg0: i32) -> (i32, i32, i32) {
    %c0_i32 = arith.constant 0 : i32
    %c0_i32_0 = arith.constant 0 : i32
    %c0_i32_1 = arith.constant 0 : i32
    %c0_i32_2 = arith.constant 0 : i32
    return %c0_i32, %c0_i32_0, %c0_i32_1 : i32, i32, i32
  }
  func.func @transform_19(%arg0: i32) -> (i32, i32, i32) {
    %c0_i32 = arith.constant 0 : i32
    %c0_i32_0 = arith.constant 0 : i32
    %c0_i32_1 = arith.constant 0 : i32
    %c0_i32_2 = arith.constant 0 : i32
    return %c0_i32, %c0_i32_0, %c0_i32_1 : i32, i32, i32
  }
  func.func @transform_20(%arg0: i32) -> (i32, i32, i32) {
    %c0_i32 = arith.constant 0 : i32
    %c0_i32_0 = arith.constant 0 : i32
    %c0_i32_1 = arith.constant 0 : i32
    %c0_i32_2 = arith.constant 0 : i32
    return %c0_i32, %c0_i32_0, %c0_i32_1 : i32, i32, i32
  }
  func.func @transform_21(%arg0: i32) -> (i32, i32, i32) {
    %c0_i32 = arith.constant 0 : i32
    %c0_i32_0 = arith.constant 0 : i32
    %c0_i32_1 = arith.constant 0 : i32
    %c0_i32_2 = arith.constant 0 : i32
    return %c0_i32, %c0_i32_0, %c0_i32_1 : i32, i32, i32
  }
  func.func @transform_22(%arg0: i32) -> (i32, i32, i32) {
    %c0_i32 = arith.constant 0 : i32
    %c0_i32_0 = arith.constant 0 : i32
    %c0_i32_1 = arith.constant 0 : i32
    %c0_i32_2 = arith.constant 0 : i32
    return %c0_i32, %c0_i32_0, %c0_i32_1 : i32, i32, i32
  }
  func.func @transform_23(%arg0: i32) -> (i32, i32, i32) {
    %c0_i32 = arith.constant 0 : i32
    %c0_i32_0 = arith.constant 0 : i32
    %c0_i32_1 = arith.constant 0 : i32
    %c0_i32_2 = arith.constant 0 : i32
    return %c0_i32, %c0_i32_0, %c0_i32_1 : i32, i32, i32
  }
  func.func @transform_24(%arg0: i32) -> (i32, i32, i32) {
    %c0_i32 = arith.constant 0 : i32
    %c0_i32_0 = arith.constant 0 : i32
    %c0_i32_1 = arith.constant 0 : i32
    %c0_i32_2 = arith.constant 0 : i32
    return %c0_i32, %c0_i32_0, %c0_i32_1 : i32, i32, i32
  }
  func.func @transform_25(%arg0: i32) -> (i32, i32, i32) {
    %c0_i32 = arith.constant 0 : i32
    %c0_i32_0 = arith.constant 0 : i32
    %c0_i32_1 = arith.constant 0 : i32
    %c0_i32_2 = arith.constant 0 : i32
    return %c0_i32, %c0_i32_0, %c0_i32_1 : i32, i32, i32
  }
  func.func @transform_26(%arg0: i32) -> (i32, i32, i32) {
    %c0_i32 = arith.constant 0 : i32
    %c0_i32_0 = arith.constant 0 : i32
    %c0_i32_1 = arith.constant 0 : i32
    %c0_i32_2 = arith.constant 0 : i32
    return %c0_i32, %c0_i32_0, %c0_i32_1 : i32, i32, i32
  }
  func.func @transform_27(%arg0: i32) -> (i32, i32, i32) {
    %c0_i32 = arith.constant 0 : i32
    %c0_i32_0 = arith.constant 0 : i32
    %c0_i32_1 = arith.constant 0 : i32
    %c0_i32_2 = arith.constant 0 : i32
    return %c0_i32, %c0_i32_0, %c0_i32_1 : i32, i32, i32
  }
  func.func @transform_28(%arg0: i32) -> (i32, i32, i32) {
    %c0_i32 = arith.constant 0 : i32
    %c0_i32_0 = arith.constant 0 : i32
    %c0_i32_1 = arith.constant 0 : i32
    %c0_i32_2 = arith.constant 0 : i32
    return %c0_i32, %c0_i32_0, %c0_i32_1 : i32, i32, i32
  }
  func.func @transform_29(%arg0: i32) -> (i32, i32, i32) {
    %c0_i32 = arith.constant 0 : i32
    %c0_i32_0 = arith.constant 0 : i32
    %c0_i32_1 = arith.constant 0 : i32
    %c0_i32_2 = arith.constant 0 : i32
    return %c0_i32, %c0_i32_0, %c0_i32_1 : i32, i32, i32
  }
  func.func @transform_30(%arg0: i32) -> (i32, i32, i32) {
    %c0_i32 = arith.constant 0 : i32
    %c0_i32_0 = arith.constant 0 : i32
    %c0_i32_1 = arith.constant 0 : i32
    %c0_i32_2 = arith.constant 0 : i32
    return %c0_i32, %c0_i32_0, %c0_i32_1 : i32, i32, i32
  }
  func.func @transform_31(%arg0: i32) -> (i32, i32, i32) {
    %c0_i32 = arith.constant 0 : i32
    %c0_i32_0 = arith.constant 0 : i32
    %c0_i32_1 = arith.constant 0 : i32
    %c0_i32_2 = arith.constant 0 : i32
    return %c0_i32, %c0_i32_0, %c0_i32_1 : i32, i32, i32
  }
  func.func @transform_32(%arg0: i32) -> (i32, i32, i32) {
    %c0_i32 = arith.constant 0 : i32
    %c0_i32_0 = arith.constant 0 : i32
    %c0_i32_1 = arith.constant 0 : i32
    %c0_i32_2 = arith.constant 0 : i32
    return %c0_i32, %c0_i32_0, %c0_i32_1 : i32, i32, i32
  }
  func.func @transform_33(%arg0: i32) -> (i32, i32) {
    %c0_i32 = arith.constant 0 : i32
    %c0_i32_0 = arith.constant 0 : i32
    %c0_i32_1 = arith.constant 0 : i32
    return %c0_i32, %c0_i32_0 : i32, i32
  }
  func.func @transform_34(%arg0: i32) -> (i32, i32) {
    %c0_i32 = arith.constant 0 : i32
    %c0_i32_0 = arith.constant 0 : i32
    %c0_i32_1 = arith.constant 0 : i32
    return %c0_i32, %c0_i32_0 : i32, i32
  }
  func.func @transform_35(%arg0: i32) -> (i32, i32) {
    %c0_i32 = arith.constant 0 : i32
    %c0_i32_0 = arith.constant 0 : i32
    %c0_i32_1 = arith.constant 0 : i32
    return %c0_i32, %c0_i32_0 : i32, i32
  }
  func.func @transform_36(%arg0: i32) -> (i32, i32) {
    %c0_i32 = arith.constant 0 : i32
    %c0_i32_0 = arith.constant 0 : i32
    %c0_i32_1 = arith.constant 0 : i32
    return %c0_i32, %c0_i32_0 : i32, i32
  }
  func.func @transform_37(%arg0: i32) -> (i32, i32) {
    %c0_i32 = arith.constant 0 : i32
    %c0_i32_0 = arith.constant 0 : i32
    %c0_i32_1 = arith.constant 0 : i32
    return %c0_i32, %c0_i32_0 : i32, i32
  }
  func.func @transform_38(%arg0: i32) -> (i32, i32) {
    %c0_i32 = arith.constant 0 : i32
    %c0_i32_0 = arith.constant 0 : i32
    %c0_i32_1 = arith.constant 0 : i32
    return %c0_i32, %c0_i32_0 : i32, i32
  }
  func.func @transform_39(%arg0: i32) -> (i32, i32) {
    %c0_i32 = arith.constant 0 : i32
    %c0_i32_0 = arith.constant 0 : i32
    %c0_i32_1 = arith.constant 0 : i32
    return %c0_i32, %c0_i32_0 : i32, i32
  }
  func.func @transform_40(%arg0: i32) -> (i32, i32) {
    %c0_i32 = arith.constant 0 : i32
    %c0_i32_0 = arith.constant 0 : i32
    %c0_i32_1 = arith.constant 0 : i32
    return %c0_i32, %c0_i32_0 : i32, i32
  }
  func.func @transform_41(%arg0: i32) -> (i32, i32) {
    %c0_i32 = arith.constant 0 : i32
    %c0_i32_0 = arith.constant 0 : i32
    %c0_i32_1 = arith.constant 0 : i32
    return %c0_i32, %c0_i32_0 : i32, i32
  }
  func.func @transform_42(%arg0: i32) -> (i32, i32, i32) {
    %c0_i32 = arith.constant 0 : i32
    %c0_i32_0 = arith.constant 0 : i32
    %c0_i32_1 = arith.constant 0 : i32
    return %arg0, %c0_i32, %c0_i32_0 : i32, i32, i32
  }
  func.func @transform_43(%arg0: i32) -> (i32, i32, i32, i32) {
    %c0_i32 = arith.constant 0 : i32
    %c0_i32_0 = arith.constant 0 : i32
    %c0_i32_1 = arith.constant 0 : i32
    %c0_i32_2 = arith.constant 0 : i32
    return %arg0, %c0_i32, %c0_i32_0, %c0_i32_1 : i32, i32, i32, i32
  }
  func.func @transform_44(%arg0: i32) -> (i32, i32, i32, i32) {
    %c0_i32 = arith.constant 0 : i32
    %c0_i32_0 = arith.constant 0 : i32
    %c0_i32_1 = arith.constant 0 : i32
    %c0_i32_2 = arith.constant 0 : i32
    return %arg0, %c0_i32, %c0_i32_0, %c0_i32_1 : i32, i32, i32, i32
  }
}

</mosaic_0001>

<bundles_post_ra>
// kernel: tpu_custom_call.1
= control target key start
LH: loop header
LB: loop body
LE: loop exit
PB: predicated region body
PF: predicated region fallthrough
CT: control target
= control target key end

     0   :  { %s5718_s6 = smov 1   ;;  %s5719_s10 = smov 2   ;;  %s6699_s0 = inlined_call_operand.smem [shape: u32[45], index: -1, kind: input, shape index: {}] }
   0x1   :  { %s5780_s5 = sld [smem:[%s6699_s0]]   ;;  %s5720_s14 = smov 3  }
   0x2   :  { %s5785_s9 = sld [smem:[%s6699_s0 + %s5718_s6]]   ;;  %s5721_s18 = smov 4  }
   0x3   :  { %s5790_s13 = sld [smem:[%s6699_s0 + %s5719_s10]]   ;;  %s5722_s22 = smov 5  }
   0x4   :  { %s5795_s17 = sld [smem:[%s6699_s0 + %s5720_s14]]   ;;  %s5723_s26 = smov 6  }
   0x5   :  { %s5800_s21 = sld [smem:[%s6699_s0 + %s5721_s18]]   ;;  %s5724_s30 = smov 7  }
   0x6   :  { %s5805_s25 = sld [smem:[%s6699_s0 + %s5722_s22]]   ;;  %s5725_s4 = smov 8  }
   0x7   :  { %s5810_s29 = sld [smem:[%s6699_s0 + %s5723_s26]]   ;;  %s5726_s10 = smov 9  }
   0x8   :  { %s5815_s3 = sld [smem:[%s6699_s0 + %s5724_s30]]   ;;  %s5727_s15 = smov 10  }
   0x9   :  { %s5820_s8 = sld [smem:[%s6699_s0 + %s5725_s4]]   ;;  %s5728_s20 = smov 11  }
   0xa   :  { %s5825_s14 = sld [smem:[%s6699_s0 + %s5726_s10]]   ;;  %s5729_s26 = smov 12  }
   0xb   :  { %s5830_s19 = sld [smem:[%s6699_s0 + %s5727_s15]]   ;;  %s5730_s1 = smov 13  }
   0xc   :  { %s5835_s24 = sld [smem:[%s6699_s0 + %s5728_s20]]   ;;  %s5731_s7 = smov 14  }
   0xd   :  { %6718 = sst [smem:[#allocation9_spill]] %s5810_s29  ;;  %s5732_s15 = smov 15  }
   0xe   :  { %6719 = sst [smem:[#allocation10_spill]] %s5815_s3  ;;  %s5733_s22 = smov 16  }
   0xf   :  { %6720 = sst [smem:[#allocation11_spill]] %s5820_s8  ;;  %s5734_s28 = smov 17  }
  0x10   :  { %s5840_s30 = sld [smem:[%s6699_s0 + %s5729_s26]]  }
  0x11   :  { %s5845_s6 = sld [smem:[%s6699_s0 + %s5730_s1]]  }
  0x12   :  { %s5850_s12 = sld [smem:[%s6699_s0 + %s5731_s7]]   ;;  %s5735_s7 = smov 18  }
  0x13   :  { %s5855_s20 = sld [smem:[%s6699_s0 + %s5732_s15]]   ;;  %s5736_s15 = smov 19  }
  0x14   :  { %s5860_s27 = sld [smem:[%s6699_s0 + %s5733_s22]]   ;;  %s5737_s22 = smov 20  }
  0x15   :  { %s5865_s4 = sld [smem:[%s6699_s0 + %s5734_s28]]   ;;  %s5738_s28 = smov 21  }
  0x16   :  { %s5870_s8 = sld [smem:[%s6699_s0 + %s5735_s7]]   ;;  %s5739_s7 = smov 22  }
  0x17   :  { %s5875_s29 = sld [smem:[%s6699_s0 + %s5736_s15]]   ;;  %s5740_s15 = smov 23  }
  0x18   :  { %s5880_s3 = sld [smem:[%s6699_s0 + %s5737_s22]]   ;;  %s5741_s22 = smov 24  }
  0x1a   :  { %6721 = sst [smem:[#allocation12_spill]] %s5860_s27 }
  0x1b   :  { %s5885_s27 = sld [smem:[%s6699_s0 + %s5738_s28]]   ;;  %s5742_s28 = smov 25  }
  0x1c   :  { %6722 = sst [smem:[#allocation13_spill]] %s5870_s8 }
  0x1d   :  { %6723 = sst [smem:[#allocation14_spill]] %s5875_s29 }
  0x1e   :  { %6724 = sst [smem:[#allocation15_spill]] %s5880_s3 }
  0x1f   :  { %s5890_s8 = sld [smem:[%s6699_s0 + %s5739_s7]]   ;;  %s5743_s7 = smov 26  }
  0x20   :  { %s5895_s29 = sld [smem:[%s6699_s0 + %s5740_s15]]   ;;  %s5744_s15 = smov 27  }
  0x21   :  { %6725 = sst [smem:[#allocation16_spill]] %s5885_s27 }
  0x22   :  { %s5900_s3 = sld [smem:[%s6699_s0 + %s5741_s22]]   ;;  %s5745_s22 = smov 28  }
  0x23   :  { %s5905_s27 = sld [smem:[%s6699_s0 + %s5742_s28]]   ;;  %s5746_s28 = smov 29  }
  0x25   :  { %6726 = sst [smem:[#allocation17_spill]] %s5890_s8 }
  0x26   :  { %6727 = sst [smem:[#allocation18_spill]] %s5895_s29 }
  0x27   :  { %s5910_s8 = sld [smem:[%s6699_s0 + %s5743_s7]]   ;;  %s5747_s7 = smov 30  }
  0x28   :  { %6728 = sst [smem:[#allocation19_spill]] %s5900_s3 }
  0x29   :  { %6729 = sst [smem:[#allocation20_spill]] %s5905_s27 }
  0x2a   :  { %s5915_s29 = sld [smem:[%s6699_s0 + %s5744_s15]]   ;;  %s5748_s15 = smov 31  }
  0x2b   :  { %s5920_s3 = sld [smem:[%s6699_s0 + %s5745_s22]]   ;;  %s5749_s22 = smov 32  }
  0x2c   :  { %s5925_s27 = sld [smem:[%s6699_s0 + %s5746_s28]]   ;;  %s5750_s28 = smov 33  }
  0x2d   :  { %6730 = sst [smem:[#allocation21_spill]] %s5910_s8 }
  0x2e   :  { %s5930_s8 = sld [smem:[%s6699_s0 + %s5747_s7]]   ;;  %s5751_s7 = smov 34  }
  0x30   :  { %6731 = sst [smem:[#allocation22_spill]] %s5915_s29 }
  0x31   :  { %6732 = sst [smem:[#allocation23_spill]] %s5920_s3 }
  0x32   :  { %6733 = sst [smem:[#allocation24_spill]] %s5925_s27 }
  0x33   :  { %s5935_s29 = sld [smem:[%s6699_s0 + %s5748_s15]]   ;;  %s5752_s15 = smov 35  }
  0x34   :  { %6734 = sst [smem:[#allocation25_spill]] %s5930_s8 }
  0x35   :  { %s5940_s3 = sld [smem:[%s6699_s0 + %s5749_s22]]   ;;  %s5753_s22 = smov 36  }
  0x36   :  { %s5945_s27 = sld [smem:[%s6699_s0 + %s5750_s28]]   ;;  %s5754_s28 = smov 37  }
  0x37   :  { %s5950_s8 = sld [smem:[%s6699_s0 + %s5751_s7]]   ;;  %s5755_s7 = smov 38  }
  0x39   :  { %6735 = sst [smem:[#allocation26_spill]] %s5935_s29 }
  0x3a   :  { %s5955_s29 = sld [smem:[%s6699_s0 + %s5752_s15]]   ;;  %s5756_s15 = smov 39  }
  0x3b   :  { %6736 = sst [smem:[#allocation27_spill]] %s5940_s3 }
  0x3c   :  { %6737 = sst [smem:[#allocation28_spill]] %s5945_s27 }
  0x3d   :  { %6738 = sst [smem:[#allocation29_spill]] %s5950_s8 }
  0x3e   :  { %s5960_s3 = sld [smem:[%s6699_s0 + %s5753_s22]]   ;;  %s5757_s22 = smov 40  }
  0x3f   :  { %s5965_s27 = sld [smem:[%s6699_s0 + %s5754_s28]]   ;;  %s5758_s28 = smov 41  }
  0x40   :  { %6739 = sst [smem:[#allocation30_spill]] %s5955_s29 }
  0x41   :  { %s5970_s8 = sld [smem:[%s6699_s0 + %s5755_s7]]   ;;  %s5759_s7 = smov 42  }
  0x42   :  { %s5975_s29 = sld [smem:[%s6699_s0 + %s5756_s15]]   ;;  %s5760_s15 = smov 43  }
  0x44   :  { %6740 = sst [smem:[#allocation31_spill]] %s5960_s3 }
  0x45   :  { %6741 = sst [smem:[#allocation32_spill]] %s5965_s27 }
  0x46   :  { %s5980_s3 = sld [smem:[%s6699_s0 + %s5757_s22]]   ;;  %s5761_s22 = smov 44  }
  0x47   :  { %6742 = sst [smem:[#allocation33_spill]] %s5970_s8 }
  0x48   :  { %6743 = sst [smem:[#allocation34_spill]] %s5975_s29 }
  0x49   :  { %s5985_s27 = sld [smem:[%s6699_s0 + %s5758_s28]]  }
  0x4a   :  { %s5990_s8 = sld [smem:[%s6699_s0 + %s5759_s7]]  }
  0x4b   :  { %s5995_s29 = sld [smem:[%s6699_s0 + %s5760_s15]]  }
  0x4c   :  { %6744 = sst [smem:[#allocation35_spill]] %s5980_s3 }
  0x4d   :  { %s6000_s3 = sld [smem:[%s6699_s0 + %s5761_s22]]  }
  0x4e   :  { %95 = vsyncpa [#allocation3], 0  ;;  %v190_v0 = vld [vmem:[%s5800_s21] sm:$0x3]  ;;  %vm195_vm0 = vcmask 1041408   ;;  %v5762_v2 = vmov 0.0  }
  0x4f   :  { %v189_v1 = vld [vmem:[%s5795_s17] sm:$0x3]  ;;  %4959 = vmatprep.subr.bf16.mxu0 %v5762_v2  ;;  %4965 = vmatprep.subr.bf16.mxu1 %v5762_v2  ;;  %v197_v3 = vsel %vm195_vm0, %v190_v0, 0  ;;  %v185_v6 = vld [vmem:[%s5785_s9 + $0x8] sm:$0xff]  ;;  %vm191_vm1 = vcmask 31744   ;;  %vm5763_vm2 = vmmov 0  }
  0x50   :  { %v244_v4 = vsel %vm195_vm0, %v189_v1, 0  ;;  %v184_v5 = vld [vmem:[%s5785_s9] sm:$0xff]  ;;  %4960 = vmatpush3.bf16.msra.mxu0 %v197_v3  ;;  %v183_v9 = vld [vmem:[%s5780_s5 + $0x8] sm:$0xff]  ;;  %4961 = vmatprep.mubr.msk.bf16.mxu0 %vm5763_vm2, %v5762_v2 }
  0x51   :  { %4966 = vmatpush3.bf16.msra.mxu1 %v244_v4  ;;  %v6010_v7 = vpack.c.bf16 %v185_v6, %v184_v5  ;;  %v182_v8 = vld [vmem:[%s5780_s5] sm:$0xff]  ;;  %4967 = vmatprep.mubr.msk.bf16.mxu1 %vm5763_vm2, %v5762_v2 }
  0x52   :  { %v186_v10 = vpack.c.bf16 %v183_v9, %v182_v8  ;;  %4971 = vmatprep.subr.bf16.mxu0 %v5762_v2  ;;  %4979 = vmatprep.subr.bf16.mxu1 %v5762_v2 }
  0x53   :  { %4962 = vmatmul.mubr.msk.bf16.vlgmr.msra.gmra.mrb[0].mxu0 %vm191_vm1, %v6010_v7 }
  0x54   :  { %4968 = vmatmul.mubr.msk.bf16.vlgmr.msra.gmra.mrb[0].mxu1 %vm191_vm1, %v186_v10  ;;  %4975 = vmatprep.mubr.msk.bf16.mxu0 %vm5763_vm2, %v5762_v2 }
  0x55   :  { %4983 = vmatprep.mubr.msk.bf16.mxu1 %vm5763_vm2, %v5762_v2 }
  0x56   :  { %96 = vsyncpa [#allocation5], 0  ;;  %v5483_v11 = vld [vmem:[%s5825_s14] sm:$0xff]   ;;  %v5485_v13 = vld [vmem:[%s5825_s14 + $0x8] sm:$0xff]   ;;  %vm343_vm3 = vcmask 261120   ;;  %vm500_vm4 = vcmask 64512  }
  0x57   :  { %v5484_v12 = vld [vmem:[%s5830_s19] sm:$0xff]   ;;  %4972 = vmatpush3.bf16.msra.mxu0 %v5483_v11  ;;  %v5486_v14 = vld [vmem:[%s5830_s19 + $0x8] sm:$0xff]   ;;  %s5764_s0 = smov 120   ;;  %vm620_vm5 = vcmask 1043456   ;;  %s5765_s17 = smov 8   ;;  %vm953_vm6 = vcmask 130048  }
  0x58   :  { %4980 = vmatpush3.bf16.msra.mxu1 %v5484_v12  ;;  %4973 = vmatprep.subr.bf16.mxu0 %v5762_v2  ;;  %v4586_v17 = vld [vmem:[%s5805_s25] ss:$0 sm:$0xff]  ;;  %v5488_v33 = vld [vmem:[%s5835_s24 + $0x8] sm:$0xff]   ;;  %s6745_s21 = sld [smem:[#allocation12_spill]]  ;;  %s6746_s25 = sld [smem:[#allocation13_spill]]  ;;  %vm1137_vm7 = vcmask 523264  }
  0x59   :  { %4981 = vmatprep.subr.bf16.mxu1 %v5762_v2  ;;  %v188_v27 = vld [vmem:[%s5790_s13] sm:$0xff]  ;;  %s6747_s28 = sld [smem:[#allocation14_spill]]  ;;  %s6748_s1 = sld [smem:[#allocation15_spill]] }
  0x5a   :  { %v5487_v31 = vld [vmem:[%s5835_s24] sm:$0xff]   ;;  %s6760_s2 = sld [smem:[#allocation20_spill]]  ;;  %s6761_s7 = sld [smem:[#allocation21_spill]] }
  0x5b   :  { %4974 = vmatpush3.bf16.msra.mxu0 %v5485_v13  ;;  %s6762_s10 = sld [smem:[#allocation23_spill]]  ;;  %s6763_s11 = sld [smem:[#allocation25_spill]] }
  0x5c   :  { %4982 = vmatpush3.bf16.msra.mxu1 %v5486_v14  ;;  %4987 = vmatprep.subr.bf16.mxu0 %v5762_v2  ;;  %s6764_s15 = sld [smem:[#allocation26_spill]]  ;;  %s6765_s16 = sld [smem:[#allocation27_spill]] }
  0x5d   :  { %4995 = vmatprep.subr.bf16.mxu1 %v5762_v2  ;;  %s6766_s18 = sld [smem:[#allocation35_spill]]  ;;  %s6767_s22 = sld [smem:[#allocation30_spill]] }
  0x5e   :  { %s6768_s23 = sld [smem:[#allocation32_spill]]  ;;  %s6769_s26 = sld [smem:[#allocation31_spill]] }
 0x126   :  { %v233_v15 = vpop.f32.mrb[0].mxu0 }
 0x127   :  { %v280_v16 = vpop.f32.mrb[0].mxu1  ;;  %v4963_v19 = vpop.f32.mrb[1].mxu0 }
 0x128   :  { %v281_v18 = vadd.f32 %v280_v16, %v233_v15  ;;  %v4969_v20 = vpop.f32.mrb[1].mxu1  ;;  %v236_v21 = vpop.f32.mrb[2].mxu0 }
 0x129   :  { %v283_v22 = vpop.f32.mrb[2].mxu1  ;;  %v4964_v25 = vpop.f32.mrb[3].mxu0 }
 0x12a   :  { %v294_v23 = vadd.f32 %v4586_v17, %v281_v18  ;;  %v284_v24 = vadd.f32 %v283_v22, %v236_v21  ;;  %v4970_v26 = vpop.f32.mrb[3].mxu1 }
 0x12c   :  { %v295_v28 = vadd.f32 %v4586_v17, %v284_v24  ;;  %v6037_v29 = vadd.f32 %v294_v23, %v188_v27 }
 0x12e   :  { %v6039_v30 = vadd.f32 %v295_v28, %v188_v27 }
 0x130   :  { %v330_v32 = vpack.c.bf16 %v6039_v30, %v6037_v29 }
 0x132   :  { %4976 = vmatmul.mubr.msk.bf16.vlgmr.msra.gmra.mrb[4].mxu0 %vm343_vm3, %v330_v32  ;;  %4984 = vmatmul.mubr.msk.bf16.vlgmr.msra.gmra.mrb[4].mxu1 %vm343_vm3, %v330_v32 }
 0x133   :  { %4988 = vmatpush3.bf16.msra.mxu0 %v5487_v31  ;;  %4991 = vmatprep.mubr.msk.bf16.mxu0 %vm5763_vm2, %v5762_v2 }
 0x134   :  { %4989 = vmatprep.subr.bf16.mxu0 %v5762_v2  ;;  %4997 = vmatprep.mubr.msk.bf16.mxu1 %vm5763_vm2, %v5762_v2 }
 0x137   :  { %4990 = vmatpush3.bf16.msra.mxu0 %v5488_v33 }
 0x138   :  { %5001 = vmatprep.subr.bf16.mxu0 %v5762_v2 }
 0x13a   :  { %4992 = vmatmul.mubr.msk.bf16.vlgmr.msra.gmra.mrb[8].mxu0 %vm343_vm3, %v330_v32 }
 0x13b   :  { %5003 = vmatprep.mubr.msk.bf16.mxu0 %vm5763_vm2, %v5762_v2 }
 0x205   :  { %v381_v34 = vpop.f32.mrb[4].mxu0  ;;  %v434_v35 = vpop.f32.mrb[4].mxu1 }
 0x206   :  { %v496_v36 = vpack.c.bf16 %v434_v35, %v434_v35  ;;  %v4977_v37 = vpop.f32.mrb[5].mxu0  ;;  %v4985_v38 = vpop.f32.mrb[5].mxu1  ;;  %v494_v47 = vpack.c.bf16 %v381_v34, %v381_v34 }
 0x207   :  { %v384_v39 = vpop.f32.mrb[6].mxu0  ;;  %v437_v40 = vpop.f32.mrb[6].mxu1 }
 0x208   :  { %v505_v41 = vsel %vm500_vm4, %v496_v36, 0  ;;  %v497_v42 = vpack.c.bf16 %v437_v40, %v437_v40  ;;  %v4978_v43 = vpop.f32.mrb[7].mxu0  ;;  %v4986_v44 = vpop.f32.mrb[7].mxu1  ;;  %v495_v51 = vpack.c.bf16 %v384_v39, %v384_v39 }
 0x209   :  { %4996 = vmatpush3.bf16.xpose.msra.mxu1 %v505_v41 }
 0x20a   :  { %v551_v45 = vsel %vm500_vm4, %v497_v42, 0  ;;  %766 = vrot.lane.b32.xlu1 %v497_v42, %s5764_s0  ;;  %5007 = vmatprep.subr.bf16.mxu1 %v5762_v2 }
 0x20b   :  { %5002 = vmatpush3.bf16.xpose.msra.mxu0 %v551_v45 }
 0x20c   :  { %5013 = vmatprep.subr.bf16.mxu0 %v5762_v2 }
 0x20d   :  { %v487_v46 = vpop.f32.mrb[8].mxu0 }
 0x20e   :  { %v6061_v48 = vpack.c.bf16 %v487_v46, %v487_v46  ;;  %v4993_v49 = vpop.f32.mrb[9].mxu0 }
 0x20f   :  { %v490_v50 = vpop.f32.mrb[10].mxu0 }
 0x210   :  { %v622_v52 = vsel %vm620_vm5, %v6061_v48, 0  ;;  %v6065_v53 = vpack.c.bf16 %v490_v50, %v490_v50  ;;  %v4994_v54 = vpop.f32.mrb[11].mxu0  ;;  %4998 = vmatmul.mubr.msk.bf16.vlgmr.msra.gmra.mrb[8].mxu1 %vm500_vm4, %v494_v47 }
 0x211   :  { %5008 = vmatpush3.bf16.msra.mxu1 %v622_v52  ;;  %5009 = vmatprep.mubr.msk.bf16.mxu1 %vm5763_vm2, %v5762_v2 }
 0x212   :  { %v668_v55 = vsel %vm620_vm5, %v6065_v53, 0  ;;  %5004 = vmatmul.mubr.msk.bf16.vlgmr.msra.gmra.mrb[12].mxu0 %vm500_vm4, %v495_v51  ;;  %5019 = vmatprep.subr.bf16.mxu1 %v5762_v2 }
 0x213   :  { %5014 = vmatpush3.bf16.msra.mxu0 %v668_v55  ;;  %5015 = vmatprep.mubr.msk.bf16.mxu0 %vm5763_vm2, %v5762_v2 }
 0x214   :  { %5025 = vmatprep.subr.bf16.mxu0 %v5762_v2 }
 0x27c   :  { %v767_v14 = vpop.permute.xlu1 %766 }
 0x27d   :  { %v772_v25 = vsel %vm500_vm4, %v767_v14, 0 }
 0x2e3   :  { %v541_v56 = vpop.f32.mrb[8].mxu1 }
 0x2e4   :  { %v4999_v57 = vpop.f32.mrb[9].mxu1  ;;  %v593_v58 = vsel %vm500_vm4, %v541_v56, -inf }
 0x2e5   :  { %v587_v59 = vpop.f32.mrb[12].mxu0  ;;  %594 = vmax.xlane.f32.xlu0 %v593_v58  ;;  %v544_v60 = vpop.f32.mrb[10].mxu1 }
 0x2e6   :  { %v5000_v61 = vpop.f32.mrb[11].mxu1  ;;  %v5005_v62 = vpop.f32.mrb[13].mxu0  ;;  %v596_v1 = vsel %vm500_vm4, %v587_v59, -inf }
 0x2e7   :  { %v590_v63 = vpop.f32.mrb[14].mxu0 }
 0x2e8   :  { %v5006_v0 = vpop.f32.mrb[15].mxu0 }
 0x2e9   :  { %597 = vmax.xlane.f32.xlu0 %v596_v1 }
 0x2ff   :  { %714 = vrot.lane.b32.xlu0 %v496_v36, %s5764_s0 }
 0x372   :  { %v595_v3 = vpop.xlane.xlu0 %594 }
 0x373   :  { %v599_v4 = vsub.f32 %v541_v56, %v595_v3 }
 0x375   :  { %v601_v5 = vmul.f32 1.442695, %v599_v4 }
 0x376   :  { %v598_v6 = vpop.xlane.xlu0 %597 }
 0x377   :  { %5539 = vpow2.f32 %v601_v5  ;;  %v600_v8 = vsub.f32 %v587_v59, %v598_v6 }
 0x379   :  { %v603_v9 = vmul.f32 1.442695, %v600_v8  ;;  %v5489_v8 = vld [vmem:[%s5840_s30] sm:$0xff]  }
 0x37a   :  { %v715_v19 = vpop.permute.xlu0 %714 }
 0x37b   :  { %5541 = vpow2.f32 %v603_v9  ;;  %v720_v22 = vsel %vm500_vm4, %v715_v19, 0 }
 0x381   :  { %v5540_v10 = vpop.eup %5539 }
 0x382   :  { %v605_v11 = vsel %vm500_vm4, %v5540_v10, 0.0 }
 0x383   :  { %606 = vadd.xlane.f32.xlu1 %v605_v11 }
 0x385   :  { %v5542_v12 = vpop.eup %5541 }
 0x386   :  { %v608_v13 = vsel %vm500_vm4, %v5542_v12, 0.0 }
 0x387   :  { %609 = vadd.xlane.f32.xlu1 %v608_v13 }
 0x398   :  { %711 = vrot.lane.b32.xlu1 %v494_v47, %s5764_s0 }
 0x39c   :  { %763 = vrot.lane.b32.xlu1 %v495_v51, %s5764_s0 }
 0x410   :  { %v607_v15 = vpop.xlane.xlu1 %606 }
 0x411   :  { %5543 = vrcp.f32 %v607_v15 }
 0x414   :  { %v610_v16 = vpop.xlane.xlu1 %609 }
 0x415   :  { %5545 = vrcp.f32 %v610_v16 }
 0x418   :  { %v712_v26 = vpop.permute.xlu1 %711 }
 0x41b   :  { %v5544_v17 = vpop.eup %5543 }
 0x41c   :  { %v613_v18 = vmul.f32 %v5544_v17, %v5540_v10  ;;  %v764_v27 = vpop.permute.xlu1 %763 }
 0x41e   :  { %v615_v20 = vpack.c.bf16 %v613_v18, %v613_v18 }
 0x41f   :  { %v5546_v21 = vpop.eup %5545 }
 0x420   :  { %v614_v23 = vmul.f32 %v5546_v21, %v5542_v12  ;;  %5010 = vmatmul.mubr.msk.bf16.vlgmr.msra.gmra.mrb[12].mxu1 %vm500_vm4, %v615_v20 }
 0x421   :  { %5020 = vmatpush3.bf16.xpose.msra.mxu1 %v720_v22  ;;  %5021 = vmatprep.mubr.msk.bf16.mxu1 %vm5763_vm2, %v5762_v2 }
 0x422   :  { %v616_v24 = vpack.c.bf16 %v614_v23, %v614_v23  ;;  %5031 = vmatprep.subr.bf16.mxu1 %v5762_v2 }
 0x424   :  { %5016 = vmatmul.mubr.msk.bf16.vlgmr.msra.gmra.mrb[16].mxu0 %vm500_vm4, %v616_v24 }
 0x425   :  { %5026 = vmatpush3.bf16.xpose.msra.mxu0 %v772_v25  ;;  %5027 = vmatprep.mubr.msk.bf16.mxu0 %vm5763_vm2, %v5762_v2 }
 0x426   :  { %5037 = vmatprep.subr.bf16.mxu0 %v5762_v2 }
 0x428   :  { %5022 = vmatmul.mubr.msk.bf16.vlgmr.msra.gmra.mrb[16].mxu1 %vm500_vm4, %v712_v26 }
 0x429   :  { %5033 = vmatprep.mubr.msk.bf16.mxu1 %vm5763_vm2, %v5762_v2 }
 0x42c   :  { %5028 = vmatmul.mubr.msk.bf16.vlgmr.msra.gmra.mrb[20].mxu0 %vm500_vm4, %v764_v27 }
 0x42d   :  { %5039 = vmatprep.mubr.msk.bf16.mxu0 %vm5763_vm2, %v5762_v2 }
 0x4f3   :  { %v6100_v28 = vpop.f32.mrb[12].mxu1 }
 0x4f4   :  { %v5011_v31 = vpop.f32.mrb[13].mxu1 }
 0x4f5   :  { %v661_v32 = vpop.f32.mrb[14].mxu1 }
 0x4f6   :  { %v5012_v33 = vpop.f32.mrb[15].mxu1 }
 0x4f7   :  { %v6102_v34 = vpop.f32.mrb[16].mxu0 }
 0x4f8   :  { %v5017_v35 = vpop.f32.mrb[17].mxu0 }
 0x4f9   :  { %v707_v36 = vpop.f32.mrb[18].mxu0 }
 0x4fa   :  { %v5018_v37 = vpop.f32.mrb[19].mxu0 }
 0x4fb   :  { %v756_v38 = vpop.f32.mrb[16].mxu1 }
 0x4fc   :  { %v5023_v39 = vpop.f32.mrb[17].mxu1  ;;  %v814_v40 = vsel %vm500_vm4, %v756_v38, -inf }
 0x4fd   :  { %815 = vmax.xlane.f32.xlu0 %v814_v40  ;;  %v759_v41 = vpop.f32.mrb[18].mxu1 }
 0x4fe   :  { %v5024_v42 = vpop.f32.mrb[19].mxu1 }
 0x4ff   :  { %v808_v43 = vpop.f32.mrb[20].mxu0  ;;  %v5490_v42 = vld [vmem:[%s5855_s20] sm:$0xff]  }
 0x500   :  { %v5029_v44 = vpop.f32.mrb[21].mxu0  ;;  %v817_v45 = vsel %vm500_vm4, %v808_v43, -inf }
 0x501   :  { %818 = vmax.xlane.f32.xlu1 %v817_v45  ;;  %v811_v46 = vpop.f32.mrb[22].mxu0  ;;  %v5492_v44 = vld [vmem:[%s5865_s4] sm:$0xff]   ;;  %v5493_v45 = vld [vmem:[%s5865_s4 + $0x8] sm:$0xff]  }
 0x502   :  { %v5030_v47 = vpop.f32.mrb[23].mxu0 }
 0x512   :  { %888 = vrot.lane.b32.xlu1 %v6065_v53, %s5764_s0 }
 0x58a   :  { %v816_v49 = vpop.xlane.xlu0 %815 }
 0x58b   :  { %v820_v50 = vsub.f32 %v756_v38, %v816_v49 }
 0x58d   :  { %v822_v51 = vmul.f32 1.442695, %v820_v50 }
 0x58e   :  { %v819_v52 = vpop.xlane.xlu1 %818 }
 0x58f   :  { %5547 = vpow2.f32 %v822_v51  ;;  %v821_v54 = vsub.f32 %v808_v43, %v819_v52  ;;  %v5491_v43 = vld [vmem:[%s5855_s20 + $0x8] sm:$0xff]  }
 0x591   :  { %v824_v55 = vmul.f32 1.442695, %v821_v54 }
 0x592   :  { %v889_v56 = vpop.permute.xlu1 %888 }
 0x593   :  { %5549 = vpow2.f32 %v824_v55  ;;  %v894_v57 = vsel %vm620_vm5, %v889_v56, 0  ;;  %v4606_v56 = vld [vmem:[%s5845_s6] ss:$0 sm:$0xff] }
 0x594   :  { %5038 = vmatpush3.bf16.msra.mxu0 %v894_v57 }
 0x595   :  { %5049 = vmatprep.subr.bf16.mxu0 %v5762_v2 }
 0x599   :  { %v5548_v58 = vpop.eup %5547 }
 0x59a   :  { %v826_v59 = vsel %vm500_vm4, %v5548_v58, 0.0 }
 0x59b   :  { %827 = vadd.xlane.f32.xlu0 %v826_v59 }
 0x59d   :  { %v5550_v60 = vpop.eup %5549 }
 0x59e   :  { %v829_v53 = vsel %vm500_vm4, %v5550_v60, 0.0 }
 0x59f   :  { %830 = vadd.xlane.f32.xlu0 %v829_v53 }
 0x5b5   :  { %839 = vrot.lane.b32.xlu0 %v6061_v48, %s5764_s0 }
 0x628   :  { %v828_v61 = vpop.xlane.xlu0 %827 }
 0x629   :  { %5551 = vrcp.f32 %v828_v61 }
 0x62c   :  { %v831_v62 = vpop.xlane.xlu0 %830 }
 0x62d   :  { %5553 = vrcp.f32 %v831_v62 }
 0x630   :  { %v840_v63 = vpop.permute.xlu0 %839 }
 0x631   :  { %v845_v0 = vsel %vm620_vm5, %v840_v63, 0 }
 0x632   :  { %5032 = vmatpush3.bf16.msra.mxu1 %v845_v0  ;;  %v5494_v0 = vld [vmem:[%s5865_s4 + $0x10] sm:$0xff]  }
 0x633   :  { %v5552_v1 = vpop.eup %5551  ;;  %5043 = vmatprep.subr.bf16.mxu1 %v5762_v2 }
 0x634   :  { %v834_v3 = vmul.f32 %v5552_v1, %v5548_v58  ;;  %v5495_v1 = vld [vmem:[%s5865_s4 + $0x18] sm:$0xff]  }
 0x636   :  { %v836_v4 = vpack.c.bf16 %v834_v3, %v834_v3  ;;  %v4608_v3 = vld [vmem:[%s6745_s21] ss:$0 sm:$0xff] }
 0x637   :  { %v5554_v5 = vpop.eup %5553 }
 0x638   :  { %v835_v6 = vmul.f32 %v5554_v5, %v5550_v60  ;;  %5034 = vmatmul.mubr.msk.bf16.vlgmr.msra.gmra.mrb[20].mxu1 %vm500_vm4, %v836_v4  ;;  %v4607_v60 = vld [vmem:[%s5850_s12] ss:$0 sm:$0xff] }
 0x639   :  { %5045 = vmatprep.mubr.msk.bf16.mxu1 %vm5763_vm2, %v5762_v2  ;;  %5044 = vmatpush3.bf16.msra.mxu1 %v5489_v8 }
 0x63a   :  { %v837_v48 = vpack.c.bf16 %v835_v6, %v835_v6  ;;  %5057 = vmatprep.subr.bf16.mxu1 %v5762_v2 }
 0x63c   :  { %5040 = vmatmul.mubr.msk.bf16.vlgmr.msra.gmra.mrb[24].mxu0 %vm500_vm4, %v837_v48 }
 0x63d   :  { %5053 = vmatprep.mubr.msk.bf16.mxu0 %vm5763_vm2, %v5762_v2  ;;  %5050 = vmatpush3.bf16.msra.mxu0 %v5490_v42 }
 0x63e   :  { %5051 = vmatprep.subr.bf16.mxu0 %v5762_v2 }
 0x641   :  { %5052 = vmatpush3.bf16.msra.mxu0 %v5491_v43 }
 0x642   :  { %5069 = vmatprep.subr.bf16.mxu0 %v5762_v2 }
 0x70b   :  { %v881_v9 = vpop.f32.mrb[20].mxu1 }
 0x70c   :  { %v5035_v10 = vpop.f32.mrb[21].mxu1 }
 0x70d   :  { %v884_v11 = vpop.f32.mrb[22].mxu1 }
 0x70e   :  { %v5036_v12 = vpop.f32.mrb[23].mxu1 }
 0x70f   :  { %v930_v13 = vpop.f32.mrb[24].mxu0 }
 0x710   :  { %v5463_v14 = vpack.i.bf16 %v930_v13, %v881_v9  ;;  %v5041_v15 = vpop.f32.mrb[25].mxu0  ;;  %v4612_v13 = vld [vmem:[%s6746_s25] ss:$0 sm:$0xff] }
 0x711   :  { %v933_v16 = vpop.f32.mrb[26].mxu0 }
 0x712   :  { %v5042_v17 = vpop.f32.mrb[27].mxu0  ;;  %5464 = vrot.lane.b32.xlu1 %v5463_v14, %s5765_s17 }
 0x784   :  { %v5465_v18 = vpop.permute.xlu1 %5464 }
 0x785   :  { %v5467_v19 = vunpack.i.h.bf16 %v5465_v18  ;;  %v5466_v20 = vunpack.i.l.bf16 %v5465_v18 }
 0x787   :  { %v945_v21 = vsel %vm500_vm4, %v6102_v34, %v5467_v19  ;;  %v944_v22 = vsel %vm500_vm4, %v6100_v28, %v5466_v20 }
 0x788   :  { %v946_v23 = vpack.c.bf16 %v945_v21, %v944_v22 }
 0x78a   :  { %5046 = vmatmul.mubr.msk.bf16.vlgmr.msra.gmra.mrb[24].mxu1 %vm953_vm6, %v946_v23 }
 0x78b   :  { %5065 = vmatprep.mubr.msk.bf16.mxu1 %vm5763_vm2, %v5762_v2  ;;  %5058 = vmatpush3.bf16.msra.mxu1 %v5492_v44 }
 0x78c   :  { %5059 = vmatprep.subr.bf16.mxu1 %v5762_v2 }
 0x78f   :  { %5060 = vmatpush3.bf16.msra.mxu1 %v5493_v45  ;;  %v4618_v45 = vld [vmem:[%s6747_s28] ss:$0 sm:$0xff] }
 0x790   :  { %5061 = vmatprep.subr.bf16.mxu1 %v5762_v2 }
 0x793   :  { %5062 = vmatpush3.bf16.msra.mxu1 %v5494_v0 }
 0x794   :  { %5063 = vmatprep.subr.bf16.mxu1 %v5762_v2 }
 0x797   :  { %5064 = vmatpush3.bf16.msra.mxu1 %v5495_v1 }
 0x798   :  { %5085 = vmatprep.subr.bf16.mxu1 %v5762_v2 }
 0x85d   :  { %v991_v24 = vpop.f32.mrb[24].mxu1 }
 0x85e   :  { %v992_v25 = vadd.f32 %v991_v24, %v6037_v29  ;;  %v5047_v26 = vpop.f32.mrb[25].mxu1 }
 0x85f   :  { %v994_v27 = vpop.f32.mrb[26].mxu1 }
 0x860   :  { %v995_v31 = vadd.f32 %v994_v27, %v6039_v30  ;;  %v5048_v32 = vpop.f32.mrb[27].mxu1  ;;  %v998_v33 = vsel %vm343_vm3, %v992_v25, 0.0 }
 0x861   :  { %999 = vadd.xlane.f32.xlu1 %v998_v33 }
 0x862   :  { %v1001_v28 = vsel %vm343_vm3, %v995_v31, 0.0 }
 0x863   :  { %1002 = vadd.xlane.f32.xlu0 %v1001_v28 }
 0x8ee   :  { %v1000_v34 = vpop.xlane.xlu1 %999 }
 0x8ef   :  { %v1005_v35 = vmul.f32 0.03125, %v1000_v34 }
 0x8f0   :  { %v1003_v36 = vpop.xlane.xlu0 %1002 }
 0x8f1   :  { %v1007_v37 = vsub.f32 %v992_v25, %v1005_v35  ;;  %v1006_v38 = vmul.f32 0.03125, %v1003_v36  ;;  %v5496_v36 = vld [vmem:[%s5825_s14 + $0x10] sm:$0xff]  }
 0x8f3   :  { %v1008_v29 = vsub.f32 %v995_v31, %v1006_v38  ;;  %v1009_v39 = vmul.f32 %v1007_v37, %v1007_v37  ;;  %v5498_v38 = vld [vmem:[%s5825_s14 + $0x18] sm:$0xff]   ;;  %s6749_s14 = sld [smem:[#allocation28_spill]] }
 0x8f5   :  { %v1011_v30 = vsel %vm343_vm3, %v1009_v39, 0.0  ;;  %v1010_v40 = vmul.f32 %v1008_v29, %v1008_v29 }
 0x8f6   :  { %1012 = vadd.xlane.f32.xlu0 %v1011_v30 }
 0x8f7   :  { %v1014_v41 = vsel %vm343_vm3, %v1010_v40, 0.0 }
 0x8fa   :  { %1015 = vadd.xlane.f32.xlu0 %v1014_v41 }
 0x983   :  { %v1013_v46 = vpop.xlane.xlu0 %1012 }
 0x984   :  { %v1017_v47 = vmul.f32 0.03125, %v1013_v46 }
 0x986   :  { %v1019_v49 = vadd.f32 1e-06, %v1017_v47 }
 0x987   :  { %v1016_v50 = vpop.xlane.xlu0 %1015 }
 0x988   :  { %5555 = vrsqrt.f32 %v1019_v49  ;;  %v1018_v51 = vmul.f32 0.03125, %v1016_v50 }
 0x98a   :  { %v1020_v52 = vadd.f32 1e-06, %v1018_v51  ;;  %v4619_v51 = vld [vmem:[%s6748_s1] ss:$0 sm:$0xff] }
 0x98c   :  { %5557 = vrsqrt.f32 %v1020_v52 }
 0x992   :  { %v5556_v54 = vpop.eup %5555 }
 0x993   :  { %v1023_v55 = vmul.f32 %v5556_v54, %v1007_v37  ;;  %v5497_v37 = vld [vmem:[%s5835_s24 + $0x10] sm:$0xff]  }
 0x995   :  { %v1031_v58 = vmul.f32 %v4606_v56, %v1023_v55 }
 0x996   :  { %v5558_v57 = vpop.eup %5557 }
 0x997   :  { %v1024_v59 = vmul.f32 %v5558_v57, %v1008_v29  ;;  %v1039_v61 = vadd.f32 %v4607_v60, %v1031_v58  ;;  %v5499_v29 = vld [vmem:[%s5835_s24 + $0x18] sm:$0xff]   ;;  %s6751_s24 = sld [smem:[#allocation9_spill]] }
 0x998   :  { %v5501_v58 = vld [vmem:[%s5830_s19 + $0x18] sm:$0xff]  }
 0x999   :  { %v1032_v53 = vmul.f32 %v4606_v56, %v1024_v59  ;;  %v5500_v56 = vld [vmem:[%s5830_s19 + $0x10] sm:$0xff]   ;;  %s6750_s19 = sld [smem:[#allocation10_spill]] }
 0x99b   :  { %v1040_v62 = vadd.f32 %v4607_v60, %v1032_v53 }
 0x99d   :  { %v1041_v63 = vpack.c.bf16 %v1040_v62, %v1039_v61 }
 0x99f   :  { %5054 = vmatmul.mubr.msk.bf16.vlgmr.msra.gmra.mrb[28].mxu0 %vm343_vm3, %v1041_v63 }
 0x9a0   :  { %5073 = vmatprep.mubr.msk.bf16.mxu0 %vm5763_vm2, %v5762_v2  ;;  %5070 = vmatpush3.bf16.msra.mxu0 %v5496_v36 }
 0x9a1   :  { %5071 = vmatprep.subr.bf16.mxu0 %v5762_v2 }
 0x9a4   :  { %5072 = vmatpush3.bf16.msra.mxu0 %v5498_v38 }
 0x9a5   :  { %5077 = vmatprep.subr.bf16.mxu0 %v5762_v2 }
 0xa72   :  { %v1097_v4 = vpop.f32.mrb[28].mxu0 }
 0xa73   :  { %v1098_v5 = vadd.f32 %v4608_v3, %v1097_v4  ;;  %v5055_v6 = vpop.f32.mrb[29].mxu0 }
 0xa74   :  { %v1100_v48 = vpop.f32.mrb[30].mxu0 }
 0xa75   :  { %v1101_v8 = vadd.f32 %v4608_v3, %v1100_v48  ;;  %v5056_v9 = vpop.f32.mrb[31].mxu0  ;;  %v1104_v10 = vmax.f32 %v1098_v5, 0.0 }
 0xa77   :  { %v1105_v11 = vmax.f32 %v1101_v8, 0.0 }
 0xa79   :  { %v1106_v12 = vpack.c.bf16 %v1105_v11, %v1104_v10 }
 0xa7b   :  { %5066 = vmatmul.mubr.msk.bf16.vlgmr.msra.gmra.mrb[28].mxu1 %vm1137_vm7, %v1106_v12 }
 0xa7c   :  { %5089 = vmatprep.mubr.msk.bf16.mxu1 %vm5763_vm2, %v5762_v2  ;;  %5086 = vmatpush3.bf16.msra.mxu1 %v5497_v37 }
 0xa7d   :  { %5087 = vmatprep.subr.bf16.mxu1 %v5762_v2 }
 0xa80   :  { %5088 = vmatpush3.bf16.msra.mxu1 %v5499_v29 }
 0xa81   :  { %5099 = vmatprep.subr.bf16.mxu1 %v5762_v2 }
 0xb4e   :  { %v1175_v14 = vpop.f32.mrb[28].mxu1 }
 0xb4f   :  { %v1176_v15 = vadd.f32 %v4612_v13, %v1175_v14  ;;  %v5067_v16 = vpop.f32.mrb[29].mxu1 }
 0xb50   :  { %v1178_v17 = vpop.f32.mrb[30].mxu1 }
 0xb51   :  { %v1179_v18 = vadd.f32 %v4612_v13, %v1178_v17  ;;  %v5068_v19 = vpop.f32.mrb[31].mxu1  ;;  %v1182_v20 = vadd.f32 %v1176_v15, %v1039_v61 }
 0xb53   :  { %v1184_v21 = vsel %vm343_vm3, %v1182_v20, 0.0  ;;  %v1183_v22 = vadd.f32 %v1179_v18, %v1040_v62 }
 0xb54   :  { %1185 = vadd.xlane.f32.xlu1 %v1184_v21 }
 0xb55   :  { %v1187_v23 = vsel %vm343_vm3, %v1183_v22, 0.0 }
 0xb56   :  { %1188 = vadd.xlane.f32.xlu0 %v1187_v23 }
 0xbe1   :  { %v1186_v24 = vpop.xlane.xlu1 %1185 }
 0xbe2   :  { %v1190_v25 = vmul.f32 0.03125, %v1186_v24 }
 0xbe3   :  { %v1189_v26 = vpop.xlane.xlu0 %1188 }
 0xbe4   :  { %v1192_v27 = vsub.f32 %v1182_v20, %v1190_v25  ;;  %v1191_v31 = vmul.f32 0.03125, %v1189_v26 }
 0xbe6   :  { %v1193_v32 = vsub.f32 %v1183_v22, %v1191_v31  ;;  %v1194_v33 = vmul.f32 %v1192_v27, %v1192_v27 }
 0xbe8   :  { %v1196_v28 = vsel %vm343_vm3, %v1194_v33, 0.0  ;;  %v1195_v34 = vmul.f32 %v1193_v32, %v1193_v32 }
 0xbe9   :  { %1197 = vadd.xlane.f32.xlu1 %v1196_v28 }
 0xbea   :  { %v1199_v35 = vsel %vm343_vm3, %v1195_v34, 0.0 }
 0xbeb   :  { %1200 = vadd.xlane.f32.xlu0 %v1199_v35 }
 0xc76   :  { %v1198_v39 = vpop.xlane.xlu1 %1197 }
 0xc77   :  { %v1202_v30 = vmul.f32 0.03125, %v1198_v39 }
 0xc78   :  { %v1201_v40 = vpop.xlane.xlu0 %1200 }
 0xc79   :  { %v1204_v41 = vadd.f32 1e-06, %v1202_v30  ;;  %v1203_v42 = vmul.f32 0.03125, %v1201_v40 }
 0xc7b   :  { %5559 = vrsqrt.f32 %v1204_v41  ;;  %v1205_v43 = vadd.f32 1e-06, %v1203_v42 }
 0xc7d   :  { %5561 = vrsqrt.f32 %v1205_v43 }
 0xc85   :  { %v5560_v44 = vpop.eup %5559 }
 0xc86   :  { %v1208_v46 = vmul.f32 %v5560_v44, %v1192_v27 }
 0xc87   :  { %v5562_v47 = vpop.eup %5561 }
 0xc88   :  { %v1216_v49 = vmul.f32 %v4618_v45, %v1208_v46  ;;  %v1209_v50 = vmul.f32 %v5562_v47, %v1193_v32 }
 0xc8a   :  { %v1217_v52 = vmul.f32 %v4618_v45, %v1209_v50  ;;  %v6174_v54 = vadd.f32 %v4619_v51, %v1216_v49 }
 0xc8c   :  { %v6176_v55 = vadd.f32 %v4619_v51, %v1217_v52 }
 0xc8e   :  { %v1270_v57 = vpack.c.bf16 %v6176_v55, %v6174_v54 }
 0xc90   :  { %5074 = vmatmul.mubr.msk.bf16.vlgmr.msra.gmra.mrb[32].mxu0 %vm343_vm3, %v1270_v57  ;;  %5090 = vmatmul.mubr.msk.bf16.vlgmr.msra.gmra.mrb[32].mxu1 %vm343_vm3, %v1270_v57 }
 0xc91   :  { %5078 = vmatpush3.bf16.msra.mxu0 %v5500_v56  ;;  %5081 = vmatprep.mubr.msk.bf16.mxu0 %vm5763_vm2, %v5762_v2 }
 0xc92   :  { %5079 = vmatprep.subr.bf16.mxu0 %v5762_v2  ;;  %5101 = vmatprep.mubr.msk.bf16.mxu1 %vm5763_vm2, %v5762_v2 }
 0xc95   :  { %5080 = vmatpush3.bf16.msra.mxu0 %v5501_v58 }
 0xc96   :  { %5093 = vmatprep.subr.bf16.mxu0 %v5762_v2 }
 0xc98   :  { %5082 = vmatmul.mubr.msk.bf16.vlgmr.msra.gmra.mrb[36].mxu0 %vm343_vm3, %v1270_v57 }
 0xc99   :  { %5095 = vmatprep.mubr.msk.bf16.mxu0 %vm5763_vm2, %v5762_v2 }
 0xd63   :  { %v1320_v59 = vpop.f32.mrb[32].mxu0  ;;  %v1426_v60 = vpop.f32.mrb[32].mxu1 }
 0xd64   :  { %v5075_v53 = vpop.f32.mrb[33].mxu0  ;;  %v5091_v61 = vpop.f32.mrb[33].mxu1  ;;  %v6196_v11 = vpack.c.bf16 %v1426_v60, %v1426_v60  ;;  %v1433_v12 = vpack.c.bf16 %v1320_v59, %v1320_v59 }
 0xd65   :  { %v1323_v62 = vpop.f32.mrb[34].mxu0  ;;  %v1429_v63 = vpop.f32.mrb[34].mxu1 }
 0xd66   :  { %v5076_v0 = vpop.f32.mrb[35].mxu0  ;;  %v5092_v1 = vpop.f32.mrb[35].mxu1  ;;  %v6199_v13 = vpack.c.bf16 %v1429_v63, %v1429_v63  ;;  %v1559_v14 = vsel %vm620_vm5, %v6196_v11, 0  ;;  %v1434_v15 = vpack.c.bf16 %v1323_v62, %v1323_v62 }
 0xd68   :  { %v1605_v16 = vsel %vm620_vm5, %v6199_v13, 0 }
 0xd6b   :  { %v1373_v3 = vpop.f32.mrb[36].mxu0 }
 0xd6c   :  { %v1435_v4 = vpack.c.bf16 %v1373_v3, %v1373_v3  ;;  %v5083_v5 = vpop.f32.mrb[37].mxu0 }
 0xd6d   :  { %v1376_v6 = vpop.f32.mrb[38].mxu0 }
 0xd6e   :  { %v1443_v48 = vsel %vm500_vm4, %v1435_v4, 0  ;;  %v1436_v8 = vpack.c.bf16 %v1376_v6, %v1376_v6  ;;  %v5084_v9 = vpop.f32.mrb[39].mxu0 }
 0xd6f   :  { %5094 = vmatpush3.bf16.xpose.msra.mxu0 %v1443_v48 }
 0xd70   :  { %v1489_v10 = vsel %vm500_vm4, %v1436_v8, 0  ;;  %5105 = vmatprep.subr.bf16.mxu0 %v5762_v2 }
 0xd71   :  { %5100 = vmatpush3.bf16.xpose.msra.mxu1 %v1489_v10 }
 0xd72   :  { %5111 = vmatprep.subr.bf16.mxu1 %v5762_v2 }
 0xd76   :  { %5096 = vmatmul.mubr.msk.bf16.vlgmr.msra.gmra.mrb[40].mxu0 %vm500_vm4, %v1433_v12 }
 0xd77   :  { %5106 = vmatpush3.bf16.msra.mxu0 %v1559_v14  ;;  %5107 = vmatprep.mubr.msk.bf16.mxu0 %vm5763_vm2, %v5762_v2 }
 0xd78   :  { %5102 = vmatmul.mubr.msk.bf16.vlgmr.msra.gmra.mrb[36].mxu1 %vm500_vm4, %v1434_v15  ;;  %5117 = vmatprep.subr.bf16.mxu0 %v5762_v2 }
 0xd79   :  { %5112 = vmatpush3.bf16.msra.mxu1 %v1605_v16  ;;  %5113 = vmatprep.mubr.msk.bf16.mxu1 %vm5763_vm2, %v5762_v2 }
 0xd7a   :  { %5123 = vmatprep.subr.bf16.mxu1 %v5762_v2 }
 0xe49   :  { %v1479_v17 = vpop.f32.mrb[40].mxu0 }
 0xe4a   :  { %v5097_v18 = vpop.f32.mrb[41].mxu0  ;;  %v1531_v19 = vsel %vm500_vm4, %v1479_v17, -inf }
 0xe4b   :  { %1532 = vmax.xlane.f32.xlu1 %v1531_v19  ;;  %v1482_v20 = vpop.f32.mrb[42].mxu0  ;;  %v1525_v21 = vpop.f32.mrb[36].mxu1 }
 0xe4c   :  { %v5098_v22 = vpop.f32.mrb[43].mxu0  ;;  %v5103_v23 = vpop.f32.mrb[37].mxu1  ;;  %v1534_v24 = vsel %vm500_vm4, %v1525_v21, -inf }
 0xe4d   :  { %1535 = vmax.xlane.f32.xlu0 %v1534_v24  ;;  %v1528_v25 = vpop.f32.mrb[38].mxu1 }
 0xe4e   :  { %v5104_v26 = vpop.f32.mrb[39].mxu1 }
 0xe5c   :  { %1651 = vrot.lane.b32.xlu1 %v1435_v4, %s5764_s0 }
 0xed8   :  { %v1533_v27 = vpop.xlane.xlu1 %1532 }
 0xed9   :  { %v1537_v31 = vsub.f32 %v1479_v17, %v1533_v27 }
 0xeda   :  { %v1536_v32 = vpop.xlane.xlu0 %1535 }
 0xedb   :  { %v1539_v33 = vmul.f32 1.442695, %v1537_v31  ;;  %v1538_v28 = vsub.f32 %v1525_v21, %v1536_v32 }
 0xedc   :  { %v1652_v29 = vpop.permute.xlu1 %1651 }
 0xedd   :  { %5563 = vpow2.f32 %v1539_v33  ;;  %v1541_v34 = vmul.f32 1.442695, %v1538_v28  ;;  %v1657_v46 = vsel %vm500_vm4, %v1652_v29, 0  ;;  %v5502_v28 = vld [vmem:[%s5840_s30 + $0x8] sm:$0xff]   ;;  %s6752_s30 = sld [smem:[#allocation29_spill]] }
 0xedf   :  { %5565 = vpow2.f32 %v1541_v34 }
 0xee7   :  { %v5564_v35 = vpop.eup %5563 }
 0xee8   :  { %v1543_v36 = vsel %vm500_vm4, %v5564_v35, 0.0 }
 0xee9   :  { %v5566_v37 = vpop.eup %5565  ;;  %1544 = vadd.xlane.f32.xlu1 %v1543_v36 }
 0xeea   :  { %v1546_v38 = vsel %vm500_vm4, %v5566_v37, 0.0 }
 0xeeb   :  { %1547 = vadd.xlane.f32.xlu0 %v1546_v38 }
 0xefa   :  { %1648 = vrot.lane.b32.xlu1 %v1433_v12, %s5764_s0 }
 0xefe   :  { %1700 = vrot.lane.b32.xlu1 %v1434_v15, %s5764_s0 }
 0xf01   :  { %1703 = vrot.lane.b32.xlu0 %v1436_v8, %s5764_s0 }
 0xf76   :  { %v1545_v39 = vpop.xlane.xlu1 %1544 }
 0xf77   :  { %5567 = vrcp.f32 %v1545_v39 }
 0xf78   :  { %v1548_v30 = vpop.xlane.xlu0 %1547 }
 0xf79   :  { %5569 = vrcp.f32 %v1548_v30 }
 0xf7a   :  { %v1649_v50 = vpop.permute.xlu1 %1648 }
 0xf7c   :  { %v1704_v45 = vpop.permute.xlu0 %1703 }
 0xf7d   :  { %v1709_v49 = vsel %vm500_vm4, %v1704_v45, 0 }
 0xf7e   :  { %v1701_v51 = vpop.permute.xlu1 %1700 }
 0xf81   :  { %v5568_v40 = vpop.eup %5567 }
 0xf82   :  { %v1551_v41 = vmul.f32 %v5568_v40, %v5564_v35 }
 0xf83   :  { %v5570_v42 = vpop.eup %5569 }
 0xf84   :  { %2160 = vst.msk [vmem:[#allocation4] sm:$0xff] %vm500_vm4, %v1551_v41  ;;  %v1552_v43 = vmul.f32 %v5570_v42, %v5566_v37  ;;  %v1553_v44 = vpack.c.bf16 %v1551_v41, %v1551_v41 }
 0xf86   :  { %2162 = vst.msk [vmem:[#allocation4 + $0x10] sm:$0xff] %vm500_vm4, %v1552_v43  ;;  %5108 = vmatmul.mubr.msk.bf16.vlgmr.msra.gmra.mrb[44].mxu0 %vm500_vm4, %v1553_v44  ;;  %v1554_v47 = vpack.c.bf16 %v1552_v43, %v1552_v43 }
 0xf87   :  { %5118 = vmatpush3.bf16.xpose.msra.mxu0 %v1657_v46  ;;  %5119 = vmatprep.mubr.msk.bf16.mxu0 %vm5763_vm2, %v5762_v2 }
 0xf88   :  { %5114 = vmatmul.mubr.msk.bf16.vlgmr.msra.gmra.mrb[40].mxu1 %vm500_vm4, %v1554_v47  ;;  %5129 = vmatprep.subr.bf16.mxu0 %v5762_v2 }
 0xf89   :  { %5124 = vmatpush3.bf16.xpose.msra.mxu1 %v1709_v49  ;;  %5125 = vmatprep.mubr.msk.bf16.mxu1 %vm5763_vm2, %v5762_v2 }
 0xf8a   :  { %5135 = vmatprep.subr.bf16.mxu1 %v5762_v2 }
 0xf8e   :  { %5120 = vmatmul.mubr.msk.bf16.vlgmr.msra.gmra.mrb[48].mxu0 %vm500_vm4, %v1649_v50 }
 0xf8f   :  { %5131 = vmatprep.mubr.msk.bf16.mxu0 %vm5763_vm2, %v5762_v2 }
 0xf90   :  { %5126 = vmatmul.mubr.msk.bf16.vlgmr.msra.gmra.mrb[44].mxu1 %vm500_vm4, %v1701_v51 }
 0xf91   :  { %5137 = vmatprep.mubr.msk.bf16.mxu1 %vm5763_vm2, %v5762_v2 }
0x1059   :  { %v6239_v52 = vpop.f32.mrb[44].mxu0 }
0x105a   :  { %v5109_v56 = vpop.f32.mrb[45].mxu0 }
0x105b   :  { %v1598_v57 = vpop.f32.mrb[46].mxu0  ;;  %v6241_v58 = vpop.f32.mrb[40].mxu1 }
0x105c   :  { %v5110_v59 = vpop.f32.mrb[47].mxu0  ;;  %v5115_v60 = vpop.f32.mrb[41].mxu1 }
0x105d   :  { %v1644_v53 = vpop.f32.mrb[42].mxu1 }
0x105e   :  { %v5116_v61 = vpop.f32.mrb[43].mxu1 }
0x1061   :  { %v1693_v62 = vpop.f32.mrb[48].mxu0 }
0x1062   :  { %v5121_v63 = vpop.f32.mrb[49].mxu0  ;;  %v1751_v0 = vsel %vm500_vm4, %v1693_v62, -inf }
0x1063   :  { %1752 = vmax.xlane.f32.xlu1 %v1751_v0  ;;  %v1696_v1 = vpop.f32.mrb[50].mxu0  ;;  %v1745_v3 = vpop.f32.mrb[44].mxu1 }
0x1064   :  { %v5122_v4 = vpop.f32.mrb[51].mxu0  ;;  %v5127_v5 = vpop.f32.mrb[45].mxu1  ;;  %v1754_v6 = vsel %vm500_vm4, %v1745_v3, -inf }
0x1065   :  { %1755 = vmax.xlane.f32.xlu0 %v1754_v6  ;;  %v1748_v48 = vpop.f32.mrb[46].mxu1  ;;  %v5504_v4 = vld [vmem:[%s5855_s20 + $0x18] sm:$0xff]   ;;  %v5505_v5 = vld [vmem:[%s5865_s4 + $0x20] sm:$0xff]   ;;  %v5506_v6 = vld [vmem:[%s5865_s4 + $0x28] sm:$0xff]  }
0x1066   :  { %v5128_v8 = vpop.f32.mrb[47].mxu1 }
0x1074   :  { %1776 = vrot.lane.b32.xlu1 %v6196_v11, %s5764_s0 }
0x10f0   :  { %v1753_v9 = vpop.xlane.xlu1 %1752 }
0x10f1   :  { %v1757_v10 = vsub.f32 %v1693_v62, %v1753_v9 }
0x10f2   :  { %v1756_v12 = vpop.xlane.xlu0 %1755 }
0x10f3   :  { %v1759_v14 = vmul.f32 1.442695, %v1757_v10  ;;  %v1758_v15 = vsub.f32 %v1745_v3, %v1756_v12  ;;  %v5503_v3 = vld [vmem:[%s5855_s20 + $0x10] sm:$0xff]   ;;  %s6758_s20 = sld [smem:[#allocation22_spill]] }
0x10f4   :  { %v1777_v16 = vpop.permute.xlu1 %1776 }
0x10f5   :  { %5571 = vpow2.f32 %v1759_v14  ;;  %v1761_v17 = vmul.f32 1.442695, %v1758_v15  ;;  %v1782_v18 = vsel %vm620_vm5, %v1777_v16, 0  ;;  %v4671_v16 = vld [vmem:[%s5845_s6 + $0x1] ss:$0 sm:$0xff]  ;;  %s6753_s6 = sld [smem:[#allocation16_spill]] }
0x10f6   :  { %5130 = vmatpush3.bf16.msra.mxu0 %v1782_v18 }
0x10f7   :  { %5573 = vpow2.f32 %v1761_v17  ;;  %5141 = vmatprep.subr.bf16.mxu0 %v5762_v2 }
0x10ff   :  { %v5572_v19 = vpop.eup %5571 }
0x1100   :  { %v1763_v20 = vsel %vm500_vm4, %v5572_v19, 0.0 }
0x1101   :  { %v5574_v21 = vpop.eup %5573  ;;  %1764 = vadd.xlane.f32.xlu0 %v1763_v20 }
0x1102   :  { %v1766_v11 = vsel %vm500_vm4, %v5574_v21, 0.0 }
0x1105   :  { %1767 = vadd.xlane.f32.xlu0 %v1766_v11 }
0x111b   :  { %1825 = vrot.lane.b32.xlu0 %v6199_v13, %s5764_s0 }
0x118e   :  { %v1765_v22 = vpop.xlane.xlu0 %1764 }
0x118f   :  { %5575 = vrcp.f32 %v1765_v22 }
0x1192   :  { %v1768_v23 = vpop.xlane.xlu0 %1767 }
0x1193   :  { %5577 = vrcp.f32 %v1768_v23 }
0x1196   :  { %v1826_v24 = vpop.permute.xlu0 %1825 }
0x1197   :  { %v1831_v25 = vsel %vm620_vm5, %v1826_v24, 0 }
0x1198   :  { %5136 = vmatpush3.bf16.msra.mxu1 %v1831_v25  ;;  %v5507_v25 = vld [vmem:[%s5865_s4 + $0x30] sm:$0xff]  }
0x1199   :  { %v5576_v26 = vpop.eup %5575  ;;  %5147 = vmatprep.subr.bf16.mxu1 %v5762_v2 }
0x119a   :  { %v1771_v27 = vmul.f32 %v5576_v26, %v5572_v19  ;;  %v5508_v26 = vld [vmem:[%s5865_s4 + $0x38] sm:$0xff]   ;;  %s6759_s4 = sld [smem:[#allocation24_spill]] }
0x119c   :  { %2161 = vst.msk [vmem:[#allocation4 + $0x8] sm:$0xff] %vm500_vm4, %v1771_v27  ;;  %v1773_v31 = vpack.c.bf16 %v1771_v27, %v1771_v27  ;;  %v4673_v27 = vld [vmem:[%s6745_s21 + $0x1] ss:$0 sm:$0xff]  ;;  %s6771_s21 = sld [smem:[#allocation33_spill]] }
0x119d   :  { %v5578_v32 = vpop.eup %5577 }
0x119e   :  { %v1772_v33 = vmul.f32 %v5578_v32, %v5574_v21  ;;  %5132 = vmatmul.mubr.msk.bf16.vlgmr.msra.gmra.mrb[52].mxu0 %vm500_vm4, %v1773_v31  ;;  %v4672_v21 = vld [vmem:[%s5850_s12 + $0x1] ss:$0 sm:$0xff]  ;;  %s6754_s12 = sld [smem:[#allocation17_spill]] }
0x119f   :  { %5143 = vmatprep.mubr.msk.bf16.mxu0 %vm5763_vm2, %v5762_v2  ;;  %5142 = vmatpush3.bf16.msra.mxu0 %v5502_v28 }
0x11a0   :  { %2163 = vst.msk [vmem:[#allocation4 + $0x18] sm:$0xff] %vm500_vm4, %v1772_v33  ;;  %v1774_v13 = vpack.c.bf16 %v1772_v33, %v1772_v33  ;;  %5155 = vmatprep.subr.bf16.mxu0 %v5762_v2 }
0x11a2   :  { %5138 = vmatmul.mubr.msk.bf16.vlgmr.msra.gmra.mrb[48].mxu1 %vm500_vm4, %v1774_v13 }
0x11a3   :  { %5151 = vmatprep.mubr.msk.bf16.mxu1 %vm5763_vm2, %v5762_v2  ;;  %5148 = vmatpush3.bf16.msra.mxu1 %v5503_v3 }
0x11a4   :  { %5149 = vmatprep.subr.bf16.mxu1 %v5762_v2 }
0x11a7   :  { %5150 = vmatpush3.bf16.msra.mxu1 %v5504_v4  ;;  %v4683_v4 = vld [vmem:[%s6747_s28 + $0x1] ss:$0 sm:$0xff]  ;;  %s5768_s28 = smov [#allocation4]  }
0x11a8   :  { %5167 = vmatprep.subr.bf16.mxu1 %v5762_v2 }
0x1271   :  { %v1818_v34 = vpop.f32.mrb[52].mxu0 }
0x1272   :  { %v5133_v35 = vpop.f32.mrb[53].mxu0 }
0x1273   :  { %v1821_v36 = vpop.f32.mrb[54].mxu0 }
0x1274   :  { %v5134_v37 = vpop.f32.mrb[55].mxu0 }
0x1275   :  { %v1867_v38 = vpop.f32.mrb[48].mxu1 }
0x1276   :  { %v5468_v29 = vpack.i.bf16 %v1867_v38, %v1818_v34  ;;  %v5139_v39 = vpop.f32.mrb[49].mxu1  ;;  %v4677_v38 = vld [vmem:[%s6746_s25 + $0x1] ss:$0 sm:$0xff]  ;;  %s5766_s25 = smov 4  }
0x1277   :  { %v1870_v30 = vpop.f32.mrb[50].mxu1 }
0x1278   :  { %5469 = vrot.lane.b32.xlu1 %v5468_v29, %s5765_s17  ;;  %v5140_v40 = vpop.f32.mrb[51].mxu1 }
0x12ea   :  { %v5470_v41 = vpop.permute.xlu1 %5469 }
0x12eb   :  { %v5472_v42 = vunpack.i.h.bf16 %v5470_v41  ;;  %v5471_v43 = vunpack.i.l.bf16 %v5470_v41 }
0x12ed   :  { %v1882_v44 = vsel %vm500_vm4, %v6241_v58, %v5472_v42  ;;  %v1881_v45 = vsel %vm500_vm4, %v6239_v52, %v5471_v43 }
0x12ee   :  { %v1883_v46 = vpack.c.bf16 %v1882_v44, %v1881_v45 }
0x12f0   :  { %5144 = vmatmul.mubr.msk.bf16.vlgmr.msra.gmra.mrb[56].mxu0 %vm953_vm6, %v1883_v46 }
0x12f1   :  { %5163 = vmatprep.mubr.msk.bf16.mxu0 %vm5763_vm2, %v5762_v2  ;;  %5156 = vmatpush3.bf16.msra.mxu0 %v5505_v5 }
0x12f2   :  { %5157 = vmatprep.subr.bf16.mxu0 %v5762_v2 }
0x12f5   :  { %5158 = vmatpush3.bf16.msra.mxu0 %v5506_v6 }
0x12f6   :  { %5159 = vmatprep.subr.bf16.mxu0 %v5762_v2 }
0x12f9   :  { %5160 = vmatpush3.bf16.msra.mxu0 %v5507_v25  ;;  %v5644_v25 = vld [vmem:[%s5785_s9 + $0x8] sm:$0xff] }
0x12fa   :  { %5161 = vmatprep.subr.bf16.mxu0 %v5762_v2 }
0x12fd   :  { %5162 = vmatpush3.bf16.msra.mxu0 %v5508_v26  ;;  %v2235_v26 = vsub.f32 1.0, %v5644_v25 }
0x12fe   :  { %5181 = vmatprep.subr.bf16.mxu0 %v5762_v2 }
0x13c3   :  { %v1927_v47 = vpop.f32.mrb[56].mxu0 }
0x13c4   :  { %v1928_v49 = vadd.f32 %v1927_v47, %v6174_v54  ;;  %v5145_v50 = vpop.f32.mrb[57].mxu0 }
0x13c5   :  { %v1930_v51 = vpop.f32.mrb[58].mxu0 }
0x13c6   :  { %v1931_v56 = vadd.f32 %v1930_v51, %v6176_v55  ;;  %v5146_v57 = vpop.f32.mrb[59].mxu0  ;;  %v1934_v59 = vsel %vm343_vm3, %v1928_v49, 0.0 }
0x13c7   :  { %1935 = vadd.xlane.f32.xlu1 %v1934_v59 }
0x13c8   :  { %v1937_v52 = vsel %vm343_vm3, %v1931_v56, 0.0 }
0x13c9   :  { %1938 = vadd.xlane.f32.xlu0 %v1937_v52 }
0x1454   :  { %v1936_v58 = vpop.xlane.xlu1 %1935 }
0x1455   :  { %v1940_v60 = vmul.f32 0.03125, %v1936_v58 }
0x1456   :  { %v1939_v53 = vpop.xlane.xlu0 %1938 }
0x1457   :  { %v1942_v61 = vsub.f32 %v1928_v49, %v1940_v60  ;;  %v1941_v62 = vmul.f32 0.03125, %v1939_v53  ;;  %v5509_v53 = vld [vmem:[%s6749_s14] sm:$0xff]  }
0x1459   :  { %v1943_v54 = vsub.f32 %v1931_v56, %v1941_v62  ;;  %v1944_v63 = vmul.f32 %v1942_v61, %v1942_v61 }
0x145b   :  { %v1946_v55 = vsel %vm343_vm3, %v1944_v63, 0.0  ;;  %v1945_v0 = vmul.f32 %v1943_v54, %v1943_v54 }
0x145c   :  { %1947 = vadd.xlane.f32.xlu0 %v1946_v55 }
0x145d   :  { %v1949_v1 = vsel %vm343_vm3, %v1945_v0, 0.0 }
0x145e   :  { %1950 = vadd.xlane.f32.xlu1 %v1949_v1 }
0x14e9   :  { %v1948_v48 = vpop.xlane.xlu0 %1947 }
0x14ea   :  { %v1952_v8 = vmul.f32 0.03125, %v1948_v48 }
0x14eb   :  { %v1951_v9 = vpop.xlane.xlu1 %1950 }
0x14ec   :  { %v1954_v10 = vadd.f32 1e-06, %v1952_v8  ;;  %v1953_v12 = vmul.f32 0.03125, %v1951_v9  ;;  %v4684_v9 = vld [vmem:[%s6748_s1 + $0x1] ss:$0 sm:$0xff]  ;;  %s4510_s1 = sshll.u32 %s5768_s28, 4  ;;  %s4511_s1 = int_to_ptr.vmem [resolvable:$true] %s4510_s1 }
0x14ed   :  { %p5653_p1 = scmp.lt.s32.totalorder %s4511_s1, %s4511_s1 }
0x14ee   :  { %5579 = vrsqrt.f32 %v1954_v10  ;;  %v1955_v14 = vadd.f32 1e-06, %v1953_v12 }
0x14f0   :  { %5581 = vrsqrt.f32 %v1955_v14 }
0x14f8   :  { %v5580_v15 = vpop.eup %5579 }
0x14f9   :  { %v1958_v17 = vmul.f32 %v5580_v15, %v1942_v61  ;;  %v5510_v61 = vld [vmem:[%s6749_s14 + $0x8] sm:$0xff]   ;;  %s5648_s14 = scalar_lea.vmem %s4511_s1, 512 }
0x14fa   :  { %v5582_v18 = vpop.eup %5581  ;;  %p5649_p0 = scmp.ne.s32.totalorder %s4511_s1, %s5648_s14  ;;  %p5654_p2 = scmp.lt.s32.totalorder %s5648_s14, %s5648_s14 }
0x14fb   :  { %v1966_v19 = vmul.f32 %v4671_v16, %v1958_v17  ;;  %v1959_v20 = vmul.f32 %v5582_v18, %v1943_v54  ;;  %v2241_v18 = vld [vmem:[%s6751_s24] sm:$0x3] }
0x14fc   :  { %p5655_p3 = por %p5654_p2, %p5653_p1 }
0x14fd   :  { %v1967_v11 = vmul.f32 %v4671_v16, %v1959_v20  ;;  %v1974_v22 = vadd.f32 %v4672_v21, %v1966_v19  ;;  %v2242_v16 = vld [vmem:[%s6750_s19] sm:$0x3]  ;;  %v2291_v19 = vsel %vm195_vm0, %v2241_v18, 0 }
0x14fe   :  { %v2244_v17 = vsel %vm195_vm0, %v2242_v16, 0  ;;  %v4685_v20 = vld [vmem:[%s6752_s30] ss:$0 sm:$0xff]  ;;  %p5656_p4 = pnand %p5655_p3, %p5649_p0 }
0x14ff   :  { %v1975_v23 = vadd.f32 %v4672_v21, %v1967_v11  ;;  %v5643_v21 = vld [vmem:[%s5785_s9] sm:$0xff]  ;;  %s6756_s9 = sld [smem:[#allocation18_spill]] }
0x1500   :  { %v2234_v11 = vsub.f32 1.0, %v5643_v21 }
0x1501   :  { %v1976_v24 = vpack.c.bf16 %v1975_v23, %v1974_v22 }
0x1503   :  { %5152 = vmatmul.mubr.msk.bf16.vlgmr.msra.gmra.mrb[52].mxu1 %vm343_vm3, %v1976_v24 }
0x1504   :  { %5171 = vmatprep.mubr.msk.bf16.mxu1 %vm5763_vm2, %v5762_v2  ;;  %5168 = vmatpush3.bf16.msra.mxu1 %v5509_v53 }
0x1505   :  { %5169 = vmatprep.subr.bf16.mxu1 %v5762_v2 }
0x1508   :  { %5170 = vmatpush3.bf16.msra.mxu1 %v5510_v61  ;;  %v5515_v61 = vld [vmem:[%s6756_s9] sm:$0xff]  }
0x1509   :  { %5175 = vmatprep.subr.bf16.mxu1 %v5762_v2 }
0x15d6   :  { %v2032_v31 = vpop.f32.mrb[52].mxu1 }
0x15d7   :  { %v2033_v32 = vadd.f32 %v4673_v27, %v2032_v31  ;;  %v5153_v33 = vpop.f32.mrb[53].mxu1  ;;  %v5645_v31 = vld [vmem:[%s5780_s5] sm:$0xff] }
0x15d8   :  { %v2035_v13 = vpop.f32.mrb[54].mxu1 }
0x15d9   :  { %v2036_v28 = vadd.f32 %v4673_v27, %v2035_v13  ;;  %v5154_v34 = vpop.f32.mrb[55].mxu1  ;;  %v2039_v35 = vmax.f32 %v2033_v32, 0.0  ;;  %v2232_v32 = vmul.f32 %v5645_v31, %v5643_v21 }
0x15db   :  { %v2040_v36 = vmax.f32 %v2036_v28, 0.0  ;;  %v5646_v28 = vld [vmem:[%s5780_s5 + $0x8] sm:$0xff]  ;;  %s6755_s5 = sld [smem:[#allocation11_spill]] }
0x15dc   :  { %v2233_v34 = vmul.f32 %v5646_v28, %v5644_v25 }
0x15dd   :  { %v2041_v37 = vpack.c.bf16 %v2040_v36, %v2039_v35 }
0x15df   :  { %5164 = vmatmul.mubr.msk.bf16.vlgmr.msra.gmra.mrb[60].mxu0 %vm1137_vm7, %v2041_v37 }
0x15e0   :  { %5183 = vmatprep.mubr.msk.bf16.mxu0 %vm5763_vm2, %v5762_v2  ;;  %5182 = vmatpush3.bf16.msra.mxu0 %v2291_v19 }
0x15e1   :  { %5195 = vmatprep.subr.bf16.mxu0 %v5762_v2 }
0x16b2   :  { %v2109_v29 = vpop.f32.mrb[60].mxu0 }
0x16b3   :  { %v2110_v39 = vadd.f32 %v4677_v38, %v2109_v29  ;;  %v5165_v30 = vpop.f32.mrb[61].mxu0 }
0x16b4   :  { %v2112_v40 = vpop.f32.mrb[62].mxu0 }
0x16b5   :  { %v2113_v41 = vadd.f32 %v4677_v38, %v2112_v40  ;;  %v5166_v42 = vpop.f32.mrb[63].mxu0  ;;  %v2116_v43 = vadd.f32 %v2110_v39, %v1974_v22 }
0x16b6   :  { %v5511_v42 = vld [vmem:[%s6753_s6] sm:$0xff]  }
0x16b7   :  { %v2118_v44 = vsel %vm343_vm3, %v2116_v43, 0.0  ;;  %v2117_v45 = vadd.f32 %v2113_v41, %v1975_v23 }
0x16b8   :  { %2119 = vadd.xlane.f32.xlu0 %v2118_v44  ;;  %v5513_v44 = vld [vmem:[%s6753_s6 + $0x8] sm:$0xff]  }
0x16b9   :  { %v2121_v46 = vsel %vm343_vm3, %v2117_v45, 0.0 }
0x16ba   :  { %2122 = vadd.xlane.f32.xlu1 %v2121_v46 }
0x1745   :  { %v2120_v47 = vpop.xlane.xlu0 %2119 }
0x1746   :  { %v2124_v49 = vmul.f32 0.03125, %v2120_v47  ;;  %v4691_v47 = vld [vmem:[%s6755_s5] ss:$0 sm:$0xff] }
0x1747   :  { %v2123_v50 = vpop.xlane.xlu1 %2122 }
0x1748   :  { %v2126_v51 = vsub.f32 %v2116_v43, %v2124_v49  ;;  %v2125_v56 = vmul.f32 0.03125, %v2123_v50  ;;  %v5512_v43 = vld [vmem:[%s6754_s12] sm:$0xff]  }
0x174a   :  { %v2127_v57 = vsub.f32 %v2117_v45, %v2125_v56  ;;  %v2128_v59 = vmul.f32 %v2126_v51, %v2126_v51  ;;  %v5514_v45 = vld [vmem:[%s6754_s12 + $0x8] sm:$0xff]  }
0x174c   :  { %v2130_v52 = vsel %vm343_vm3, %v2128_v59, 0.0  ;;  %v2129_v58 = vmul.f32 %v2127_v57, %v2127_v57 }
0x174d   :  { %2131 = vadd.xlane.f32.xlu0 %v2130_v52 }
0x174e   :  { %v2133_v60 = vsel %vm343_vm3, %v2129_v58, 0.0  ;;  %v5647_v58 = vld [vmem:[%s5790_s13] sm:$0xff]  ;;  %s6757_s13 = sld [smem:[#allocation19_spill]] }
0x174f   :  { %2134 = vadd.xlane.f32.xlu1 %v2133_v60 }
0x17da   :  { %v2132_v62 = vpop.xlane.xlu0 %2131 }
0x17db   :  { %v2136_v54 = vmul.f32 0.03125, %v2132_v62 }
0x17dc   :  { %v2135_v63 = vpop.xlane.xlu1 %2134 }
0x17dd   :  { %v2138_v55 = vadd.f32 1e-06, %v2136_v54  ;;  %v2137_v0 = vmul.f32 0.03125, %v2135_v63  ;;  %v5516_v54 = vld [vmem:[%s6756_s9 + $0x8] sm:$0xff]  }
0x17df   :  { %5583 = vrsqrt.f32 %v2138_v55  ;;  %v2139_v1 = vadd.f32 1e-06, %v2137_v0 }
0x17e1   :  { %5585 = vrsqrt.f32 %v2139_v1 }
0x17e9   :  { %v5584_v3 = vpop.eup %5583 }
0x17ea   :  { %v2142_v5 = vmul.f32 %v5584_v3, %v2126_v51 }
0x17eb   :  { %v5586_v6 = vpop.eup %5585 }
0x17ec   :  { %v2150_v48 = vmul.f32 %v4683_v4, %v2142_v5  ;;  %v2143_v8 = vmul.f32 %v5586_v6, %v2127_v57 }
0x17ee   :  { %v2151_v10 = vmul.f32 %v4683_v4, %v2143_v8  ;;  %v2158_v12 = vadd.f32 %v4684_v9, %v2150_v48 }
0x17f0   :  { %v2159_v14 = vadd.f32 %v4684_v9, %v2151_v10 }
0x17f2   :  { %v2164_v15 = vpack.c.bf16 %v2159_v14, %v2158_v12 }
0x17f4   :  { %5172 = vmatmul.mubr.msk.bf16.vlgmr.msra.gmra.mrb[56].mxu1 %vm343_vm3, %v2164_v15 }
0x17f5   :  { %5177 = vmatprep.mubr.msk.bf16.mxu1 %vm5763_vm2, %v5762_v2  ;;  %5176 = vmatpush3.bf16.msra.mxu1 %v2244_v17 }
0x17f6   :  { %5187 = vmatprep.subr.bf16.mxu1 %v5762_v2 }
0x17fc   :  { %5178 = vmatmul.mubr.msk.bf16.vlgmr.msra.gmra.mrb[60].mxu1 %vm191_vm1, %v6010_v7 }
0x17fd   :  { %5191 = vmatprep.mubr.msk.bf16.mxu1 %vm5763_vm2, %v5762_v2  ;;  %5188 = vmatpush3.bf16.msra.mxu1 %v5511_v42 }
0x17fe   :  { %5189 = vmatprep.subr.bf16.mxu1 %v5762_v2 }
0x1801   :  { %5190 = vmatpush3.bf16.msra.mxu1 %v5513_v44 }
0x1802   :  { %5203 = vmatprep.subr.bf16.mxu1 %v5762_v2 }
0x18c7   :  { %v2225_v22 = vpop.f32.mrb[56].mxu1 }
0x18c8   :  { %v6326_v23 = vadd.f32 %v4685_v20, %v2225_v22  ;;  %v5173_v24 = vpop.f32.mrb[57].mxu1 }
0x18c9   :  { %v2228_v27 = vpop.f32.mrb[58].mxu1 }
0x18ca   :  { %v2236_v33 = vmul.f32 %v2234_v11, %v6326_v23  ;;  %4458 = vst.msk [vmem:[#allocation2] sm:$0xff] %vm191_vm1, %v6326_v23  ;;  %v6333_v13 = vadd.f32 %v4685_v20, %v2228_v27  ;;  %v5174_v35 = vpop.f32.mrb[59].mxu1 }
0x18cc   :  { %v2237_v36 = vmul.f32 %v2235_v26, %v6333_v13  ;;  %4459 = vst.msk [vmem:[#allocation2 + $0x8] sm:$0xff] %vm191_vm1, %v6333_v13  ;;  %v2238_v37 = vadd.f32 %v2236_v33, %v2232_v32 }
0x18ce   :  { %v2239_v38 = vadd.f32 %v2237_v36, %v2233_v34 }
0x18cf   :  { %v2280_v39 = vpop.f32.mrb[60].mxu1 }
0x18d0   :  { %v2240_v29 = vpack.c.bf16 %v2239_v38, %v2238_v37  ;;  %v5179_v30 = vpop.f32.mrb[61].mxu1 }
0x18d1   :  { %v2283_v40 = vpop.f32.mrb[62].mxu1 }
0x18d2   :  { %5184 = vmatmul.mubr.msk.bf16.vlgmr.msra.gmra.mrb[64].mxu0 %vm191_vm1, %v2240_v29  ;;  %v5180_v41 = vpop.f32.mrb[63].mxu1 }
0x18d3   :  { %5199 = vmatprep.mubr.msk.bf16.mxu0 %vm5763_vm2, %v5762_v2  ;;  %5196 = vmatpush3.bf16.msra.mxu0 %v5512_v43 }
0x18d4   :  { %5197 = vmatprep.subr.bf16.mxu0 %v5762_v2 }
0x18d7   :  { %5198 = vmatpush3.bf16.msra.mxu0 %v5514_v45 }
0x18d8   :  { %5211 = vmatprep.subr.bf16.mxu0 %v5762_v2 }
0x19a5   :  { %v2327_v46 = vpop.f32.mrb[64].mxu0 }
0x19a6   :  { %v2328_v49 = vadd.f32 %v2327_v46, %v2280_v39  ;;  %v5185_v50 = vpop.f32.mrb[65].mxu0 }
0x19a7   :  { %v2330_v51 = vpop.f32.mrb[66].mxu0 }
0x19a8   :  { %v2341_v56 = vadd.f32 %v4691_v47, %v2328_v49  ;;  %v2331_v57 = vadd.f32 %v2330_v51, %v2283_v40  ;;  %v5186_v59 = vpop.f32.mrb[67].mxu0 }
0x19aa   :  { %v2342_v52 = vadd.f32 %v4691_v47, %v2331_v57  ;;  %v6352_v60 = vadd.f32 %v5647_v58, %v2341_v56 }
0x19ac   :  { %v6354_v53 = vadd.f32 %v5647_v58, %v2342_v52 }
0x19ae   :  { %v2377_v62 = vpack.c.bf16 %v6354_v53, %v6352_v60 }
0x19b0   :  { %5192 = vmatmul.mubr.msk.bf16.vlgmr.msra.gmra.mrb[64].mxu1 %vm343_vm3, %v2377_v62  ;;  %5200 = vmatmul.mubr.msk.bf16.vlgmr.msra.gmra.mrb[68].mxu0 %vm343_vm3, %v2377_v62 }
0x19b1   :  { %5204 = vmatpush3.bf16.msra.mxu1 %v5515_v61  ;;  %5207 = vmatprep.mubr.msk.bf16.mxu1 %vm5763_vm2, %v5762_v2 }
0x19b2   :  { %5205 = vmatprep.subr.bf16.mxu1 %v5762_v2  ;;  %5213 = vmatprep.mubr.msk.bf16.mxu0 %vm5763_vm2, %v5762_v2 }
0x19b5   :  { %5206 = vmatpush3.bf16.msra.mxu1 %v5516_v54 }
0x19b6   :  { %5217 = vmatprep.subr.bf16.mxu1 %v5762_v2 }
0x19b8   :  { %5208 = vmatmul.mubr.msk.bf16.vlgmr.msra.gmra.mrb[68].mxu1 %vm343_vm3, %v2377_v62 }
0x19b9   :  { %5219 = vmatprep.mubr.msk.bf16.mxu1 %vm5763_vm2, %v5762_v2 }
0x1a83   :  { %v2427_v63 = vpop.f32.mrb[64].mxu1  ;;  %v2480_v55 = vpop.f32.mrb[68].mxu0 }
0x1a84   :  { %v2542_v0 = vpack.c.bf16 %v2480_v55, %v2480_v55  ;;  %v5193_v1 = vpop.f32.mrb[65].mxu1  ;;  %v5201_v3 = vpop.f32.mrb[69].mxu0  ;;  %v2540_v14 = vpack.c.bf16 %v2427_v63, %v2427_v63 }
0x1a85   :  { %v2430_v4 = vpop.f32.mrb[66].mxu1  ;;  %v2483_v5 = vpop.f32.mrb[70].mxu0 }
0x1a86   :  { %v2550_v6 = vsel %vm500_vm4, %v2542_v0, 0  ;;  %v2543_v48 = vpack.c.bf16 %v2483_v5, %v2483_v5  ;;  %v5194_v8 = vpop.f32.mrb[67].mxu1  ;;  %v5202_v9 = vpop.f32.mrb[71].mxu0  ;;  %v2541_v18 = vpack.c.bf16 %v2430_v4, %v2430_v4 }
0x1a87   :  { %5212 = vmatpush3.bf16.xpose.msra.mxu0 %v2550_v6 }
0x1a88   :  { %v2596_v10 = vsel %vm500_vm4, %v2543_v48, 0  ;;  %5223 = vmatprep.subr.bf16.mxu0 %v5762_v2 }
0x1a89   :  { %5218 = vmatpush3.bf16.xpose.msra.mxu1 %v2596_v10 }
0x1a8a   :  { %5229 = vmatprep.subr.bf16.mxu1 %v5762_v2 }
0x1a8b   :  { %v2533_v12 = vpop.f32.mrb[68].mxu1 }
0x1a8c   :  { %v6375_v15 = vpack.c.bf16 %v2533_v12, %v2533_v12  ;;  %v5209_v16 = vpop.f32.mrb[69].mxu1 }
0x1a8d   :  { %v2536_v17 = vpop.f32.mrb[70].mxu1 }
0x1a8e   :  { %v2666_v19 = vsel %vm620_vm5, %v6375_v15, 0  ;;  %v6379_v20 = vpack.c.bf16 %v2536_v17, %v2536_v17  ;;  %v5210_v21 = vpop.f32.mrb[71].mxu1  ;;  %5214 = vmatmul.mubr.msk.bf16.vlgmr.msra.gmra.mrb[72].mxu0 %vm500_vm4, %v2540_v14 }
0x1a8f   :  { %5224 = vmatpush3.bf16.msra.mxu0 %v2666_v19  ;;  %5225 = vmatprep.mubr.msk.bf16.mxu0 %vm5763_vm2, %v5762_v2 }
0x1a90   :  { %v2712_v11 = vsel %vm620_vm5, %v6379_v20, 0  ;;  %5220 = vmatmul.mubr.msk.bf16.vlgmr.msra.gmra.mrb[72].mxu1 %vm500_vm4, %v2541_v18  ;;  %5235 = vmatprep.subr.bf16.mxu0 %v5762_v2 }
0x1a91   :  { %5230 = vmatpush3.bf16.msra.mxu1 %v2712_v11  ;;  %5231 = vmatprep.mubr.msk.bf16.mxu1 %vm5763_vm2, %v5762_v2 }
0x1a92   :  { %5241 = vmatprep.subr.bf16.mxu1 %v5762_v2 }
0x1b61   :  { %v2586_v22 = vpop.f32.mrb[72].mxu0 }
0x1b62   :  { %v5215_v24 = vpop.f32.mrb[73].mxu0  ;;  %v2638_v25 = vsel %vm500_vm4, %v2586_v22, -inf }
0x1b63   :  { %2639 = vmax.xlane.f32.xlu0 %v2638_v25  ;;  %v2589_v26 = vpop.f32.mrb[74].mxu0  ;;  %v2632_v27 = vpop.f32.mrb[72].mxu1 }
0x1b64   :  { %v5216_v31 = vpop.f32.mrb[75].mxu0  ;;  %v5221_v32 = vpop.f32.mrb[73].mxu1  ;;  %v2641_v33 = vsel %vm500_vm4, %v2632_v27, -inf }
0x1b65   :  { %2642 = vmax.xlane.f32.xlu1 %v2641_v33  ;;  %v2635_v28 = vpop.f32.mrb[74].mxu1 }
0x1b66   :  { %v5222_v34 = vpop.f32.mrb[75].mxu1 }
0x1b76   :  { %2810 = vrot.lane.b32.xlu1 %v2543_v48, %s5764_s0 }
0x1bf0   :  { %v2640_v35 = vpop.xlane.xlu0 %2639 }
0x1bf1   :  { %v2644_v36 = vsub.f32 %v2586_v22, %v2640_v35 }
0x1bf2   :  { %v2643_v37 = vpop.xlane.xlu1 %2642 }
0x1bf3   :  { %v2646_v38 = vmul.f32 1.442695, %v2644_v36  ;;  %v2645_v29 = vsub.f32 %v2632_v27, %v2643_v37 }
0x1bf5   :  { %5587 = vpow2.f32 %v2646_v38  ;;  %v2648_v39 = vmul.f32 1.442695, %v2645_v29 }
0x1bf6   :  { %v2811_v43 = vpop.permute.xlu1 %2810 }
0x1bf7   :  { %5589 = vpow2.f32 %v2648_v39  ;;  %v2816_v52 = vsel %vm500_vm4, %v2811_v43, 0 }
0x1bff   :  { %v5588_v30 = vpop.eup %5587 }
0x1c00   :  { %v2650_v40 = vsel %vm500_vm4, %v5588_v30, 0.0 }
0x1c01   :  { %v5590_v41 = vpop.eup %5589  ;;  %2651 = vadd.xlane.f32.xlu0 %v2650_v40 }
0x1c02   :  { %v2653_v42 = vsel %vm500_vm4, %v5590_v41, 0.0 }
0x1c03   :  { %2654 = vadd.xlane.f32.xlu1 %v2653_v42 }
0x1c14   :  { %2755 = vrot.lane.b32.xlu1 %v2540_v14, %s5764_s0 }
0x1c17   :  { %2758 = vrot.lane.b32.xlu0 %v2542_v0, %s5764_s0 }
0x1c18   :  { %2807 = vrot.lane.b32.xlu1 %v2541_v18, %s5764_s0 }
0x1c8e   :  { %v2652_v44 = vpop.xlane.xlu0 %2651 }
0x1c8f   :  { %5591 = vrcp.f32 %v2652_v44 }
0x1c90   :  { %v2655_v45 = vpop.xlane.xlu1 %2654 }
0x1c91   :  { %5593 = vrcp.f32 %v2655_v45 }
0x1c92   :  { %v2759_v50 = vpop.permute.xlu0 %2758 }
0x1c93   :  { %v2764_v57 = vsel %vm500_vm4, %v2759_v50, 0 }
0x1c94   :  { %v2756_v58 = vpop.permute.xlu1 %2755 }
0x1c98   :  { %v2808_v61 = vpop.permute.xlu1 %2807 }
0x1c99   :  { %v5592_v46 = vpop.eup %5591 }
0x1c9a   :  { %v2658_v47 = vmul.f32 %v5592_v46, %v5588_v30  ;;  %v5517_v30 = vld [vmem:[%s6757_s13] sm:$0xff]  }
0x1c9b   :  { %v5594_v49 = vpop.eup %5593 }
0x1c9c   :  { %v2659_v51 = vmul.f32 %v5594_v49, %v5590_v41  ;;  %v2660_v56 = vpack.c.bf16 %v2658_v47, %v2658_v47 }
0x1c9e   :  { %5226 = vmatmul.mubr.msk.bf16.vlgmr.msra.gmra.mrb[76].mxu0 %vm500_vm4, %v2660_v56  ;;  %v2661_v59 = vpack.c.bf16 %v2659_v51, %v2659_v51 }
0x1c9f   :  { %5236 = vmatpush3.bf16.xpose.msra.mxu0 %v2764_v57  ;;  %5237 = vmatprep.mubr.msk.bf16.mxu0 %vm5763_vm2, %v5762_v2 }
0x1ca0   :  { %5232 = vmatmul.mubr.msk.bf16.vlgmr.msra.gmra.mrb[76].mxu1 %vm500_vm4, %v2661_v59  ;;  %5247 = vmatprep.subr.bf16.mxu0 %v5762_v2 }
0x1ca1   :  { %5242 = vmatpush3.bf16.xpose.msra.mxu1 %v2816_v52  ;;  %5243 = vmatprep.mubr.msk.bf16.mxu1 %vm5763_vm2, %v5762_v2 }
0x1ca2   :  { %5253 = vmatprep.subr.bf16.mxu1 %v5762_v2 }
0x1ca6   :  { %5238 = vmatmul.mubr.msk.bf16.vlgmr.msra.gmra.mrb[80].mxu0 %vm500_vm4, %v2756_v58 }
0x1ca7   :  { %5249 = vmatprep.mubr.msk.bf16.mxu0 %vm5763_vm2, %v5762_v2 }
0x1ca8   :  { %5244 = vmatmul.mubr.msk.bf16.vlgmr.msra.gmra.mrb[80].mxu1 %vm500_vm4, %v2808_v61 }
0x1ca9   :  { %5255 = vmatprep.mubr.msk.bf16.mxu1 %vm5763_vm2, %v5762_v2 }
0x1d71   :  { %v6415_v62 = vpop.f32.mrb[76].mxu0 }
0x1d72   :  { %v5227_v54 = vpop.f32.mrb[77].mxu0 }
0x1d73   :  { %v2705_v63 = vpop.f32.mrb[78].mxu0  ;;  %v6417_v55 = vpop.f32.mrb[76].mxu1 }
0x1d74   :  { %v5228_v0 = vpop.f32.mrb[79].mxu0  ;;  %v5233_v1 = vpop.f32.mrb[77].mxu1 }
0x1d75   :  { %v2751_v3 = vpop.f32.mrb[78].mxu1 }
0x1d76   :  { %v5234_v4 = vpop.f32.mrb[79].mxu1 }
0x1d79   :  { %v2800_v5 = vpop.f32.mrb[80].mxu0 }
0x1d7a   :  { %v5239_v6 = vpop.f32.mrb[81].mxu0  ;;  %v2858_v48 = vsel %vm500_vm4, %v2800_v5, -inf }
0x1d7b   :  { %2859 = vmax.xlane.f32.xlu0 %v2858_v48  ;;  %v2803_v8 = vpop.f32.mrb[82].mxu0  ;;  %v2852_v9 = vpop.f32.mrb[80].mxu1 }
0x1d7c   :  { %v5240_v10 = vpop.f32.mrb[83].mxu0  ;;  %v5245_v12 = vpop.f32.mrb[81].mxu1  ;;  %v2861_v14 = vsel %vm500_vm4, %v2852_v9, -inf }
0x1d7d   :  { %2862 = vmax.xlane.f32.xlu1 %v2861_v14  ;;  %v2855_v16 = vpop.f32.mrb[82].mxu1  ;;  %v5518_v12 = vld [vmem:[%s6758_s20] sm:$0xff]   ;;  %v5519_v14 = vld [vmem:[%s6758_s20 + $0x8] sm:$0xff]  }
0x1d7e   :  { %v5246_v17 = vpop.f32.mrb[83].mxu1  ;;  %v5520_v16 = vld [vmem:[%s6759_s4] sm:$0xff]  }
0x1d7f   :  { %v5521_v17 = vld [vmem:[%s6759_s4 + $0x8] sm:$0xff]  }
0x1d8e   :  { %2932 = vrot.lane.b32.xlu1 %v6379_v20, %s5764_s0 }
0x1e08   :  { %v2860_v18 = vpop.xlane.xlu0 %2859 }
0x1e09   :  { %v2864_v19 = vsub.f32 %v2800_v5, %v2860_v18 }
0x1e0a   :  { %v2863_v21 = vpop.xlane.xlu1 %2862 }
0x1e0b   :  { %v2866_v11 = vmul.f32 1.442695, %v2864_v19  ;;  %v2865_v22 = vsub.f32 %v2852_v9, %v2863_v21 }
0x1e0d   :  { %5595 = vpow2.f32 %v2866_v11  ;;  %v2868_v24 = vmul.f32 1.442695, %v2865_v22 }
0x1e0e   :  { %v2933_v25 = vpop.permute.xlu1 %2932 }
0x1e0f   :  { %5597 = vpow2.f32 %v2868_v24  ;;  %v2938_v26 = vsel %vm620_vm5, %v2933_v25, 0 }
0x1e10   :  { %5254 = vmatpush3.bf16.msra.mxu1 %v2938_v26 }
0x1e11   :  { %5265 = vmatprep.subr.bf16.mxu1 %v5762_v2 }
0x1e17   :  { %v5596_v27 = vpop.eup %5595 }
0x1e18   :  { %v2870_v31 = vsel %vm500_vm4, %v5596_v27, 0.0 }
0x1e19   :  { %v5598_v32 = vpop.eup %5597  ;;  %2871 = vadd.xlane.f32.xlu0 %v2870_v31 }
0x1e1a   :  { %v2873_v20 = vsel %vm500_vm4, %v5598_v32, 0.0 }
0x1e1d   :  { %2874 = vadd.xlane.f32.xlu0 %v2873_v20 }
0x1e33   :  { %2883 = vrot.lane.b32.xlu0 %v6375_v15, %s5764_s0 }
0x1ea6   :  { %v2872_v33 = vpop.xlane.xlu0 %2871 }
0x1ea7   :  { %5599 = vrcp.f32 %v2872_v33  ;;  %v4712_v33 = vld [vmem:[%s6761_s7] ss:$0 sm:$0xff] }
0x1eaa   :  { %v2875_v28 = vpop.xlane.xlu0 %2874 }
0x1eab   :  { %5601 = vrcp.f32 %v2875_v28 }
0x1eae   :  { %v2884_v34 = vpop.permute.xlu0 %2883 }
0x1eaf   :  { %v2889_v35 = vsel %vm620_vm5, %v2884_v34, 0 }
0x1eb0   :  { %5248 = vmatpush3.bf16.msra.mxu0 %v2889_v35 }
0x1eb1   :  { %v5600_v36 = vpop.eup %5599  ;;  %5259 = vmatprep.subr.bf16.mxu0 %v5762_v2 }
0x1eb2   :  { %v2878_v37 = vmul.f32 %v5600_v36, %v5596_v27  ;;  %v4711_v27 = vld [vmem:[%s6760_s2] ss:$0 sm:$0xff] }
0x1eb4   :  { %v2880_v38 = vpack.c.bf16 %v2878_v37, %v2878_v37  ;;  %v5522_v37 = vld [vmem:[%s6759_s4 + $0x10] sm:$0xff]  }
0x1eb5   :  { %v5602_v29 = vpop.eup %5601 }
0x1eb6   :  { %v2879_v39 = vmul.f32 %v5602_v29, %v5598_v32  ;;  %5250 = vmatmul.mubr.msk.bf16.vlgmr.msra.gmra.mrb[84].mxu0 %vm500_vm4, %v2880_v38  ;;  %v5523_v38 = vld [vmem:[%s6759_s4 + $0x18] sm:$0xff]   ;;  %v4713_v29 = vld [vmem:[%s6762_s10] ss:$0 sm:$0xff] }
0x1eb7   :  { %5261 = vmatprep.mubr.msk.bf16.mxu0 %vm5763_vm2, %v5762_v2  ;;  %5260 = vmatpush3.bf16.msra.mxu0 %v5517_v30 }
0x1eb8   :  { %v2881_v15 = vpack.c.bf16 %v2879_v39, %v2879_v39  ;;  %5273 = vmatprep.subr.bf16.mxu0 %v5762_v2 }
0x1eba   :  { %5256 = vmatmul.mubr.msk.bf16.vlgmr.msra.gmra.mrb[84].mxu1 %vm500_vm4, %v2881_v15 }
0x1ebb   :  { %5269 = vmatprep.mubr.msk.bf16.mxu1 %vm5763_vm2, %v5762_v2  ;;  %5266 = vmatpush3.bf16.msra.mxu1 %v5518_v12 }
0x1ebc   :  { %5267 = vmatprep.subr.bf16.mxu1 %v5762_v2 }
0x1ebf   :  { %5268 = vmatpush3.bf16.msra.mxu1 %v5519_v14 }
0x1ec0   :  { %5285 = vmatprep.subr.bf16.mxu1 %v5762_v2 }
0x1f89   :  { %v2925_v40 = vpop.f32.mrb[84].mxu0 }
0x1f8a   :  { %v5251_v41 = vpop.f32.mrb[85].mxu0 }
0x1f8b   :  { %v2928_v42 = vpop.f32.mrb[86].mxu0 }
0x1f8c   :  { %v5252_v43 = vpop.f32.mrb[87].mxu0 }
0x1f8d   :  { %v2974_v44 = vpop.f32.mrb[84].mxu1 }
0x1f8e   :  { %v5473_v45 = vpack.i.bf16 %v2974_v44, %v2925_v40  ;;  %v5257_v46 = vpop.f32.mrb[85].mxu1 }
0x1f8f   :  { %v2977_v47 = vpop.f32.mrb[86].mxu1  ;;  %v4717_v46 = vld [vmem:[%s6763_s11] ss:$0 sm:$0xff] }
0x1f90   :  { %5474 = vrot.lane.b32.xlu1 %v5473_v45, %s5765_s17  ;;  %v5258_v49 = vpop.f32.mrb[87].mxu1 }
0x2002   :  { %v5475_v50 = vpop.permute.xlu1 %5474 }
0x2003   :  { %v5477_v51 = vunpack.i.h.bf16 %v5475_v50  ;;  %v5476_v56 = vunpack.i.l.bf16 %v5475_v50 }
0x2005   :  { %v2989_v57 = vsel %vm500_vm4, %v6417_v55, %v5477_v51  ;;  %v2988_v59 = vsel %vm500_vm4, %v6415_v62, %v5476_v56 }
0x2006   :  { %v2990_v52 = vpack.c.bf16 %v2989_v57, %v2988_v59 }
0x2008   :  { %5262 = vmatmul.mubr.msk.bf16.vlgmr.msra.gmra.mrb[88].mxu0 %vm953_vm6, %v2990_v52 }
0x2009   :  { %5281 = vmatprep.mubr.msk.bf16.mxu0 %vm5763_vm2, %v5762_v2  ;;  %5274 = vmatpush3.bf16.msra.mxu0 %v5520_v16 }
0x200a   :  { %5275 = vmatprep.subr.bf16.mxu0 %v5762_v2 }
0x200d   :  { %5276 = vmatpush3.bf16.msra.mxu0 %v5521_v17 }
0x200e   :  { %5277 = vmatprep.subr.bf16.mxu0 %v5762_v2 }
0x2011   :  { %5278 = vmatpush3.bf16.msra.mxu0 %v5522_v37 }
0x2012   :  { %5279 = vmatprep.subr.bf16.mxu0 %v5762_v2 }
0x2015   :  { %5280 = vmatpush3.bf16.msra.mxu0 %v5523_v38 }
0x2016   :  { %5301 = vmatprep.subr.bf16.mxu0 %v5762_v2 }
0x20db   :  { %v3034_v58 = vpop.f32.mrb[88].mxu0 }
0x20dc   :  { %v3035_v61 = vadd.f32 %v3034_v58, %v6352_v60  ;;  %v5263_v54 = vpop.f32.mrb[89].mxu0 }
0x20dd   :  { %v3037_v63 = vpop.f32.mrb[90].mxu0 }
0x20de   :  { %v3038_v0 = vadd.f32 %v3037_v63, %v6354_v53  ;;  %v5264_v1 = vpop.f32.mrb[91].mxu0  ;;  %v3041_v3 = vsel %vm343_vm3, %v3035_v61, 0.0 }
0x20df   :  { %3042 = vadd.xlane.f32.xlu1 %v3041_v3 }
0x20e0   :  { %v3044_v62 = vsel %vm343_vm3, %v3038_v0, 0.0 }
0x20e1   :  { %3045 = vadd.xlane.f32.xlu0 %v3044_v62 }
0x216c   :  { %v3043_v55 = vpop.xlane.xlu1 %3042 }
0x216d   :  { %v3047_v4 = vmul.f32 0.03125, %v3043_v55 }
0x216e   :  { %v3046_v5 = vpop.xlane.xlu0 %3045 }
0x216f   :  { %v3049_v6 = vsub.f32 %v3035_v61, %v3047_v4  ;;  %v3048_v48 = vmul.f32 0.03125, %v3046_v5 }
0x2171   :  { %v3050_v60 = vsub.f32 %v3038_v0, %v3048_v48  ;;  %v3051_v8 = vmul.f32 %v3049_v6, %v3049_v6  ;;  %v5524_v48 = vld [vmem:[%s6753_s6 + $0x10] sm:$0xff]  }
0x2173   :  { %v3053_v53 = vsel %vm343_vm3, %v3051_v8, 0.0  ;;  %v3052_v9 = vmul.f32 %v3050_v60, %v3050_v60  ;;  %v5526_v8 = vld [vmem:[%s6753_s6 + $0x18] sm:$0xff]  }
0x2174   :  { %3054 = vadd.xlane.f32.xlu0 %v3053_v53  ;;  %v5527_v53 = vld [vmem:[%s6756_s9 + $0x18] sm:$0xff]  }
0x2175   :  { %v3056_v10 = vsel %vm343_vm3, %v3052_v9, 0.0 }
0x2178   :  { %3057 = vadd.xlane.f32.xlu0 %v3056_v10 }
0x2201   :  { %v3055_v18 = vpop.xlane.xlu0 %3054 }
0x2202   :  { %v3059_v19 = vmul.f32 0.03125, %v3055_v18 }
0x2204   :  { %v3061_v21 = vadd.f32 1e-06, %v3059_v19  ;;  %v4723_v19 = vld [vmem:[%s6764_s15] ss:$0 sm:$0xff] }
0x2205   :  { %v3058_v11 = vpop.xlane.xlu0 %3057 }
0x2206   :  { %5603 = vrsqrt.f32 %v3061_v21  ;;  %v3060_v22 = vmul.f32 0.03125, %v3058_v11 }
0x2208   :  { %v3062_v24 = vadd.f32 1e-06, %v3060_v22 }
0x220a   :  { %5605 = vrsqrt.f32 %v3062_v24 }
0x2210   :  { %v5604_v25 = vpop.eup %5603 }
0x2211   :  { %v3065_v26 = vmul.f32 %v5604_v25, %v3049_v6  ;;  %v4724_v25 = vld [vmem:[%s6765_s16] ss:$0 sm:$0xff] }
0x2213   :  { %v3073_v32 = vmul.f32 %v4711_v27, %v3065_v26 }
0x2214   :  { %v5606_v31 = vpop.eup %5605 }
0x2215   :  { %v3066_v20 = vmul.f32 %v5606_v31, %v3050_v60  ;;  %v3081_v34 = vadd.f32 %v4712_v33, %v3073_v32  ;;  %v5525_v60 = vld [vmem:[%s6756_s9 + $0x10] sm:$0xff]  }
0x2216   :  { %v5528_v32 = vld [vmem:[%s6754_s12 + $0x10] sm:$0xff]  }
0x2217   :  { %v3074_v28 = vmul.f32 %v4711_v27, %v3066_v20 }
0x2219   :  { %v3082_v35 = vadd.f32 %v4712_v33, %v3074_v28  ;;  %v5529_v33 = vld [vmem:[%s6754_s12 + $0x18] sm:$0xff]  }
0x221b   :  { %v3083_v36 = vpack.c.bf16 %v3082_v35, %v3081_v34 }
0x221d   :  { %5270 = vmatmul.mubr.msk.bf16.vlgmr.msra.gmra.mrb[88].mxu1 %vm343_vm3, %v3083_v36 }
0x221e   :  { %5289 = vmatprep.mubr.msk.bf16.mxu1 %vm5763_vm2, %v5762_v2  ;;  %5286 = vmatpush3.bf16.msra.mxu1 %v5524_v48 }
0x221f   :  { %5287 = vmatprep.subr.bf16.mxu1 %v5762_v2 }
0x2222   :  { %5288 = vmatpush3.bf16.msra.mxu1 %v5526_v8 }
0x2223   :  { %5293 = vmatprep.subr.bf16.mxu1 %v5762_v2 }
0x22f0   :  { %v3139_v39 = vpop.f32.mrb[88].mxu1 }
0x22f1   :  { %v3140_v15 = vadd.f32 %v4713_v29, %v3139_v39  ;;  %v5271_v30 = vpop.f32.mrb[89].mxu1 }
0x22f2   :  { %v3142_v40 = vpop.f32.mrb[90].mxu1 }
0x22f3   :  { %v3143_v41 = vadd.f32 %v4713_v29, %v3142_v40  ;;  %v5272_v42 = vpop.f32.mrb[91].mxu1  ;;  %v3146_v43 = vmax.f32 %v3140_v15, 0.0 }
0x22f5   :  { %v3147_v44 = vmax.f32 %v3143_v41, 0.0 }
0x22f7   :  { %v3148_v45 = vpack.c.bf16 %v3147_v44, %v3146_v43 }
0x22f9   :  { %5282 = vmatmul.mubr.msk.bf16.vlgmr.msra.gmra.mrb[92].mxu0 %vm1137_vm7, %v3148_v45 }
0x22fa   :  { %5305 = vmatprep.mubr.msk.bf16.mxu0 %vm5763_vm2, %v5762_v2  ;;  %5302 = vmatpush3.bf16.msra.mxu0 %v5525_v60 }
0x22fb   :  { %5303 = vmatprep.subr.bf16.mxu0 %v5762_v2 }
0x22fe   :  { %5304 = vmatpush3.bf16.msra.mxu0 %v5527_v53 }
0x22ff   :  { %5315 = vmatprep.subr.bf16.mxu0 %v5762_v2 }
0x23cc   :  { %v3216_v47 = vpop.f32.mrb[92].mxu0 }
0x23cd   :  { %v3217_v49 = vadd.f32 %v4717_v46, %v3216_v47  ;;  %v5283_v50 = vpop.f32.mrb[93].mxu0 }
0x23ce   :  { %v3219_v51 = vpop.f32.mrb[94].mxu0 }
0x23cf   :  { %v3220_v56 = vadd.f32 %v4717_v46, %v3219_v51  ;;  %v5284_v57 = vpop.f32.mrb[95].mxu0  ;;  %v3223_v59 = vadd.f32 %v3217_v49, %v3081_v34 }
0x23d1   :  { %v3225_v52 = vsel %vm343_vm3, %v3223_v59, 0.0  ;;  %v3224_v58 = vadd.f32 %v3220_v56, %v3082_v35 }
0x23d2   :  { %3226 = vadd.xlane.f32.xlu1 %v3225_v52 }
0x23d3   :  { %v3228_v61 = vsel %vm343_vm3, %v3224_v58, 0.0 }
0x23d4   :  { %3229 = vadd.xlane.f32.xlu0 %v3228_v61 }
0x245f   :  { %v3227_v54 = vpop.xlane.xlu1 %3226 }
0x2460   :  { %v3231_v63 = vmul.f32 0.03125, %v3227_v54 }
0x2461   :  { %v3230_v0 = vpop.xlane.xlu0 %3229 }
0x2462   :  { %v3233_v1 = vsub.f32 %v3223_v59, %v3231_v63  ;;  %v3232_v3 = vmul.f32 0.03125, %v3230_v0 }
0x2464   :  { %v3234_v62 = vsub.f32 %v3224_v58, %v3232_v3  ;;  %v3235_v55 = vmul.f32 %v3233_v1, %v3233_v1 }
0x2466   :  { %v3237_v4 = vsel %vm343_vm3, %v3235_v55, 0.0  ;;  %v3236_v5 = vmul.f32 %v3234_v62, %v3234_v62 }
0x2467   :  { %3238 = vadd.xlane.f32.xlu1 %v3237_v4 }
0x2468   :  { %v3240_v6 = vsel %vm343_vm3, %v3236_v5, 0.0 }
0x2469   :  { %3241 = vadd.xlane.f32.xlu0 %v3240_v6 }
0x24f4   :  { %v3239_v9 = vpop.xlane.xlu1 %3238 }
0x24f5   :  { %v3243_v10 = vmul.f32 0.03125, %v3239_v9 }
0x24f6   :  { %v3242_v12 = vpop.xlane.xlu0 %3241 }
0x24f7   :  { %v3245_v14 = vadd.f32 1e-06, %v3243_v10  ;;  %v3244_v16 = vmul.f32 0.03125, %v3242_v12 }
0x24f9   :  { %5607 = vrsqrt.f32 %v3245_v14  ;;  %v3246_v17 = vadd.f32 1e-06, %v3244_v16 }
0x24fb   :  { %5609 = vrsqrt.f32 %v3246_v17 }
0x2503   :  { %v5608_v18 = vpop.eup %5607 }
0x2504   :  { %v3249_v21 = vmul.f32 %v5608_v18, %v3233_v1 }
0x2505   :  { %v5610_v11 = vpop.eup %5609 }
0x2506   :  { %v3257_v22 = vmul.f32 %v4723_v19, %v3249_v21  ;;  %v3250_v24 = vmul.f32 %v5610_v11, %v3234_v62 }
0x2508   :  { %v3258_v26 = vmul.f32 %v4723_v19, %v3250_v24  ;;  %v6489_v27 = vadd.f32 %v4724_v25, %v3257_v22 }
0x250a   :  { %v6491_v31 = vadd.f32 %v4724_v25, %v3258_v26 }
0x250c   :  { %v3311_v20 = vpack.c.bf16 %v6491_v31, %v6489_v27 }
0x250e   :  { %5290 = vmatmul.mubr.msk.bf16.vlgmr.msra.gmra.mrb[92].mxu1 %vm343_vm3, %v3311_v20  ;;  %5306 = vmatmul.mubr.msk.bf16.vlgmr.msra.gmra.mrb[96].mxu0 %vm343_vm3, %v3311_v20 }
0x250f   :  { %5294 = vmatpush3.bf16.msra.mxu1 %v5528_v32  ;;  %5297 = vmatprep.mubr.msk.bf16.mxu1 %vm5763_vm2, %v5762_v2 }
0x2510   :  { %5295 = vmatprep.subr.bf16.mxu1 %v5762_v2  ;;  %5317 = vmatprep.mubr.msk.bf16.mxu0 %vm5763_vm2, %v5762_v2 }
0x2513   :  { %5296 = vmatpush3.bf16.msra.mxu1 %v5529_v33 }
0x2514   :  { %5309 = vmatprep.subr.bf16.mxu1 %v5762_v2 }
0x2516   :  { %5298 = vmatmul.mubr.msk.bf16.vlgmr.msra.gmra.mrb[96].mxu1 %vm343_vm3, %v3311_v20 }
0x2517   :  { %5311 = vmatprep.mubr.msk.bf16.mxu1 %vm5763_vm2, %v5762_v2 }
0x25e1   :  { %v3361_v28 = vpop.f32.mrb[92].mxu1  ;;  %v3467_v34 = vpop.f32.mrb[96].mxu0 }
0x25e2   :  { %v5291_v35 = vpop.f32.mrb[93].mxu1  ;;  %v5307_v36 = vpop.f32.mrb[97].mxu0  ;;  %v6511_v46 = vpack.c.bf16 %v3467_v34, %v3467_v34  ;;  %v3474_v47 = vpack.c.bf16 %v3361_v28, %v3361_v28 }
0x25e3   :  { %v3364_v37 = vpop.f32.mrb[94].mxu1  ;;  %v3470_v38 = vpop.f32.mrb[98].mxu0 }
0x25e4   :  { %v5292_v29 = vpop.f32.mrb[95].mxu1  ;;  %v5308_v39 = vpop.f32.mrb[99].mxu0  ;;  %v6514_v49 = vpack.c.bf16 %v3470_v38, %v3470_v38  ;;  %v3600_v50 = vsel %vm620_vm5, %v6511_v46, 0  ;;  %v3475_v51 = vpack.c.bf16 %v3364_v37, %v3364_v37 }
0x25e6   :  { %v3646_v56 = vsel %vm620_vm5, %v6514_v49, 0 }
0x25e9   :  { %v3414_v15 = vpop.f32.mrb[96].mxu1 }
0x25ea   :  { %v3476_v30 = vpack.c.bf16 %v3414_v15, %v3414_v15  ;;  %v5299_v40 = vpop.f32.mrb[97].mxu1 }
0x25eb   :  { %v3417_v41 = vpop.f32.mrb[98].mxu1 }
0x25ec   :  { %v3484_v42 = vsel %vm500_vm4, %v3476_v30, 0  ;;  %v3477_v43 = vpack.c.bf16 %v3417_v41, %v3417_v41  ;;  %v5300_v44 = vpop.f32.mrb[99].mxu1 }
0x25ed   :  { %5310 = vmatpush3.bf16.xpose.msra.mxu1 %v3484_v42 }
0x25ee   :  { %v3530_v45 = vsel %vm500_vm4, %v3477_v43, 0  ;;  %5321 = vmatprep.subr.bf16.mxu1 %v5762_v2 }
0x25ef   :  { %5316 = vmatpush3.bf16.xpose.msra.mxu0 %v3530_v45 }
0x25f0   :  { %5327 = vmatprep.subr.bf16.mxu0 %v5762_v2 }
0x25f4   :  { %5312 = vmatmul.mubr.msk.bf16.vlgmr.msra.gmra.mrb[100].mxu1 %vm500_vm4, %v3474_v47 }
0x25f5   :  { %5322 = vmatpush3.bf16.msra.mxu1 %v3600_v50  ;;  %5323 = vmatprep.mubr.msk.bf16.mxu1 %vm5763_vm2, %v5762_v2 }
0x25f6   :  { %5318 = vmatmul.mubr.msk.bf16.vlgmr.msra.gmra.mrb[100].mxu0 %vm500_vm4, %v3475_v51  ;;  %5333 = vmatprep.subr.bf16.mxu1 %v5762_v2 }
0x25f7   :  { %5328 = vmatpush3.bf16.msra.mxu0 %v3646_v56  ;;  %5329 = vmatprep.mubr.msk.bf16.mxu0 %vm5763_vm2, %v5762_v2 }
0x25f8   :  { %5339 = vmatprep.subr.bf16.mxu0 %v5762_v2 }
0x26c7   :  { %v3520_v57 = vpop.f32.mrb[100].mxu1 }
0x26c8   :  { %v5313_v59 = vpop.f32.mrb[101].mxu1  ;;  %v3572_v52 = vsel %vm500_vm4, %v3520_v57, -inf }
0x26c9   :  { %v3566_v58 = vpop.f32.mrb[100].mxu0  ;;  %3573 = vmax.xlane.f32.xlu1 %v3572_v52  ;;  %v3523_v61 = vpop.f32.mrb[102].mxu1 }
0x26ca   :  { %v5314_v54 = vpop.f32.mrb[103].mxu1  ;;  %v5319_v63 = vpop.f32.mrb[101].mxu0  ;;  %v3575_v0 = vsel %vm500_vm4, %v3566_v58, -inf }
0x26cb   :  { %3576 = vmax.xlane.f32.xlu0 %v3575_v0  ;;  %v3569_v1 = vpop.f32.mrb[102].mxu0 }
0x26cc   :  { %v5320_v3 = vpop.f32.mrb[103].mxu0 }
0x26da   :  { %3692 = vrot.lane.b32.xlu1 %v3476_v30, %s5764_s0 }
0x2756   :  { %v3574_v62 = vpop.xlane.xlu1 %3573 }
0x2757   :  { %v3578_v55 = vsub.f32 %v3520_v57, %v3574_v62 }
0x2758   :  { %v3577_v4 = vpop.xlane.xlu0 %3576 }
0x2759   :  { %v3580_v5 = vmul.f32 1.442695, %v3578_v55  ;;  %v3579_v6 = vsub.f32 %v3566_v58, %v3577_v4 }
0x275a   :  { %v3693_v10 = vpop.permute.xlu1 %3692 }
0x275b   :  { %5611 = vpow2.f32 %v3580_v5  ;;  %v3582_v48 = vmul.f32 1.442695, %v3579_v6  ;;  %v3698_v22 = vsel %vm500_vm4, %v3693_v10, 0 }
0x275d   :  { %5613 = vpow2.f32 %v3582_v48 }
0x2765   :  { %v5612_v60 = vpop.eup %5611 }
0x2766   :  { %v3584_v8 = vsel %vm500_vm4, %v5612_v60, 0.0 }
0x2767   :  { %v5614_v53 = vpop.eup %5613  ;;  %3585 = vadd.xlane.f32.xlu1 %v3584_v8 }
0x2768   :  { %v3587_v9 = vsel %vm500_vm4, %v5614_v53, 0.0 }
0x2769   :  { %3588 = vadd.xlane.f32.xlu0 %v3587_v9 }
0x2778   :  { %3689 = vrot.lane.b32.xlu1 %v3474_v47, %s5764_s0 }
0x277c   :  { %3741 = vrot.lane.b32.xlu1 %v3475_v51, %s5764_s0 }
0x277f   :  { %3744 = vrot.lane.b32.xlu0 %v3477_v43, %s5764_s0 }
0x27f4   :  { %v3586_v12 = vpop.xlane.xlu1 %3585 }
0x27f5   :  { %5615 = vrcp.f32 %v3586_v12  ;;  %v5530_v12 = vld [vmem:[%s6757_s13 + $0x8] sm:$0xff]  }
0x27f6   :  { %v3589_v14 = vpop.xlane.xlu0 %3588 }
0x27f7   :  { %5617 = vrcp.f32 %v3589_v14 }
0x27f8   :  { %v3690_v26 = vpop.permute.xlu1 %3689 }
0x27fa   :  { %v3745_v11 = vpop.permute.xlu0 %3744 }
0x27fb   :  { %v3750_v25 = vsel %vm500_vm4, %v3745_v11, 0 }
0x27fc   :  { %v3742_v32 = vpop.permute.xlu1 %3741 }
0x27ff   :  { %v5616_v16 = vpop.eup %5615 }
0x2800   :  { %v6536_v17 = vmul.f32 %v5616_v16, %v5612_v60 }
0x2801   :  { %v5618_v18 = vpop.eup %5617 }
0x2802   :  { %4201 = vst.msk [vmem:[#allocation6] sm:$0xff] %vm500_vm4, %v6536_v17  ;;  %v6540_v19 = vmul.f32 %v5618_v18, %v5614_v53  ;;  %v3594_v21 = vpack.c.bf16 %v6536_v17, %v6536_v17 }
0x2804   :  { %4203 = vst.msk [vmem:[#allocation6 + $0x10] sm:$0xff] %vm500_vm4, %v6540_v19  ;;  %5324 = vmatmul.mubr.msk.bf16.vlgmr.msra.gmra.mrb[104].mxu1 %vm500_vm4, %v3594_v21  ;;  %v3595_v24 = vpack.c.bf16 %v6540_v19, %v6540_v19 }
0x2805   :  { %5334 = vmatpush3.bf16.xpose.msra.mxu1 %v3698_v22  ;;  %5335 = vmatprep.mubr.msk.bf16.mxu1 %vm5763_vm2, %v5762_v2 }
0x2806   :  { %5330 = vmatmul.mubr.msk.bf16.vlgmr.msra.gmra.mrb[104].mxu0 %vm500_vm4, %v3595_v24  ;;  %5345 = vmatprep.subr.bf16.mxu1 %v5762_v2 }
0x2807   :  { %5340 = vmatpush3.bf16.xpose.msra.mxu0 %v3750_v25  ;;  %5341 = vmatprep.mubr.msk.bf16.mxu0 %vm5763_vm2, %v5762_v2 }
0x2808   :  { %5351 = vmatprep.subr.bf16.mxu0 %v5762_v2 }
0x280c   :  { %5336 = vmatmul.mubr.msk.bf16.vlgmr.msra.gmra.mrb[108].mxu1 %vm500_vm4, %v3690_v26 }
0x280d   :  { %5347 = vmatprep.mubr.msk.bf16.mxu1 %vm5763_vm2, %v5762_v2 }
0x280e   :  { %5342 = vmatmul.mubr.msk.bf16.vlgmr.msra.gmra.mrb[108].mxu0 %vm500_vm4, %v3742_v32 }
0x280f   :  { %5353 = vmatprep.mubr.msk.bf16.mxu0 %vm5763_vm2, %v5762_v2 }
0x28d7   :  { %v6564_v20 = vpop.f32.mrb[104].mxu1 }
0x28d8   :  { %v5325_v33 = vpop.f32.mrb[105].mxu1 }
0x28d9   :  { %v3639_v28 = vpop.f32.mrb[106].mxu1  ;;  %v6566_v34 = vpop.f32.mrb[104].mxu0 }
0x28da   :  { %v5326_v35 = vpop.f32.mrb[107].mxu1  ;;  %v5331_v36 = vpop.f32.mrb[105].mxu0 }
0x28db   :  { %v3685_v37 = vpop.f32.mrb[106].mxu0 }
0x28dc   :  { %v5332_v38 = vpop.f32.mrb[107].mxu0 }
0x28df   :  { %v3734_v29 = vpop.f32.mrb[108].mxu1 }
0x28e0   :  { %v5337_v39 = vpop.f32.mrb[109].mxu1  ;;  %v3792_v15 = vsel %vm500_vm4, %v3734_v29, -inf }
0x28e1   :  { %v3786_v30 = vpop.f32.mrb[108].mxu0  ;;  %3793 = vmax.xlane.f32.xlu1 %v3792_v15  ;;  %v3737_v40 = vpop.f32.mrb[110].mxu1 }
0x28e2   :  { %v5338_v41 = vpop.f32.mrb[111].mxu1  ;;  %v5343_v42 = vpop.f32.mrb[109].mxu0  ;;  %v3795_v43 = vsel %vm500_vm4, %v3786_v30, -inf }
0x28e3   :  { %3796 = vmax.xlane.f32.xlu0 %v3795_v43  ;;  %v3789_v44 = vpop.f32.mrb[110].mxu0 }
0x28e4   :  { %v5344_v45 = vpop.f32.mrb[111].mxu0 }
0x28f2   :  { %3817 = vrot.lane.b32.xlu1 %v6511_v46, %s5764_s0 }
0x296e   :  { %v3794_v47 = vpop.xlane.xlu1 %3793 }
0x296f   :  { %v3798_v50 = vsub.f32 %v3734_v29, %v3794_v47 }
0x2970   :  { %v3797_v51 = vpop.xlane.xlu0 %3796 }
0x2971   :  { %v3800_v56 = vmul.f32 1.442695, %v3798_v50  ;;  %v3799_v57 = vsub.f32 %v3786_v30, %v3797_v51  ;;  %v5531_v50 = vld [vmem:[%s6758_s20 + $0x10] sm:$0xff]   ;;  %v5532_v51 = vld [vmem:[%s6758_s20 + $0x18] sm:$0xff]  }
0x2972   :  { %v3818_v59 = vpop.permute.xlu1 %3817 }
0x2973   :  { %5619 = vpow2.f32 %v3800_v56  ;;  %v3802_v52 = vmul.f32 1.442695, %v3799_v57  ;;  %v3823_v58 = vsel %vm620_vm5, %v3818_v59, 0  ;;  %v5533_v56 = vld [vmem:[%s6759_s4 + $0x20] sm:$0xff]   ;;  %v5534_v57 = vld [vmem:[%s6759_s4 + $0x28] sm:$0xff]  }
0x2974   :  { %5346 = vmatpush3.bf16.msra.mxu1 %v3823_v58 }
0x2975   :  { %5621 = vpow2.f32 %v3802_v52  ;;  %5357 = vmatprep.subr.bf16.mxu1 %v5762_v2 }
0x297d   :  { %v5620_v61 = vpop.eup %5619 }
0x297e   :  { %v3804_v54 = vsel %vm500_vm4, %v5620_v61, 0.0 }
0x297f   :  { %v5622_v63 = vpop.eup %5621  ;;  %3805 = vadd.xlane.f32.xlu0 %v3804_v54 }
0x2980   :  { %v3807_v46 = vsel %vm500_vm4, %v5622_v63, 0.0 }
0x2983   :  { %3808 = vadd.xlane.f32.xlu0 %v3807_v46 }
0x2999   :  { %3866 = vrot.lane.b32.xlu0 %v6514_v49, %s5764_s0  ;;  %s6770_s0 = sld [smem:[#allocation34_spill]] }
0x2a0c   :  { %v3806_v0 = vpop.xlane.xlu0 %3805 }
0x2a0d   :  { %5623 = vrcp.f32 %v3806_v0  ;;  %v4776_v0 = vld [vmem:[%s6760_s2 + $0x1] ss:$0 sm:$0xff] }
0x2a10   :  { %v3809_v1 = vpop.xlane.xlu0 %3808 }
0x2a11   :  { %5625 = vrcp.f32 %v3809_v1 }
0x2a14   :  { %v3867_v3 = vpop.permute.xlu0 %3866 }
0x2a15   :  { %v3872_v62 = vsel %vm620_vm5, %v3867_v3, 0 }
0x2a16   :  { %5352 = vmatpush3.bf16.msra.mxu0 %v3872_v62 }
0x2a17   :  { %v5624_v55 = vpop.eup %5623  ;;  %5363 = vmatprep.subr.bf16.mxu0 %v5762_v2 }
0x2a18   :  { %v3812_v4 = vmul.f32 %v5624_v55, %v5620_v61 }
0x2a1a   :  { %4202 = vst.msk [vmem:[#allocation6 + $0x8] sm:$0xff] %vm500_vm4, %v3812_v4  ;;  %v3814_v5 = vpack.c.bf16 %v3812_v4, %v3812_v4  ;;  %v4331_v49 = vadd.f32 %v3812_v4, %v6536_v17  ;;  %v4777_v4 = vld [vmem:[%s6761_s7 + $0x1] ss:$0 sm:$0xff] }
0x2a1b   :  { %v5626_v6 = vpop.eup %5625 }
0x2a1c   :  { %v3813_v48 = vmul.f32 %v5626_v6, %v5622_v63  ;;  %5348 = vmatmul.mubr.msk.bf16.vlgmr.msra.gmra.mrb[112].mxu1 %vm500_vm4, %v3814_v5  ;;  %v6588_v53 = vmul.f32 0.5, %v4331_v49 }
0x2a1d   :  { %5359 = vmatprep.mubr.msk.bf16.mxu1 %vm5763_vm2, %v5762_v2  ;;  %5358 = vmatpush3.bf16.msra.mxu1 %v5530_v12  ;;  %v4778_v12 = vld [vmem:[%s6762_s10 + $0x1] ss:$0 sm:$0xff] }
0x2a1e   :  { %4204 = vst.msk [vmem:[#allocation6 + $0x18] sm:$0xff] %vm500_vm4, %v3813_v48  ;;  %v3815_v60 = vpack.c.bf16 %v3813_v48, %v3813_v48  ;;  %v4332_v8 = vadd.f32 %v3813_v48, %v6540_v19  ;;  %5371 = vmatprep.subr.bf16.mxu1 %v5762_v2 }
0x2a20   :  { %5354 = vmatmul.mubr.msk.bf16.vlgmr.msra.gmra.mrb[112].mxu0 %vm500_vm4, %v3815_v60  ;;  %v6590_v9 = vmul.f32 0.5, %v4332_v8  ;;  %v5535_v60 = vld [vmem:[%s6759_s4 + $0x30] sm:$0xff]   ;;  %v5536_v8 = vld [vmem:[%s6759_s4 + $0x38] sm:$0xff]  }
0x2a21   :  { %5367 = vmatprep.mubr.msk.bf16.mxu0 %vm5763_vm2, %v5762_v2  ;;  %5364 = vmatpush3.bf16.msra.mxu0 %v5531_v50  ;;  %v5537_v50 = vld [vmem:[%s6767_s22] sm:$0xff]  }
0x2a22   :  { %v4336_v10 = vpack.c.bf16 %v6590_v9, %v6588_v53  ;;  %5365 = vmatprep.subr.bf16.mxu0 %v5762_v2 }
0x2a25   :  { %5366 = vmatpush3.bf16.msra.mxu0 %v5532_v51  ;;  %v5538_v51 = vld [vmem:[%s6767_s22 + $0x8] sm:$0xff]  }
0x2a26   :  { %5383 = vmatprep.subr.bf16.mxu0 %v5762_v2 }
0x2aef   :  { %v3859_v14 = vpop.f32.mrb[112].mxu1 }
0x2af0   :  { %v5349_v16 = vpop.f32.mrb[113].mxu1 }
0x2af1   :  { %v3862_v17 = vpop.f32.mrb[114].mxu1 }
0x2af2   :  { %v5350_v18 = vpop.f32.mrb[115].mxu1 }
0x2af3   :  { %v3908_v19 = vpop.f32.mrb[112].mxu0 }
0x2af4   :  { %v5478_v21 = vpack.i.bf16 %v3908_v19, %v3859_v14  ;;  %v5355_v11 = vpop.f32.mrb[113].mxu0 }
0x2af5   :  { %v3911_v22 = vpop.f32.mrb[114].mxu0  ;;  %v4337_v11 = vld [vmem:[%s6766_s18] sm:$0xf] }
0x2af6   :  { %v5356_v24 = vpop.f32.mrb[115].mxu0  ;;  %5479 = vrot.lane.b32.xlu1 %v5478_v21, %s5765_s17 }
0x2b68   :  { %v5480_v25 = vpop.permute.xlu1 %5479 }
0x2b69   :  { %v5482_v26 = vunpack.i.h.bf16 %v5480_v25  ;;  %v5481_v32 = vunpack.i.l.bf16 %v5480_v25 }
0x2b6b   :  { %v3923_v33 = vsel %vm500_vm4, %v6566_v34, %v5482_v26  ;;  %v3922_v28 = vsel %vm500_vm4, %v6564_v20, %v5481_v32  ;;  %v4342_v26 = vsel %vm620_vm5, %v4337_v11, 0  ;;  %v4782_v32 = vld [vmem:[%s6763_s11 + $0x1] ss:$0 sm:$0xff] }
0x2b6c   :  { %v3924_v35 = vpack.c.bf16 %v3923_v33, %v3922_v28 }
0x2b6e   :  { %5360 = vmatmul.mubr.msk.bf16.vlgmr.msra.gmra.mrb[116].mxu1 %vm953_vm6, %v3924_v35 }
0x2b6f   :  { %5379 = vmatprep.mubr.msk.bf16.mxu1 %vm5763_vm2, %v5762_v2  ;;  %5372 = vmatpush3.bf16.msra.mxu1 %v5533_v56 }
0x2b70   :  { %5373 = vmatprep.subr.bf16.mxu1 %v5762_v2 }
0x2b73   :  { %5374 = vmatpush3.bf16.msra.mxu1 %v5534_v57 }
0x2b74   :  { %5375 = vmatprep.subr.bf16.mxu1 %v5762_v2 }
0x2b77   :  { %5376 = vmatpush3.bf16.msra.mxu1 %v5535_v60  ;;  %v4790_v60 = vld [vmem:[%s6769_s26] ss:$0 sm:$0xff] }
0x2b78   :  { %5377 = vmatprep.subr.bf16.mxu1 %v5762_v2 }
0x2b7b   :  { %5378 = vmatpush3.bf16.msra.mxu1 %v5536_v8 }
0x2b7c   :  { %5397 = vmatprep.subr.bf16.mxu1 %v5762_v2 }
0x2c41   :  { %v3968_v36 = vpop.f32.mrb[116].mxu1 }
0x2c42   :  { %v3969_v37 = vadd.f32 %v3968_v36, %v6489_v27  ;;  %v5361_v38 = vpop.f32.mrb[117].mxu1 }
0x2c43   :  { %v3971_v29 = vpop.f32.mrb[118].mxu1 }
0x2c44   :  { %v3972_v39 = vadd.f32 %v3971_v29, %v6491_v31  ;;  %v5362_v15 = vpop.f32.mrb[119].mxu1  ;;  %v3975_v30 = vsel %vm343_vm3, %v3969_v37, 0.0 }
0x2c45   :  { %3976 = vadd.xlane.f32.xlu1 %v3975_v30 }
0x2c46   :  { %v3978_v20 = vsel %vm343_vm3, %v3972_v39, 0.0 }
0x2c47   :  { %3979 = vadd.xlane.f32.xlu0 %v3978_v20 }
0x2cd2   :  { %v3977_v34 = vpop.xlane.xlu1 %3976 }
0x2cd3   :  { %v3981_v40 = vmul.f32 0.03125, %v3977_v34 }
0x2cd4   :  { %v3980_v41 = vpop.xlane.xlu0 %3979 }
0x2cd5   :  { %v3983_v42 = vsub.f32 %v3969_v37, %v3981_v40  ;;  %v3982_v43 = vmul.f32 0.03125, %v3980_v41 }
0x2cd7   :  { %v3984_v27 = vsub.f32 %v3972_v39, %v3982_v43  ;;  %v3985_v44 = vmul.f32 %v3983_v42, %v3983_v42 }
0x2cd9   :  { %v3987_v31 = vsel %vm343_vm3, %v3985_v44, 0.0  ;;  %v3986_v45 = vmul.f32 %v3984_v27, %v3984_v27 }
0x2cda   :  { %3988 = vadd.xlane.f32.xlu0 %v3987_v31 }
0x2cdb   :  { %v3990_v47 = vsel %vm343_vm3, %v3986_v45, 0.0 }
0x2cdc   :  { %3991 = vadd.xlane.f32.xlu1 %v3990_v47 }
0x2d67   :  { %v3989_v59 = vpop.xlane.xlu0 %3988 }
0x2d68   :  { %v3993_v52 = vmul.f32 0.03125, %v3989_v59 }
0x2d69   :  { %v3992_v58 = vpop.xlane.xlu1 %3991 }
0x2d6a   :  { %v3995_v61 = vadd.f32 1e-06, %v3993_v52  ;;  %v3994_v54 = vmul.f32 0.03125, %v3992_v58 }
0x2d6c   :  { %5627 = vrsqrt.f32 %v3995_v61  ;;  %v3996_v63 = vadd.f32 1e-06, %v3994_v54 }
0x2d6e   :  { %5629 = vrsqrt.f32 %v3996_v63  ;;  %v4788_v63 = vld [vmem:[%s6764_s15 + $0x1] ss:$0 sm:$0xff] }
0x2d76   :  { %v5628_v46 = vpop.eup %5627 }
0x2d77   :  { %v3999_v1 = vmul.f32 %v5628_v46, %v3983_v42 }
0x2d78   :  { %v5630_v3 = vpop.eup %5629 }
0x2d79   :  { %v4007_v62 = vmul.f32 %v4776_v0, %v3999_v1  ;;  %v4000_v55 = vmul.f32 %v5630_v3, %v3984_v27 }
0x2d7b   :  { %v4008_v5 = vmul.f32 %v4776_v0, %v4000_v55  ;;  %v4015_v6 = vadd.f32 %v4777_v4, %v4007_v62  ;;  %v4789_v62 = vld [vmem:[%s6765_s16 + $0x1] ss:$0 sm:$0xff] }
0x2d7d   :  { %v4016_v48 = vadd.f32 %v4777_v4, %v4008_v5 }
0x2d7f   :  { %v4017_v49 = vpack.c.bf16 %v4016_v48, %v4015_v6 }
0x2d81   :  { %5368 = vmatmul.mubr.msk.bf16.vlgmr.msra.gmra.mrb[116].mxu0 %vm343_vm3, %v4017_v49 }
0x2d82   :  { %5387 = vmatprep.mubr.msk.bf16.mxu0 %vm5763_vm2, %v5762_v2  ;;  %5384 = vmatpush3.bf16.msra.mxu0 %v5537_v50 }
0x2d83   :  { %5385 = vmatprep.subr.bf16.mxu0 %v5762_v2 }
0x2d86   :  { %5386 = vmatpush3.bf16.msra.mxu0 %v5538_v51 }
0x2d87   :  { %5391 = vmatprep.subr.bf16.mxu0 %v5762_v2 }
0x2e54   :  { %v4073_v14 = vpop.f32.mrb[116].mxu0 }
0x2e55   :  { %v4074_v16 = vadd.f32 %v4778_v12, %v4073_v14  ;;  %v5369_v17 = vpop.f32.mrb[117].mxu0 }
0x2e56   :  { %v4076_v18 = vpop.f32.mrb[118].mxu0 }
0x2e57   :  { %v4077_v19 = vadd.f32 %v4778_v12, %v4076_v18  ;;  %v5370_v21 = vpop.f32.mrb[119].mxu0  ;;  %v4080_v22 = vmax.f32 %v4074_v16, 0.0 }
0x2e59   :  { %v4081_v24 = vmax.f32 %v4077_v19, 0.0  ;;  %v4335_v19 = vld [vmem:[%s6770_s0] sm:$0x3] }
0x2e5b   :  { %v4082_v25 = vpack.c.bf16 %v4081_v24, %v4080_v22  ;;  %v4386_v24 = vsel %vm195_vm0, %v4335_v19, 0 }
0x2e5d   :  { %5380 = vmatmul.mubr.msk.bf16.vlgmr.msra.gmra.mrb[120].mxu1 %vm1137_vm7, %v4082_v25  ;;  %v4794_v25 = vld [vmem:[%s6771_s21] ss:$0 sm:$0xff] }
0x2e5e   :  { %5398 = vmatpush3.bf16.msra.mxu1 %v4342_v26  ;;  %5399 = vmatprep.mubr.msk.bf16.mxu1 %vm5763_vm2, %v5762_v2 }
0x2e65   :  { %5400 = vmatmul.mubr.msk.bf16.vlgmr.msra.gmra.mrb[124].mxu1 %vm500_vm4, %v4336_v10 }
0x2f30   :  { %v4150_v33 = vpop.f32.mrb[120].mxu1 }
0x2f31   :  { %v4151_v28 = vadd.f32 %v4782_v32, %v4150_v33  ;;  %v5381_v35 = vpop.f32.mrb[121].mxu1 }
0x2f32   :  { %v4153_v36 = vpop.f32.mrb[122].mxu1 }
0x2f33   :  { %v4154_v37 = vadd.f32 %v4782_v32, %v4153_v36  ;;  %v5382_v38 = vpop.f32.mrb[123].mxu1  ;;  %v4157_v29 = vadd.f32 %v4151_v28, %v4015_v6 }
0x2f34   :  { %v4798_v38 = vld [vmem:[%s5985_s27] ss:$0 sm:$0xff]  ;;  %s5767_s27 = smov 12  }
0x2f35   :  { %v4159_v39 = vsel %vm343_vm3, %v4157_v29, 0.0  ;;  %v4158_v15 = vadd.f32 %v4154_v37, %v4016_v48  ;;  %v4276_v48 = vld [vmem:[%s6768_s23] sm:$0x3] }
0x2f36   :  { %4160 = vadd.xlane.f32.xlu0 %v4159_v39  ;;  %v4288_v49 = vsel %vm195_vm0, %v4276_v48, 0 }
0x2f37   :  { %v4162_v30 = vsel %vm343_vm3, %v4158_v15, 0.0 }
0x2f38   :  { %4163 = vadd.xlane.f32.xlu1 %v4162_v30  ;;  %v6642_v20 = vpop.f32.mrb[124].mxu1 }
0x2f39   :  { %v5401_v53 = vpop.f32.mrb[125].mxu1 }
0x2f3a   :  { %v6644_v9 = vpop.f32.mrb[126].mxu1 }
0x2f3b   :  { %v5402_v10 = vpop.f32.mrb[127].mxu1 }
0x2fc3   :  { %v4161_v34 = vpop.xlane.xlu0 %4160 }
0x2fc4   :  { %v4165_v40 = vmul.f32 0.03125, %v4161_v34 }
0x2fc5   :  { %v4164_v41 = vpop.xlane.xlu1 %4163 }
0x2fc6   :  { %v4167_v42 = vsub.f32 %v4157_v29, %v4165_v40  ;;  %v4166_v43 = vmul.f32 0.03125, %v4164_v41 }
0x2fc8   :  { %v4168_v27 = vsub.f32 %v4158_v15, %v4166_v43  ;;  %v4169_v44 = vmul.f32 %v4167_v42, %v4167_v42 }
0x2fca   :  { %v4171_v31 = vsel %vm343_vm3, %v4169_v44, 0.0  ;;  %v4170_v45 = vmul.f32 %v4168_v27, %v4168_v27 }
0x2fcb   :  { %4172 = vadd.xlane.f32.xlu0 %v4171_v31 }
0x2fcc   :  { %v4174_v47 = vsel %vm343_vm3, %v4170_v45, 0.0 }
0x2fcd   :  { %4175 = vadd.xlane.f32.xlu1 %v4174_v47 }
0x3058   :  { %v4173_v56 = vpop.xlane.xlu0 %4172 }
0x3059   :  { %v4177_v57 = vmul.f32 0.03125, %v4173_v56 }
0x305a   :  { %v4176_v59 = vpop.xlane.xlu1 %4175 }
0x305b   :  { %v4179_v52 = vadd.f32 1e-06, %v4177_v57  ;;  %v4178_v58 = vmul.f32 0.03125, %v4176_v59 }
0x305d   :  { %5631 = vrsqrt.f32 %v4179_v52  ;;  %v4180_v61 = vadd.f32 1e-06, %v4178_v58 }
0x305f   :  { %5633 = vrsqrt.f32 %v4180_v61 }
0x3067   :  { %v5632_v54 = vpop.eup %5631 }
0x3068   :  { %v4183_v46 = vmul.f32 %v5632_v54, %v4167_v42 }
0x3069   :  { %v5634_v0 = vpop.eup %5633 }
0x306a   :  { %v4191_v1 = vmul.f32 %v4788_v63, %v4183_v46  ;;  %v4184_v3 = vmul.f32 %v5634_v0, %v4168_v27 }
0x306c   :  { %v4192_v55 = vmul.f32 %v4788_v63, %v4184_v3  ;;  %v4199_v4 = vadd.f32 %v4789_v62, %v4191_v1 }
0x306e   :  { %v4200_v5 = vadd.f32 %v4789_v62, %v4192_v55 }
0x3070   :  { %v4205_v6 = vpack.c.bf16 %v4200_v5, %v4199_v4 }
0x3072   :  { %5388 = vmatmul.mubr.msk.bf16.vlgmr.msra.gmra.mrb[120].mxu0 %vm343_vm3, %v4205_v6 }
0x3073   :  { %5393 = vmatprep.mubr.msk.bf16.mxu0 %vm5763_vm2, %v5762_v2  ;;  %5392 = vmatpush3.bf16.msra.mxu0 %v4288_v49 }
0x3074   :  { %5403 = vmatprep.subr.bf16.mxu0 %v5762_v2 }
0x3145   :  { %v4266_v8 = vpop.f32.mrb[120].mxu0 }
0x3146   :  { %v4267_v12 = vadd.f32 %v4790_v60, %v4266_v8  ;;  %v5389_v14 = vpop.f32.mrb[121].mxu0 }
0x3147   :  { %v4269_v16 = vpop.f32.mrb[122].mxu0 }
0x3148   :  { %v4270_v17 = vadd.f32 %v4790_v60, %v4269_v16  ;;  %v5390_v18 = vpop.f32.mrb[123].mxu0  ;;  %v4273_v21 = vmax.f32 %v4267_v12, 0.0 }
0x314a   :  { %v4274_v11 = vmax.f32 %v4270_v17, 0.0 }
0x314c   :  { %v4275_v22 = vpack.c.bf16 %v4274_v11, %v4273_v21 }
0x314e   :  { %5394 = vmatmul.mubr.msk.bf16.vlgmr.msra.gmra.mrb[124].mxu0 %vm191_vm1, %v4275_v22 }
0x314f   :  { %5404 = vmatpush3.bf16.msra.mxu0 %v4386_v24  ;;  %5405 = vmatprep.mubr.msk.bf16.mxu0 %vm5763_vm2, %v5762_v2 }
0x3156   :  { %5406 = vmatmul.mubr.msk.bf16.vlgmr.msra.gmra.mrb[128].mxu0 %vm191_vm1, %v6010_v7 }
0x3221   :  { %v4324_v26 = vpop.f32.mrb[124].mxu0 }
0x3222   :  { %v4325_v32 = vadd.f32 %v4794_v25, %v4324_v26  ;;  %v5395_v33 = vpop.f32.mrb[125].mxu0 }
0x3223   :  { %v4327_v28 = vpop.f32.mrb[126].mxu0 }
0x3224   :  { %v4328_v35 = vadd.f32 %v4794_v25, %v4327_v28  ;;  %4462 = vrot.lane.b32.xlu0 %v4325_v32, %s5766_s25  ;;  %v5396_v36 = vpop.f32.mrb[127].mxu0 }
0x3226   :  { %4464 = vrot.lane.b32.xlu1 %v4328_v35, %s5766_s25 }
0x3229   :  { %v4422_v37 = vpop.f32.mrb[128].mxu0 }
0x322a   :  { %v4423_v29 = vadd.f32 %v4422_v37, %v6642_v20  ;;  %v5407_v39 = vpop.f32.mrb[129].mxu0 }
0x322b   :  { %v4425_v15 = vpop.f32.mrb[130].mxu0 }
0x322c   :  { %v4436_v2 = vadd.f32 %v4798_v38, %v4423_v29  ;;  %v4426_v30 = vadd.f32 %v4425_v15, %v6644_v9  ;;  %v5408_v7 = vpop.f32.mrb[131].mxu0 }
0x322e   :  { %v4438_v53 = vsub.f32 0.0, %v4436_v2  ;;  %v4437_v10 = vadd.f32 %v4798_v38, %v4426_v30 }
0x3230   :  { %v4440_v34 = vmul.f32 1.442695, %v4438_v53  ;;  %v4439_v40 = vsub.f32 0.0, %v4437_v10 }
0x3232   :  { %5635 = vpow2.f32 %v4440_v34  ;;  %v4442_v41 = vmul.f32 1.442695, %v4439_v40 }
0x3234   :  { %5637 = vpow2.f32 %v4442_v41 }
0x323c   :  { %v5636_v42 = vpop.eup %5635 }
0x323d   :  { %v4444_v43 = vadd.f32 1.0, %v5636_v42 }
0x323e   :  { %v5638_v27 = vpop.eup %5637 }
0x323f   :  { %5639 = vrcp.f32 %v4444_v43  ;;  %v4445_v44 = vadd.f32 1.0, %v5638_v27 }
0x3241   :  { %5641 = vrcp.f32 %v4445_v44 }
0x3249   :  { %v5640_v20 = vpop.eup %5639 }
0x324a   :  { %4484 = vrot.lane.b32.xlu0 %v5640_v20, %s5767_s27  ;;  %v4450_v31 = vsub.f32 1.0, %v5640_v20  ;;  %v4454_v47 = vmul.f32 %v5640_v20, %v6326_v23 }
0x324b   :  { %v5642_v9 = vpop.eup %5641 }
0x324c   :  { %v4452_v45 = vmul.f32 %v4450_v31, %v4325_v32  ;;  %v4451_v50 = vsub.f32 1.0, %v5642_v9 }
0x324d   :  { %5659 = shalt.err (!%p5656_p4)
}
0x324e   :  { %s5660_s19 = scalar_lea.hbm %s5995_s29, 512 }
0x324f   :  { %p5661_p5 = scmp.ne.s32.totalorder %s5995_s29, %s5660_s19  ;;  %p5664_p6 = scmp.lt.u32.totalorder %s5660_s19, %s5995_s29 }
0x3251   :  { %p5666_p7 = pnand %p5664_p6, %p5661_p5 }
0x3253   :  { %5669 = shalt.err (!%p5666_p7)
}
0x3254   :  { %s5769_s24 = smov 128   ;;  %v4456_v23 = vadd.f32 %v4454_v47, %v4452_v45  ;;  %v4453_v51 = vmul.f32 %v4451_v50, %v4328_v35  ;;  %v4455_v56 = vmul.f32 %v5642_v9, %v6333_v13  ;;  %s5770_s30 = smov [#allocation6]  }
0x3255   :  { %4516 = dma.vmem_to_hbm [thread:$0]  %s4511_s1, 512, %s5995_s29, [#allocation5], %s5769_s24, %s5769_s24, %s5765_s17  }
0x3256   :  { %s4522_s6 = sshll.u32 %s5770_s30, 4  ;;  %4473 = vrot.lane.b32.xlu1 %v4456_v23, %s5765_s17  ;;  %v4457_v57 = vadd.f32 %v4455_v56, %v4453_v51  ;;  %s4523_s6 = int_to_ptr.vmem [resolvable:$true] %s4522_s6 }
0x3257   :  { %s5670_s12 = scalar_lea.vmem %s4523_s6, 512  ;;  %p5675_p9 = scmp.lt.s32.totalorder %s4523_s6, %s4523_s6 }
0x3258   :  { %p5671_p8 = scmp.ne.s32.totalorder %s4523_s6, %s5670_s12  ;;  %p5676_p10 = scmp.lt.s32.totalorder %s5670_s12, %s5670_s12 }
0x325a   :  { %p5677_p11 = por %p5676_p10, %p5675_p9 }
0x325c   :  { %p5678_p12 = pnand %p5677_p11, %p5671_p8 }
0x325e   :  { %5681 = shalt.err (!%p5678_p12)
}
0x325f   :  { %s5682_s29 = scalar_lea.hbm %s6000_s3, 512 }
0x3260   :  { %p5683_p13 = scmp.ne.s32.totalorder %s6000_s3, %s5682_s29  ;;  %p5686_p0 = scmp.lt.u32.totalorder %s5682_s29, %s6000_s3 }
0x3262   :  { %p5688_p1 = pnand %p5686_p0, %p5683_p13 }
0x3264   :  { %5691 = shalt.err (!%p5688_p1)
}
0x3265   :  { %4528 = dma.vmem_to_hbm [thread:$0]  %s4523_s6, 512, %s6000_s3, [#allocation5], %s5769_s24, %s5769_s24, %s5765_s17   ;;  %vm4468_vm8 = vcmask 64544   ;;  %vm4479_vm9 = vcmask 97344   ;;  %vm4490_vm10 = vcmask 130144  }
0x3266   :  { %4475 = vrot.lane.b32.xlu1 %v4457_v57, %s5765_s17  ;;  %s5771_s5 = smov [#allocation2]  }
0x3267   :  { %s4498_s9 = sshll.u32 %s5771_s5, 4  ;;  %s4499_s9 = int_to_ptr.vmem [resolvable:$true] %s4498_s9 }
0x3268   :  { %s5692_s3 = scalar_lea.vmem %s4499_s9, 256  ;;  %p5697_p3 = scmp.lt.s32.totalorder %s4499_s9, %s4499_s9 }
0x3269   :  { %p5693_p2 = scmp.ne.s32.totalorder %s4499_s9, %s5692_s3  ;;  %p5698_p4 = scmp.lt.s32.totalorder %s5692_s3, %s5692_s3 }
0x326a   :  { %4486 = vrot.lane.b32.xlu1 %v5642_v9, %s5767_s27 }
0x326b   :  { %p5699_p5 = por %p5698_p4, %p5697_p3 }
0x326d   :  { %p5700_p6 = pnand %p5699_p5, %p5693_p2 }
0x3296   :  { %v4463_v13 = vpop.permute.xlu0 %4462 }
0x3297   :  { %4469 = vst.msk [vmem:[#allocation2] sm:$0xff] %vm4468_vm8, %v4463_v13 }
0x3298   :  { %v4465_v59 = vpop.permute.xlu1 %4464 }
0x3299   :  { %4470 = vst.msk [vmem:[#allocation2 + $0x8] sm:$0xff] %vm4468_vm8, %v4465_v59 }
0x32bc   :  { %v4485_v58 = vpop.permute.xlu0 %4484 }
0x32c8   :  { %v4474_v52 = vpop.permute.xlu1 %4473 }
0x32c9   :  { %4480 = vst.msk [vmem:[#allocation2] sm:$0xff] %vm4479_vm9, %v4474_v52 }
0x32ca   :  { %4491 = vst.msk [vmem:[#allocation2] sm:$0xff] %vm4490_vm10, %v4485_v58 }
0x32d8   :  { %v4476_v61 = vpop.permute.xlu1 %4475 }
0x32d9   :  { %4481 = vst.msk [vmem:[#allocation2 + $0x8] sm:$0xff] %vm4479_vm9, %v4476_v61 }
0x32dc   :  { %v4487_v54 = vpop.permute.xlu1 %4486 }
0x32dd   :  { %4492 = vst.msk [vmem:[#allocation2 + $0x8] sm:$0xff] %vm4490_vm10, %v4487_v54 }
0x32de   :  { %5703 = shalt.err (!%p5700_p6)
}
0x32df   :  { %s5704_s13 = scalar_lea.hbm %s5990_s8, 256 }
0x32e0   :  { %p5705_p7 = scmp.ne.s32.totalorder %s5990_s8, %s5704_s13  ;;  %p5708_p8 = scmp.lt.u32.totalorder %s5704_s13, %s5990_s8 }
0x32e2   :  { %p5710_p9 = pnand %p5708_p8, %p5705_p7 }
0x32e4   :  { %5713 = shalt.err (!%p5710_p9)
}
0x32e5   :  { %4504 = dma.vmem_to_hbm [thread:$0]  %s4499_s9, 256, %s5990_s8, [#allocation3], %s5769_s24, %s5769_s24, %s5765_s17  }
0x32e6   :  { %5714 = dma.done.wait [#allocation3], 256  }
0x32e7   :  { %5715 = vsyncadd [#allocation3], 4294967040 }
0x32e8   :  { %5716 = dma.done.wait [#allocation5], 1024  }
0x32e9   :  { %5717 = vsyncadd [#allocation5], 4294966272 }
0x32ea   :  { %4538 = vsyncpa [#allocation3], 1 }
0x32eb   :  { %4539 = vsyncpa [#allocation5], 1 }

</bundles_post_ra>
